<compile_context>
chip_gen: v5e
topology: v5e:2x2
jax: 0.10.0
libtpu: 0.0.40
codegen_flags: <defaults>
</compile_context>

<pallas_src>
import jax
import jax.numpy as jnp
from jax.experimental import pallas as pl
from jax.experimental.pallas import tpu as pltpu


def _layernorm(z, gamma, beta, eps=1e-5):
    # One-pass variance (E[x^2] - E[x]^2): halves the cross-lane XLU
    # reductions per layernorm vs. the two-pass form.
    mu = jnp.mean(z, axis=-1, keepdims=True)
    mu2 = jnp.mean(z * z, axis=-1, keepdims=True)
    var = jnp.maximum(mu2 - mu * mu, 0.0)
    return (z - mu) * jax.lax.rsqrt(var + eps) * gamma + beta


def _layernorm_ref(z, gamma, beta, eps=1e-5):
    mu = jnp.mean(z, axis=-1, keepdims=True)
    var = jnp.mean((z - mu) ** 2, axis=-1, keepdims=True)
    return (z - mu) * jax.lax.rsqrt(var + eps) * gamma + beta


def _sigmoid(x):
    # sigmoid(x) = 0.5 * (1 + tanh(0.5 x)): one EUP op instead of exp + recip.
    return 0.5 * (jnp.tanh(0.5 * x) + 1.0)


# --------------------------------------------------------------------------
# Fused kernel: input projection + serial recurrence (TT timesteps / step)
# --------------------------------------------------------------------------
def lstm_fused_kernel(x_ref, wi_ref, wh_ref, g1_ref, b1_ref, g2_ref, b2_ref,
                      bias_ref, g3_ref, b3_ref,
                      H_ref, hout_ref, cout_ref,
                      xi_sc, h_sc, c_sc):
    t_blk = pl.program_id(1)

    @pl.when(t_blk == 0)
    def _():
        h_sc[...] = jnp.zeros_like(h_sc)
        c_sc[...] = jnp.zeros_like(c_sc)

    TT, bb, D = x_ref.shape
    Hd = h_sc.shape[-1]
    G = wh_ref.shape[-1]

    # ---- fused non-recurrent projection for the whole time block ----------
    # One big MXU GEMM (M = TT*bb) in bf16 with f32 accumulation; result is
    # parked in VMEM scratch so the serial loop does dense xi_sc[i] loads.
    x2 = x_ref[...].astype(jnp.bfloat16).reshape(TT * bb, D)
    xi = jnp.dot(x2, wi_ref[...], preferred_element_type=jnp.float32)
    xi = _layernorm(xi, g2_ref[...], b2_ref[...]) + bias_ref[...]
    xi_sc[...] = xi.reshape(TT, bb, G)

    # ---- serial recurrence over the TT timesteps of this block ------------
    wh = wh_ref[...]            # loop-invariant, loaded once per grid step
    g1 = g1_ref[...]
    b1 = b1_ref[...]
    g3 = g3_ref[...]
    b3 = b3_ref[...]

    def step(i, carry):
        h, c = carry
        xi_t = xi_sc[i]                                        # (bb, G) dense load
        hh = jnp.dot(h.astype(jnp.bfloat16), wh,
                     preferred_element_type=jnp.float32)       # MXU, f32 accum
        gates = _layernorm(hh, g1, b1) + xi_t
        # NOTE: non-128-multiple Hd makes these slices relayouts; pad Hd to a
        # multiple of 128 in production configs for lane-aligned gate splits.
        i_g = gates[:, 0 * Hd:1 * Hd]
        f_g = gates[:, 1 * Hd:2 * Hd]
        g_g = gates[:, 2 * Hd:3 * Hd]
        o_g = gates[:, 3 * Hd:4 * Hd]
        c_new = _sigmoid(f_g) * c + _sigmoid(i_g) * jnp.tanh(g_g)
        c_new = _layernorm(c_new, g3, b3)
        h_new = _sigmoid(o_g) * jnp.tanh(c_new)
        H_ref[i] = h_new.astype(H_ref.dtype)                   # dense (bb, Hd) store
        return h_new, c_new

    unroll = True if TT <= 8 else 4
    h, c = jax.lax.fori_loop(0, TT, step, (h_sc[...], c_sc[...]), unroll=unroll)

    h_sc[...] = h
    c_sc[...] = c
    # Final-state out blocks are VMEM-resident across the time axis (constant
    # index_map); writing every step is just a pair of cheap VMEM stores and
    # guarantees no stale data ever reaches HBM.
    hout_ref[...] = h.astype(hout_ref.dtype)
    cout_ref[...] = c.astype(cout_ref.dtype)


# --------------------------------------------------------------------------
# Wrapper
# --------------------------------------------------------------------------
def _vmem_bytes_estimate(tt, b_block, D, G, Hd):
    xi_scratch = tt * b_block * G * 4                  # f32 xi scratch
    x_blocks = 2 * tt * b_block * D * 4                # double-buffered x block
    h_blocks = 2 * tt * b_block * Hd * 4               # double-buffered H block
    weights = 2 * (D * G + Hd * G) * 2                 # bf16 W_i / W_h (x2 buffers)
    state = 4 * b_block * Hd * 4                       # h/c scratch + hout/cout
    small = 2 * (5 * 8 * G + 2 * 8 * Hd) * 4           # ln params / bias (padded)
    return xi_scratch + x_blocks + h_blocks + weights + state + small


def _pick_tt(T, b_block, D, G, Hd, budget=28 << 20):
    # Largest time tile that amortizes grid-step overhead and stays inside a
    # v7x-safe VMEM budget.
    for cand in (64, 32, 16, 8):
        if T % cand == 0 and _vmem_bytes_estimate(cand, b_block, D, G, Hd) <= budget:
            return cand
    return 8 if T % 8 == 0 else T


def lstm_forward(x, params, *, tt=None, b_block=None, vmem_limit_bytes=None,
                 use_core_parallel=False):
    """x: (B, T, D) float32.  Returns (H, (h, c)) matching the PyTorch module."""
    B, T, D = x.shape
    Hd = params["W_h"].shape[0]
    G = 4 * Hd

    # Pad batch to a multiple of 8 (f32 sublane); padded rows are sliced off.
    B_pad = ((B + 7) // 8) * 8
    if B_pad != B:
        x = jnp.pad(x, ((0, B_pad - B), (0, 0), (0, 0)))

    # Batch rows per grid step.  nb=1 by default (single-TC v5e/v6e); pass
    # b_block=B_pad//2 and use_core_parallel=True to split the recurrence
    # across v7x's two TensorCores.
    if b_block is None:
        b_block = B_pad
    assert B_pad % b_block == 0 and b_block % 8 == 0
    nb = B_pad // b_block

    # Timesteps per grid step, picked against the VMEM budget.
    if tt is None:
        tt = _pick_tt(T, b_block, D, G, Hd)
    assert T % tt == 0
    nt = T // tt

    # Always set an explicit scoped-VMEM limit (v5e default is only 16 MiB).
    if vmem_limit_bytes is None:
        est = _vmem_bytes_estimate(tt, b_block, D, G, Hd)
        vmem_limit_bytes = int(min(96 << 20, max(32 << 20, 2 * est)))

    # Time-major layout so per-timestep access inside the kernel is a dense
    # leading-axis slice (layout plumbing only; no compute hoisted out).
    x_tm = jnp.transpose(x, (1, 0, 2))                     # (T, B_pad, D)

    wi_bf16 = params["W_i"].astype(jnp.bfloat16)           # (D, 4H)
    wh_bf16 = params["W_h"].astype(jnp.bfloat16)           # (H, 4H)

    const = lambda b, t: (0, 0)
    batch_sem = (pltpu.CORE_PARALLEL if (use_core_parallel and nb > 1)
                 else pltpu.PARALLEL)

    out_shapes = (
        jax.ShapeDtypeStruct((T, B_pad, Hd), x.dtype),     # H (time-major)
        jax.ShapeDtypeStruct((B_pad, Hd), x.dtype),        # final h
        jax.ShapeDtypeStruct((B_pad, Hd), x.dtype),        # final c
    )

    H_tm, h_fin, c_fin = pl.pallas_call(
        lstm_fused_kernel,
        out_shape=out_shapes,
        grid_spec=pltpu.PrefetchScalarGridSpec(
            num_scalar_prefetch=0,
            grid=(nb, nt),
            in_specs=[
                pl.BlockSpec((tt, b_block, D), lambda b, t: (t, b, 0)),  # x
                pl.BlockSpec((D, G), const),          # W_i (bf16)
                pl.BlockSpec((Hd, G), const),         # W_h (bf16)
                pl.BlockSpec((1, G), const),          # ln1 gamma
                pl.BlockSpec((1, G), const),          # ln1 beta
                pl.BlockSpec((1, G), const),          # ln2 gamma
                pl.BlockSpec((1, G), const),          # ln2 beta
                pl.BlockSpec((1, G), const),          # bias
                pl.BlockSpec((1, Hd), const),         # ln3 gamma
                pl.BlockSpec((1, Hd), const),         # ln3 beta
            ],
            out_specs=[
                pl.BlockSpec((tt, b_block, Hd), lambda b, t: (t, b, 0)),
                pl.BlockSpec((b_block, Hd), lambda b, t: (b, 0)),
                pl.BlockSpec((b_block, Hd), lambda b, t: (b, 0)),
            ],
            scratch_shapes=[
                pltpu.VMEM((tt, b_block, G), jnp.float32),   # fused xi block
                pltpu.VMEM((b_block, Hd), jnp.float32),      # h carry
                pltpu.VMEM((b_block, Hd), jnp.float32),      # c carry
            ],
        ),
        compiler_params=pltpu.CompilerParams(
            dimension_semantics=(batch_sem, pltpu.ARBITRARY),
            vmem_limit_bytes=vmem_limit_bytes),
    )(x_tm, wi_bf16, wh_bf16,
      params["ln1_g"], params["ln1_b"], params["ln2_g"], params["ln2_b"],
      params["bias"], params["ln3_g"], params["ln3_b"])

    H = jnp.transpose(H_tm, (1, 0, 2))[:B]
    return H, (h_fin[:B], c_fin[:B])


# --------------------------------------------------------------------------
# Parameter init mirroring LSTMCell.__init__ and a pure-JAX reference
# --------------------------------------------------------------------------
def init_params(key, input_dim, hidden_dim):
    keys = jax.random.split(key, 8)

    bound = jnp.sqrt(6.0 / (input_dim + hidden_dim))
    Wi_blocks = [jax.random.uniform(keys[k], (input_dim, hidden_dim),
                                    jnp.float32, -bound, bound) for k in range(4)]
    W_i = jnp.concatenate(Wi_blocks, axis=1)                   # (D, 4H)

    def orth(k):
        a = jax.random.normal(k, (hidden_dim, hidden_dim), jnp.float32)
        q, r = jnp.linalg.qr(a)
        return q * jnp.sign(jnp.diag(r))[None, :]
    W_h = jnp.concatenate([orth(keys[4 + k]) for k in range(4)], axis=1)  # (H, 4H)

    bias = jnp.zeros((4 * hidden_dim,), jnp.float32)
    bias = bias.at[hidden_dim:2 * hidden_dim].set(1.0)         # forget-gate bias

    return {
        "W_i": W_i,
        "W_h": W_h,
        "bias": bias.reshape(1, 4 * hidden_dim),
        "ln1_g": jnp.ones((1, 4 * hidden_dim), jnp.float32),
        "ln1_b": jnp.zeros((1, 4 * hidden_dim), jnp.float32),
        "ln2_g": jnp.ones((1, 4 * hidden_dim), jnp.float32),
        "ln2_b": jnp.zeros((1, 4 * hidden_dim), jnp.float32),
        "ln3_g": jnp.ones((1, hidden_dim), jnp.float32),
        "ln3_b": jnp.zeros((1, hidden_dim), jnp.float32),
    }


def lstm_reference(x, params):
    """Pure-JAX f32 reference (lax.scan), exact module semantics."""
    B, T, D = x.shape
    Hd = params["W_h"].shape[0]

    def cell(carry, x_t):
        h, c = carry
        gates = (_layernorm_ref(h @ params["W_h"], params["ln1_g"], params["ln1_b"])
                 + _layernorm_ref(x_t @ params["W_i"], params["ln2_g"], params["ln2_b"])
                 + params["bias"])
        i_g, f_g, g_g, o_g = jnp.split(gates, 4, axis=1)
        c = jax.nn.sigmoid(f_g) * c + jax.nn.sigmoid(i_g) * jnp.tanh(g_g)
        c = _layernorm_ref(c, params["ln3_g"], params["ln3_b"])
        h = jax.nn.sigmoid(o_g) * jnp.tanh(c)
        return (h, c), h

    h0 = jnp.zeros((B, Hd), x.dtype)
    c0 = jnp.zeros((B, Hd), x.dtype)
    (h, c), Hs = jax.lax.scan(cell, (h0, c0), jnp.transpose(x, (1, 0, 2)))
    return jnp.transpose(Hs, (1, 0, 2)), (h, c)


if __name__ == "__main__":
    B, T, D, Hd = 2, 8, 16, 32
    key = jax.random.PRNGKey(0)
    k_x, k_p = jax.random.split(key)

    x = jax.random.normal(k_x, (B, T, D), jnp.float32)
    params = init_params(k_p, D, Hd)

    fwd = jax.jit(lstm_forward)
    H_out, (h_fin, c_fin) = fwd(x, params)
    jax.block_until_ready((H_out, h_fin, c_fin))

    H_ref, (h_ref, c_ref) = lstm_reference(x, params)
    assert H_out.shape == (B, T, Hd)
    assert h_fin.shape == (B, Hd) and c_fin.shape == (B, Hd)
    # Tolerance loosened vs. the f32 reference because x/W_i/W_h feed the MXU
    # in bf16 (f32 accumulation).
    assert jnp.allclose(H_out, H_ref, atol=5e-2, rtol=5e-2)
    assert jnp.allclose(h_fin, h_ref, atol=5e-2, rtol=5e-2)
    assert jnp.allclose(c_fin, c_ref, atol=5e-2, rtol=5e-2)

    print("KERNEL_OK")
</pallas_src>

<mosaic_0001>
module attributes {stable_mosaic.version = 11 : i64} {
  func.func @lstm_fused_kernel(%arg0: i32, %arg1: i32, %arg2: memref<8x8x16xf32, #tpu.memory_space<vmem>>, %arg3: memref<16x128xbf16, #tpu.memory_space<vmem>>, %arg4: memref<32x128xbf16, #tpu.memory_space<vmem>>, %arg5: memref<1x128xf32, #tpu.memory_space<vmem>>, %arg6: memref<1x128xf32, #tpu.memory_space<vmem>>, %arg7: memref<1x128xf32, #tpu.memory_space<vmem>>, %arg8: memref<1x128xf32, #tpu.memory_space<vmem>>, %arg9: memref<1x128xf32, #tpu.memory_space<vmem>>, %arg10: memref<1x32xf32, #tpu.memory_space<vmem>>, %arg11: memref<1x32xf32, #tpu.memory_space<vmem>>, %arg12: memref<8x8x32xf32, #tpu.memory_space<vmem>>, %arg13: memref<8x32xf32, #tpu.memory_space<vmem>>, %arg14: memref<8x32xf32, #tpu.memory_space<vmem>>, %arg15: memref<8x8x128xf32, #tpu.memory_space<vmem>>, %arg16: memref<8x32xf32, #tpu.memory_space<vmem>>, %arg17: memref<8x32xf32, #tpu.memory_space<vmem>>) attributes {dimension_semantics = [#tpu.dimension_semantics<parallel>, #tpu.dimension_semantics<arbitrary>], iteration_bounds = array<i64: 1, 1>, scalar_prefetch = 0 : i64, scratch_operands = 3 : i64, tpu.core_type = #tpu.core_type<tc>, window_params = [{transform_indices = @transform_0, window_bounds = array<i64: 8, 8, 16>}, {pipeline_mode = #tpu.pipeline_mode<synchronous>, transform_indices = @transform_1, window_bounds = array<i64: 16, 128>}, {pipeline_mode = #tpu.pipeline_mode<synchronous>, transform_indices = @transform_2, window_bounds = array<i64: 32, 128>}, {pipeline_mode = #tpu.pipeline_mode<synchronous>, transform_indices = @transform_3, window_bounds = array<i64: 1, 128>}, {pipeline_mode = #tpu.pipeline_mode<synchronous>, transform_indices = @transform_4, window_bounds = array<i64: 1, 128>}, {pipeline_mode = #tpu.pipeline_mode<synchronous>, transform_indices = @transform_5, window_bounds = array<i64: 1, 128>}, {pipeline_mode = #tpu.pipeline_mode<synchronous>, transform_indices = @transform_6, window_bounds = array<i64: 1, 128>}, {pipeline_mode = #tpu.pipeline_mode<synchronous>, transform_indices = @transform_7, window_bounds = array<i64: 1, 128>}, {pipeline_mode = #tpu.pipeline_mode<synchronous>, transform_indices = @transform_8, window_bounds = array<i64: 1, 32>}, {pipeline_mode = #tpu.pipeline_mode<synchronous>, transform_indices = @transform_9, window_bounds = array<i64: 1, 32>}, {transform_indices = @transform_10, window_bounds = array<i64: 8, 8, 32>}, {transform_indices = @transform_11, window_bounds = array<i64: 8, 32>}, {transform_indices = @transform_12, window_bounds = array<i64: 8, 32>}]} {
    %c0_i32 = arith.constant 0 : i32
    %0 = arith.cmpi eq, %arg1, %c0_i32 : i32
    %1 = arith.extui %0 : i1 to i32
    %c0_i32_0 = arith.constant 0 : i32
    %2 = arith.cmpi ne, %1, %c0_i32_0 : i32
    scf.if %2 {
      %cst_251 = arith.constant 0.000000e+00 : f32
      %762 = vector.broadcast %cst_251 : f32 to vector<8x32xf32>
      %c0_252 = arith.constant 0 : index
      %c0_253 = arith.constant 0 : index
      %763 = vector.load %arg16[%c0_252, %c0_253] : memref<8x32xf32, #tpu.memory_space<vmem>>, vector<8x32xf32>
      tpu.vector_store %arg16[%c0_252, %c0_253], %762 {strides = array<i32>} : memref<8x32xf32, #tpu.memory_space<vmem>>, vector<8x32xf32>,
      %cst_254 = arith.constant 0.000000e+00 : f32
      %764 = vector.broadcast %cst_254 : f32 to vector<8x32xf32>
      %c0_255 = arith.constant 0 : index
      %c0_256 = arith.constant 0 : index
      %765 = vector.load %arg17[%c0_255, %c0_256] : memref<8x32xf32, #tpu.memory_space<vmem>>, vector<8x32xf32>
      tpu.vector_store %arg17[%c0_255, %c0_256], %764 {strides = array<i32>} : memref<8x32xf32, #tpu.memory_space<vmem>>, vector<8x32xf32>,
    } else {
    }
    %c0 = arith.constant 0 : index
    %c0_1 = arith.constant 0 : index
    %c0_2 = arith.constant 0 : index
    %3 = vector.load %arg2[%c0, %c0_1, %c0_2] : memref<8x8x16xf32, #tpu.memory_space<vmem>>, vector<8x8x16xf32>
    %4 = arith.truncf %3 : vector<8x8x16xf32> to vector<8x8x16xbf16>
    %5 = vector.shape_cast %4 : vector<8x8x16xbf16> to vector<64x16xbf16>
    %c0_3 = arith.constant 0 : index
    %c0_4 = arith.constant 0 : index
    %6 = vector.load %arg3[%c0_3, %c0_4] : memref<16x128xbf16, #tpu.memory_space<vmem>>, vector<16x128xbf16>
    %cst = arith.constant dense<0.000000e+00> : vector<64x128xf32>
    %7 = tpu.matmul %5, %6, %cst {dimension_numbers = #tpu.dot_dimension_numbers<[1], [0], [0], [1], [0, 0, 1, 1], [], []>} : vector<64x16xbf16>, vector<16x128xbf16>, vector<64x128xf32> -> vector<64x128xf32>
    %c0_5 = arith.constant 0 : index
    %c0_6 = arith.constant 0 : index
    %8 = vector.load %arg7[%c0_5, %c0_6] : memref<1x128xf32, #tpu.memory_space<vmem>>, vector<1x128xf32>
    %c0_7 = arith.constant 0 : index
    %c0_8 = arith.constant 0 : index
    %9 = vector.load %arg8[%c0_7, %c0_8] : memref<1x128xf32, #tpu.memory_space<vmem>>, vector<1x128xf32>
    %cst_9 = arith.constant dense<0.000000e+00> : vector<64xf32>
    %10 = vector.multi_reduction <add>, %7, %cst_9 [1] : vector<64x128xf32> to vector<64xf32>
    %11 = vector.shape_cast %10 : vector<64xf32> to vector<64x1xf32>
    %cst_10 = arith.constant 1.280000e+02 : f32
    %12 = vector.broadcast %cst_10 : f32 to vector<64x1xf32>
    %13 = arith.divf %11, %12 : vector<64x1xf32>
    %14 = arith.mulf %7, %7 : vector<64x128xf32>
    %cst_11 = arith.constant dense<0.000000e+00> : vector<64xf32>
    %15 = vector.multi_reduction <add>, %14, %cst_11 [1] : vector<64x128xf32> to vector<64xf32>
    %16 = vector.shape_cast %15 : vector<64xf32> to vector<64x1xf32>
    %cst_12 = arith.constant 1.280000e+02 : f32
    %17 = vector.broadcast %cst_12 : f32 to vector<64x1xf32>
    %18 = arith.divf %16, %17 : vector<64x1xf32>
    %19 = arith.mulf %13, %13 : vector<64x1xf32>
    %20 = arith.subf %18, %19 : vector<64x1xf32>
    %cst_13 = arith.constant 0.000000e+00 : f32
    %21 = vector.broadcast %cst_13 : f32 to vector<64x1xf32>
    %22 = arith.maximumf %20, %21 : vector<64x1xf32>
    %23 = vector.broadcast %13 : vector<64x1xf32> to vector<64x128xf32>
    %24 = arith.subf %7, %23 : vector<64x128xf32>
    %cst_14 = arith.constant 9.99999974E-6 : f32
    %25 = vector.broadcast %cst_14 : f32 to vector<64x1xf32>
    %26 = arith.addf %22, %25 : vector<64x1xf32>
    %27 = math.rsqrt %26 : vector<64x1xf32>
    %28 = vector.broadcast %27 : vector<64x1xf32> to vector<64x128xf32>
    %29 = arith.mulf %24, %28 : vector<64x128xf32>
    %30 = vector.broadcast %8 : vector<1x128xf32> to vector<64x128xf32>
    %31 = arith.mulf %29, %30 : vector<64x128xf32>
    %32 = vector.broadcast %9 : vector<1x128xf32> to vector<64x128xf32>
    %33 = arith.addf %31, %32 : vector<64x128xf32>
    %c0_15 = arith.constant 0 : index
    %c0_16 = arith.constant 0 : index
    %34 = vector.load %arg9[%c0_15, %c0_16] : memref<1x128xf32, #tpu.memory_space<vmem>>, vector<1x128xf32>
    %35 = vector.broadcast %34 : vector<1x128xf32> to vector<64x128xf32>
    %36 = arith.addf %33, %35 : vector<64x128xf32>
    %37 = vector.shape_cast %36 : vector<64x128xf32> to vector<8x8x128xf32>
    %c0_17 = arith.constant 0 : index
    %c0_18 = arith.constant 0 : index
    %c0_19 = arith.constant 0 : index
    %38 = vector.load %arg15[%c0_17, %c0_18, %c0_19] : memref<8x8x128xf32, #tpu.memory_space<vmem>>, vector<8x8x128xf32>
    tpu.vector_store %arg15[%c0_17, %c0_18, %c0_19], %37 {strides = array<i32>} : memref<8x8x128xf32, #tpu.memory_space<vmem>>, vector<8x8x128xf32>,
    %c0_20 = arith.constant 0 : index
    %c0_21 = arith.constant 0 : index
    %39 = vector.load %arg4[%c0_20, %c0_21] : memref<32x128xbf16, #tpu.memory_space<vmem>>, vector<32x128xbf16>
    %c0_22 = arith.constant 0 : index
    %c0_23 = arith.constant 0 : index
    %40 = vector.load %arg5[%c0_22, %c0_23] : memref<1x128xf32, #tpu.memory_space<vmem>>, vector<1x128xf32>
    %c0_24 = arith.constant 0 : index
    %c0_25 = arith.constant 0 : index
    %41 = vector.load %arg6[%c0_24, %c0_25] : memref<1x128xf32, #tpu.memory_space<vmem>>, vector<1x128xf32>
    %c0_26 = arith.constant 0 : index
    %c0_27 = arith.constant 0 : index
    %42 = vector.load %arg10[%c0_26, %c0_27] : memref<1x32xf32, #tpu.memory_space<vmem>>, vector<1x32xf32>
    %c0_28 = arith.constant 0 : index
    %c0_29 = arith.constant 0 : index
    %43 = vector.load %arg11[%c0_28, %c0_29] : memref<1x32xf32, #tpu.memory_space<vmem>>, vector<1x32xf32>
    %c0_30 = arith.constant 0 : index
    %c0_31 = arith.constant 0 : index
    %44 = vector.load %arg16[%c0_30, %c0_31] : memref<8x32xf32, #tpu.memory_space<vmem>>, vector<8x32xf32>
    %c0_32 = arith.constant 0 : index
    %c0_33 = arith.constant 0 : index
    %45 = vector.load %arg17[%c0_32, %c0_33] : memref<8x32xf32, #tpu.memory_space<vmem>>, vector<8x32xf32>
    %c0_i32_34 = arith.constant 0 : i32
    %46 = arith.index_cast %c0_i32_34 : i32 to index
    %c0_35 = arith.constant 0 : index
    %c0_36 = arith.constant 0 : index
    %47 = vector.load %arg15[%46, %c0_35, %c0_36] : memref<8x8x128xf32, #tpu.memory_space<vmem>>, vector<1x8x128xf32>
    %48 = vector.shape_cast %47 : vector<1x8x128xf32> to vector<8x128xf32>
    %49 = arith.truncf %44 : vector<8x32xf32> to vector<8x32xbf16>
    %cst_37 = arith.constant dense<0.000000e+00> : vector<8x128xf32>
    %50 = tpu.matmul %49, %39, %cst_37 {dimension_numbers = #tpu.dot_dimension_numbers<[1], [0], [0], [1], [0, 0, 1, 1], [], []>} : vector<8x32xbf16>, vector<32x128xbf16>, vector<8x128xf32> -> vector<8x128xf32>
    %cst_38 = arith.constant dense<0.000000e+00> : vector<8xf32>
    %51 = vector.multi_reduction <add>, %50, %cst_38 [1] : vector<8x128xf32> to vector<8xf32>
    %52 = vector.shape_cast %51 : vector<8xf32> to vector<8x1xf32>
    %cst_39 = arith.constant 1.280000e+02 : f32
    %53 = vector.broadcast %cst_39 : f32 to vector<8x1xf32>
    %54 = arith.divf %52, %53 : vector<8x1xf32>
    %55 = arith.mulf %50, %50 : vector<8x128xf32>
    %cst_40 = arith.constant dense<0.000000e+00> : vector<8xf32>
    %56 = vector.multi_reduction <add>, %55, %cst_40 [1] : vector<8x128xf32> to vector<8xf32>
    %57 = vector.shape_cast %56 : vector<8xf32> to vector<8x1xf32>
    %cst_41 = arith.constant 1.280000e+02 : f32
    %58 = vector.broadcast %cst_41 : f32 to vector<8x1xf32>
    %59 = arith.divf %57, %58 : vector<8x1xf32>
    %60 = arith.mulf %54, %54 : vector<8x1xf32>
    %61 = arith.subf %59, %60 : vector<8x1xf32>
    %cst_42 = arith.constant 0.000000e+00 : f32
    %62 = vector.broadcast %cst_42 : f32 to vector<8x1xf32>
    %63 = arith.maximumf %61, %62 : vector<8x1xf32>
    %64 = vector.broadcast %54 : vector<8x1xf32> to vector<8x128xf32>
    %65 = arith.subf %50, %64 : vector<8x128xf32>
    %cst_43 = arith.constant 9.99999974E-6 : f32
    %66 = vector.broadcast %cst_43 : f32 to vector<8x1xf32>
    %67 = arith.addf %63, %66 : vector<8x1xf32>
    %68 = math.rsqrt %67 : vector<8x1xf32>
    %69 = vector.broadcast %68 : vector<8x1xf32> to vector<8x128xf32>
    %70 = arith.mulf %65, %69 : vector<8x128xf32>
    %71 = vector.broadcast %40 : vector<1x128xf32> to vector<8x128xf32>
    %72 = arith.mulf %70, %71 : vector<8x128xf32>
    %73 = vector.broadcast %41 : vector<1x128xf32> to vector<8x128xf32>
    %74 = arith.addf %72, %73 : vector<8x128xf32>
    %75 = arith.addf %74, %48 : vector<8x128xf32>
    %76 = vector.extract_strided_slice %75 {offsets = [0, 0], sizes = [8, 32], strides = [1, 1]} : vector<8x128xf32> to vector<8x32xf32>
    %77 = vector.extract_strided_slice %75 {offsets = [0, 32], sizes = [8, 32], strides = [1, 1]} : vector<8x128xf32> to vector<8x32xf32>
    %78 = vector.extract_strided_slice %75 {offsets = [0, 64], sizes = [8, 32], strides = [1, 1]} : vector<8x128xf32> to vector<8x32xf32>
    %79 = vector.extract_strided_slice %75 {offsets = [0, 96], sizes = [8, 32], strides = [1, 1]} : vector<8x128xf32> to vector<8x32xf32>
    %cst_44 = arith.constant 5.000000e-01 : f32
    %80 = vector.broadcast %cst_44 : f32 to vector<8x32xf32>
    %81 = arith.mulf %80, %77 : vector<8x32xf32>
    %82 = math.tanh %81 : vector<8x32xf32>
    %cst_45 = arith.constant 1.000000e+00 : f32
    %83 = vector.broadcast %cst_45 : f32 to vector<8x32xf32>
    %84 = arith.addf %82, %83 : vector<8x32xf32>
    %cst_46 = arith.constant 5.000000e-01 : f32
    %85 = vector.broadcast %cst_46 : f32 to vector<8x32xf32>
    %86 = arith.mulf %85, %84 : vector<8x32xf32>
    %87 = arith.mulf %86, %45 : vector<8x32xf32>
    %cst_47 = arith.constant 5.000000e-01 : f32
    %88 = vector.broadcast %cst_47 : f32 to vector<8x32xf32>
    %89 = arith.mulf %88, %76 : vector<8x32xf32>
    %90 = math.tanh %89 : vector<8x32xf32>
    %cst_48 = arith.constant 1.000000e+00 : f32
    %91 = vector.broadcast %cst_48 : f32 to vector<8x32xf32>
    %92 = arith.addf %90, %91 : vector<8x32xf32>
    %cst_49 = arith.constant 5.000000e-01 : f32
    %93 = vector.broadcast %cst_49 : f32 to vector<8x32xf32>
    %94 = arith.mulf %93, %92 : vector<8x32xf32>
    %95 = math.tanh %78 : vector<8x32xf32>
    %96 = arith.mulf %94, %95 : vector<8x32xf32>
    %97 = arith.addf %87, %96 : vector<8x32xf32>
    %cst_50 = arith.constant dense<0.000000e+00> : vector<8xf32>
    %98 = vector.multi_reduction <add>, %97, %cst_50 [1] : vector<8x32xf32> to vector<8xf32>
    %99 = vector.shape_cast %98 : vector<8xf32> to vector<8x1xf32>
    %cst_51 = arith.constant 3.200000e+01 : f32
    %100 = vector.broadcast %cst_51 : f32 to vector<8x1xf32>
    %101 = arith.divf %99, %100 : vector<8x1xf32>
    %102 = arith.mulf %97, %97 : vector<8x32xf32>
    %cst_52 = arith.constant dense<0.000000e+00> : vector<8xf32>
    %103 = vector.multi_reduction <add>, %102, %cst_52 [1] : vector<8x32xf32> to vector<8xf32>
    %104 = vector.shape_cast %103 : vector<8xf32> to vector<8x1xf32>
    %cst_53 = arith.constant 3.200000e+01 : f32
    %105 = vector.broadcast %cst_53 : f32 to vector<8x1xf32>
    %106 = arith.divf %104, %105 : vector<8x1xf32>
    %107 = arith.mulf %101, %101 : vector<8x1xf32>
    %108 = arith.subf %106, %107 : vector<8x1xf32>
    %cst_54 = arith.constant 0.000000e+00 : f32
    %109 = vector.broadcast %cst_54 : f32 to vector<8x1xf32>
    %110 = arith.maximumf %108, %109 : vector<8x1xf32>
    %111 = vector.broadcast %101 : vector<8x1xf32> to vector<8x32xf32>
    %112 = arith.subf %97, %111 : vector<8x32xf32>
    %cst_55 = arith.constant 9.99999974E-6 : f32
    %113 = vector.broadcast %cst_55 : f32 to vector<8x1xf32>
    %114 = arith.addf %110, %113 : vector<8x1xf32>
    %115 = math.rsqrt %114 : vector<8x1xf32>
    %116 = vector.broadcast %115 : vector<8x1xf32> to vector<8x32xf32>
    %117 = arith.mulf %112, %116 : vector<8x32xf32>
    %118 = vector.broadcast %42 : vector<1x32xf32> to vector<8x32xf32>
    %119 = arith.mulf %117, %118 : vector<8x32xf32>
    %120 = vector.broadcast %43 : vector<1x32xf32> to vector<8x32xf32>
    %121 = arith.addf %119, %120 : vector<8x32xf32>
    %cst_56 = arith.constant 5.000000e-01 : f32
    %122 = vector.broadcast %cst_56 : f32 to vector<8x32xf32>
    %123 = arith.mulf %122, %79 : vector<8x32xf32>
    %124 = math.tanh %123 : vector<8x32xf32>
    %cst_57 = arith.constant 1.000000e+00 : f32
    %125 = vector.broadcast %cst_57 : f32 to vector<8x32xf32>
    %126 = arith.addf %124, %125 : vector<8x32xf32>
    %cst_58 = arith.constant 5.000000e-01 : f32
    %127 = vector.broadcast %cst_58 : f32 to vector<8x32xf32>
    %128 = arith.mulf %127, %126 : vector<8x32xf32>
    %129 = math.tanh %121 : vector<8x32xf32>
    %130 = arith.mulf %128, %129 : vector<8x32xf32>
    %131 = arith.index_cast %c0_i32_34 : i32 to index
    %c0_59 = arith.constant 0 : index
    %c0_60 = arith.constant 0 : index
    %132 = vector.load %arg12[%131, %c0_59, %c0_60] : memref<8x8x32xf32, #tpu.memory_space<vmem>>, vector<1x8x32xf32>
    %133 = vector.shape_cast %132 : vector<1x8x32xf32> to vector<8x32xf32>
    %134 = vector.shape_cast %130 : vector<8x32xf32> to vector<1x8x32xf32>
    tpu.vector_store %arg12[%131, %c0_59, %c0_60], %134 {strides = array<i32>} : memref<8x8x32xf32, #tpu.memory_space<vmem>>, vector<1x8x32xf32>,
    %c1_i32 = arith.constant 1 : i32
    %135 = arith.index_cast %c1_i32 : i32 to index
    %c0_61 = arith.constant 0 : index
    %c0_62 = arith.constant 0 : index
    %136 = vector.load %arg15[%135, %c0_61, %c0_62] : memref<8x8x128xf32, #tpu.memory_space<vmem>>, vector<1x8x128xf32>
    %137 = vector.shape_cast %136 : vector<1x8x128xf32> to vector<8x128xf32>
    %138 = arith.truncf %130 : vector<8x32xf32> to vector<8x32xbf16>
    %cst_63 = arith.constant dense<0.000000e+00> : vector<8x128xf32>
    %139 = tpu.matmul %138, %39, %cst_63 {dimension_numbers = #tpu.dot_dimension_numbers<[1], [0], [0], [1], [0, 0, 1, 1], [], []>} : vector<8x32xbf16>, vector<32x128xbf16>, vector<8x128xf32> -> vector<8x128xf32>
    %cst_64 = arith.constant dense<0.000000e+00> : vector<8xf32>
    %140 = vector.multi_reduction <add>, %139, %cst_64 [1] : vector<8x128xf32> to vector<8xf32>
    %141 = vector.shape_cast %140 : vector<8xf32> to vector<8x1xf32>
    %cst_65 = arith.constant 1.280000e+02 : f32
    %142 = vector.broadcast %cst_65 : f32 to vector<8x1xf32>
    %143 = arith.divf %141, %142 : vector<8x1xf32>
    %144 = arith.mulf %139, %139 : vector<8x128xf32>
    %cst_66 = arith.constant dense<0.000000e+00> : vector<8xf32>
    %145 = vector.multi_reduction <add>, %144, %cst_66 [1] : vector<8x128xf32> to vector<8xf32>
    %146 = vector.shape_cast %145 : vector<8xf32> to vector<8x1xf32>
    %cst_67 = arith.constant 1.280000e+02 : f32
    %147 = vector.broadcast %cst_67 : f32 to vector<8x1xf32>
    %148 = arith.divf %146, %147 : vector<8x1xf32>
    %149 = arith.mulf %143, %143 : vector<8x1xf32>
    %150 = arith.subf %148, %149 : vector<8x1xf32>
    %cst_68 = arith.constant 0.000000e+00 : f32
    %151 = vector.broadcast %cst_68 : f32 to vector<8x1xf32>
    %152 = arith.maximumf %150, %151 : vector<8x1xf32>
    %153 = vector.broadcast %143 : vector<8x1xf32> to vector<8x128xf32>
    %154 = arith.subf %139, %153 : vector<8x128xf32>
    %cst_69 = arith.constant 9.99999974E-6 : f32
    %155 = vector.broadcast %cst_69 : f32 to vector<8x1xf32>
    %156 = arith.addf %152, %155 : vector<8x1xf32>
    %157 = math.rsqrt %156 : vector<8x1xf32>
    %158 = vector.broadcast %157 : vector<8x1xf32> to vector<8x128xf32>
    %159 = arith.mulf %154, %158 : vector<8x128xf32>
    %160 = vector.broadcast %40 : vector<1x128xf32> to vector<8x128xf32>
    %161 = arith.mulf %159, %160 : vector<8x128xf32>
    %162 = vector.broadcast %41 : vector<1x128xf32> to vector<8x128xf32>
    %163 = arith.addf %161, %162 : vector<8x128xf32>
    %164 = arith.addf %163, %137 : vector<8x128xf32>
    %165 = vector.extract_strided_slice %164 {offsets = [0, 0], sizes = [8, 32], strides = [1, 1]} : vector<8x128xf32> to vector<8x32xf32>
    %166 = vector.extract_strided_slice %164 {offsets = [0, 32], sizes = [8, 32], strides = [1, 1]} : vector<8x128xf32> to vector<8x32xf32>
    %167 = vector.extract_strided_slice %164 {offsets = [0, 64], sizes = [8, 32], strides = [1, 1]} : vector<8x128xf32> to vector<8x32xf32>
    %168 = vector.extract_strided_slice %164 {offsets = [0, 96], sizes = [8, 32], strides = [1, 1]} : vector<8x128xf32> to vector<8x32xf32>
    %cst_70 = arith.constant 5.000000e-01 : f32
    %169 = vector.broadcast %cst_70 : f32 to vector<8x32xf32>
    %170 = arith.mulf %169, %166 : vector<8x32xf32>
    %171 = math.tanh %170 : vector<8x32xf32>
    %cst_71 = arith.constant 1.000000e+00 : f32
    %172 = vector.broadcast %cst_71 : f32 to vector<8x32xf32>
    %173 = arith.addf %171, %172 : vector<8x32xf32>
    %cst_72 = arith.constant 5.000000e-01 : f32
    %174 = vector.broadcast %cst_72 : f32 to vector<8x32xf32>
    %175 = arith.mulf %174, %173 : vector<8x32xf32>
    %176 = arith.mulf %175, %121 : vector<8x32xf32>
    %cst_73 = arith.constant 5.000000e-01 : f32
    %177 = vector.broadcast %cst_73 : f32 to vector<8x32xf32>
    %178 = arith.mulf %177, %165 : vector<8x32xf32>
    %179 = math.tanh %178 : vector<8x32xf32>
    %cst_74 = arith.constant 1.000000e+00 : f32
    %180 = vector.broadcast %cst_74 : f32 to vector<8x32xf32>
    %181 = arith.addf %179, %180 : vector<8x32xf32>
    %cst_75 = arith.constant 5.000000e-01 : f32
    %182 = vector.broadcast %cst_75 : f32 to vector<8x32xf32>
    %183 = arith.mulf %182, %181 : vector<8x32xf32>
    %184 = math.tanh %167 : vector<8x32xf32>
    %185 = arith.mulf %183, %184 : vector<8x32xf32>
    %186 = arith.addf %176, %185 : vector<8x32xf32>
    %cst_76 = arith.constant dense<0.000000e+00> : vector<8xf32>
    %187 = vector.multi_reduction <add>, %186, %cst_76 [1] : vector<8x32xf32> to vector<8xf32>
    %188 = vector.shape_cast %187 : vector<8xf32> to vector<8x1xf32>
    %cst_77 = arith.constant 3.200000e+01 : f32
    %189 = vector.broadcast %cst_77 : f32 to vector<8x1xf32>
    %190 = arith.divf %188, %189 : vector<8x1xf32>
    %191 = arith.mulf %186, %186 : vector<8x32xf32>
    %cst_78 = arith.constant dense<0.000000e+00> : vector<8xf32>
    %192 = vector.multi_reduction <add>, %191, %cst_78 [1] : vector<8x32xf32> to vector<8xf32>
    %193 = vector.shape_cast %192 : vector<8xf32> to vector<8x1xf32>
    %cst_79 = arith.constant 3.200000e+01 : f32
    %194 = vector.broadcast %cst_79 : f32 to vector<8x1xf32>
    %195 = arith.divf %193, %194 : vector<8x1xf32>
    %196 = arith.mulf %190, %190 : vector<8x1xf32>
    %197 = arith.subf %195, %196 : vector<8x1xf32>
    %cst_80 = arith.constant 0.000000e+00 : f32
    %198 = vector.broadcast %cst_80 : f32 to vector<8x1xf32>
    %199 = arith.maximumf %197, %198 : vector<8x1xf32>
    %200 = vector.broadcast %190 : vector<8x1xf32> to vector<8x32xf32>
    %201 = arith.subf %186, %200 : vector<8x32xf32>
    %cst_81 = arith.constant 9.99999974E-6 : f32
    %202 = vector.broadcast %cst_81 : f32 to vector<8x1xf32>
    %203 = arith.addf %199, %202 : vector<8x1xf32>
    %204 = math.rsqrt %203 : vector<8x1xf32>
    %205 = vector.broadcast %204 : vector<8x1xf32> to vector<8x32xf32>
    %206 = arith.mulf %201, %205 : vector<8x32xf32>
    %207 = vector.broadcast %42 : vector<1x32xf32> to vector<8x32xf32>
    %208 = arith.mulf %206, %207 : vector<8x32xf32>
    %209 = vector.broadcast %43 : vector<1x32xf32> to vector<8x32xf32>
    %210 = arith.addf %208, %209 : vector<8x32xf32>
    %cst_82 = arith.constant 5.000000e-01 : f32
    %211 = vector.broadcast %cst_82 : f32 to vector<8x32xf32>
    %212 = arith.mulf %211, %168 : vector<8x32xf32>
    %213 = math.tanh %212 : vector<8x32xf32>
    %cst_83 = arith.constant 1.000000e+00 : f32
    %214 = vector.broadcast %cst_83 : f32 to vector<8x32xf32>
    %215 = arith.addf %213, %214 : vector<8x32xf32>
    %cst_84 = arith.constant 5.000000e-01 : f32
    %216 = vector.broadcast %cst_84 : f32 to vector<8x32xf32>
    %217 = arith.mulf %216, %215 : vector<8x32xf32>
    %218 = math.tanh %210 : vector<8x32xf32>
    %219 = arith.mulf %217, %218 : vector<8x32xf32>
    %220 = arith.index_cast %c1_i32 : i32 to index
    %c0_85 = arith.constant 0 : index
    %c0_86 = arith.constant 0 : index
    %221 = vector.load %arg12[%220, %c0_85, %c0_86] : memref<8x8x32xf32, #tpu.memory_space<vmem>>, vector<1x8x32xf32>
    %222 = vector.shape_cast %221 : vector<1x8x32xf32> to vector<8x32xf32>
    %223 = vector.shape_cast %219 : vector<8x32xf32> to vector<1x8x32xf32>
    tpu.vector_store %arg12[%220, %c0_85, %c0_86], %223 {strides = array<i32>} : memref<8x8x32xf32, #tpu.memory_space<vmem>>, vector<1x8x32xf32>,
    %c2_i32 = arith.constant 2 : i32
    %224 = arith.index_cast %c2_i32 : i32 to index
    %c0_87 = arith.constant 0 : index
    %c0_88 = arith.constant 0 : index
    %225 = vector.load %arg15[%224, %c0_87, %c0_88] : memref<8x8x128xf32, #tpu.memory_space<vmem>>, vector<1x8x128xf32>
    %226 = vector.shape_cast %225 : vector<1x8x128xf32> to vector<8x128xf32>
    %227 = arith.truncf %219 : vector<8x32xf32> to vector<8x32xbf16>
    %cst_89 = arith.constant dense<0.000000e+00> : vector<8x128xf32>
    %228 = tpu.matmul %227, %39, %cst_89 {dimension_numbers = #tpu.dot_dimension_numbers<[1], [0], [0], [1], [0, 0, 1, 1], [], []>} : vector<8x32xbf16>, vector<32x128xbf16>, vector<8x128xf32> -> vector<8x128xf32>
    %cst_90 = arith.constant dense<0.000000e+00> : vector<8xf32>
    %229 = vector.multi_reduction <add>, %228, %cst_90 [1] : vector<8x128xf32> to vector<8xf32>
    %230 = vector.shape_cast %229 : vector<8xf32> to vector<8x1xf32>
    %cst_91 = arith.constant 1.280000e+02 : f32
    %231 = vector.broadcast %cst_91 : f32 to vector<8x1xf32>
    %232 = arith.divf %230, %231 : vector<8x1xf32>
    %233 = arith.mulf %228, %228 : vector<8x128xf32>
    %cst_92 = arith.constant dense<0.000000e+00> : vector<8xf32>
    %234 = vector.multi_reduction <add>, %233, %cst_92 [1] : vector<8x128xf32> to vector<8xf32>
    %235 = vector.shape_cast %234 : vector<8xf32> to vector<8x1xf32>
    %cst_93 = arith.constant 1.280000e+02 : f32
    %236 = vector.broadcast %cst_93 : f32 to vector<8x1xf32>
    %237 = arith.divf %235, %236 : vector<8x1xf32>
    %238 = arith.mulf %232, %232 : vector<8x1xf32>
    %239 = arith.subf %237, %238 : vector<8x1xf32>
    %cst_94 = arith.constant 0.000000e+00 : f32
    %240 = vector.broadcast %cst_94 : f32 to vector<8x1xf32>
    %241 = arith.maximumf %239, %240 : vector<8x1xf32>
    %242 = vector.broadcast %232 : vector<8x1xf32> to vector<8x128xf32>
    %243 = arith.subf %228, %242 : vector<8x128xf32>
    %cst_95 = arith.constant 9.99999974E-6 : f32
    %244 = vector.broadcast %cst_95 : f32 to vector<8x1xf32>
    %245 = arith.addf %241, %244 : vector<8x1xf32>
    %246 = math.rsqrt %245 : vector<8x1xf32>
    %247 = vector.broadcast %246 : vector<8x1xf32> to vector<8x128xf32>
    %248 = arith.mulf %243, %247 : vector<8x128xf32>
    %249 = vector.broadcast %40 : vector<1x128xf32> to vector<8x128xf32>
    %250 = arith.mulf %248, %249 : vector<8x128xf32>
    %251 = vector.broadcast %41 : vector<1x128xf32> to vector<8x128xf32>
    %252 = arith.addf %250, %251 : vector<8x128xf32>
    %253 = arith.addf %252, %226 : vector<8x128xf32>
    %254 = vector.extract_strided_slice %253 {offsets = [0, 0], sizes = [8, 32], strides = [1, 1]} : vector<8x128xf32> to vector<8x32xf32>
    %255 = vector.extract_strided_slice %253 {offsets = [0, 32], sizes = [8, 32], strides = [1, 1]} : vector<8x128xf32> to vector<8x32xf32>
    %256 = vector.extract_strided_slice %253 {offsets = [0, 64], sizes = [8, 32], strides = [1, 1]} : vector<8x128xf32> to vector<8x32xf32>
    %257 = vector.extract_strided_slice %253 {offsets = [0, 96], sizes = [8, 32], strides = [1, 1]} : vector<8x128xf32> to vector<8x32xf32>
    %cst_96 = arith.constant 5.000000e-01 : f32
    %258 = vector.broadcast %cst_96 : f32 to vector<8x32xf32>
    %259 = arith.mulf %258, %255 : vector<8x32xf32>
    %260 = math.tanh %259 : vector<8x32xf32>
    %cst_97 = arith.constant 1.000000e+00 : f32
    %261 = vector.broadcast %cst_97 : f32 to vector<8x32xf32>
    %262 = arith.addf %260, %261 : vector<8x32xf32>
    %cst_98 = arith.constant 5.000000e-01 : f32
    %263 = vector.broadcast %cst_98 : f32 to vector<8x32xf32>
    %264 = arith.mulf %263, %262 : vector<8x32xf32>
    %265 = arith.mulf %264, %210 : vector<8x32xf32>
    %cst_99 = arith.constant 5.000000e-01 : f32
    %266 = vector.broadcast %cst_99 : f32 to vector<8x32xf32>
    %267 = arith.mulf %266, %254 : vector<8x32xf32>
    %268 = math.tanh %267 : vector<8x32xf32>
    %cst_100 = arith.constant 1.000000e+00 : f32
    %269 = vector.broadcast %cst_100 : f32 to vector<8x32xf32>
    %270 = arith.addf %268, %269 : vector<8x32xf32>
    %cst_101 = arith.constant 5.000000e-01 : f32
    %271 = vector.broadcast %cst_101 : f32 to vector<8x32xf32>
    %272 = arith.mulf %271, %270 : vector<8x32xf32>
    %273 = math.tanh %256 : vector<8x32xf32>
    %274 = arith.mulf %272, %273 : vector<8x32xf32>
    %275 = arith.addf %265, %274 : vector<8x32xf32>
    %cst_102 = arith.constant dense<0.000000e+00> : vector<8xf32>
    %276 = vector.multi_reduction <add>, %275, %cst_102 [1] : vector<8x32xf32> to vector<8xf32>
    %277 = vector.shape_cast %276 : vector<8xf32> to vector<8x1xf32>
    %cst_103 = arith.constant 3.200000e+01 : f32
    %278 = vector.broadcast %cst_103 : f32 to vector<8x1xf32>
    %279 = arith.divf %277, %278 : vector<8x1xf32>
    %280 = arith.mulf %275, %275 : vector<8x32xf32>
    %cst_104 = arith.constant dense<0.000000e+00> : vector<8xf32>
    %281 = vector.multi_reduction <add>, %280, %cst_104 [1] : vector<8x32xf32> to vector<8xf32>
    %282 = vector.shape_cast %281 : vector<8xf32> to vector<8x1xf32>
    %cst_105 = arith.constant 3.200000e+01 : f32
    %283 = vector.broadcast %cst_105 : f32 to vector<8x1xf32>
    %284 = arith.divf %282, %283 : vector<8x1xf32>
    %285 = arith.mulf %279, %279 : vector<8x1xf32>
    %286 = arith.subf %284, %285 : vector<8x1xf32>
    %cst_106 = arith.constant 0.000000e+00 : f32
    %287 = vector.broadcast %cst_106 : f32 to vector<8x1xf32>
    %288 = arith.maximumf %286, %287 : vector<8x1xf32>
    %289 = vector.broadcast %279 : vector<8x1xf32> to vector<8x32xf32>
    %290 = arith.subf %275, %289 : vector<8x32xf32>
    %cst_107 = arith.constant 9.99999974E-6 : f32
    %291 = vector.broadcast %cst_107 : f32 to vector<8x1xf32>
    %292 = arith.addf %288, %291 : vector<8x1xf32>
    %293 = math.rsqrt %292 : vector<8x1xf32>
    %294 = vector.broadcast %293 : vector<8x1xf32> to vector<8x32xf32>
    %295 = arith.mulf %290, %294 : vector<8x32xf32>
    %296 = vector.broadcast %42 : vector<1x32xf32> to vector<8x32xf32>
    %297 = arith.mulf %295, %296 : vector<8x32xf32>
    %298 = vector.broadcast %43 : vector<1x32xf32> to vector<8x32xf32>
    %299 = arith.addf %297, %298 : vector<8x32xf32>
    %cst_108 = arith.constant 5.000000e-01 : f32
    %300 = vector.broadcast %cst_108 : f32 to vector<8x32xf32>
    %301 = arith.mulf %300, %257 : vector<8x32xf32>
    %302 = math.tanh %301 : vector<8x32xf32>
    %cst_109 = arith.constant 1.000000e+00 : f32
    %303 = vector.broadcast %cst_109 : f32 to vector<8x32xf32>
    %304 = arith.addf %302, %303 : vector<8x32xf32>
    %cst_110 = arith.constant 5.000000e-01 : f32
    %305 = vector.broadcast %cst_110 : f32 to vector<8x32xf32>
    %306 = arith.mulf %305, %304 : vector<8x32xf32>
    %307 = math.tanh %299 : vector<8x32xf32>
    %308 = arith.mulf %306, %307 : vector<8x32xf32>
    %309 = arith.index_cast %c2_i32 : i32 to index
    %c0_111 = arith.constant 0 : index
    %c0_112 = arith.constant 0 : index
    %310 = vector.load %arg12[%309, %c0_111, %c0_112] : memref<8x8x32xf32, #tpu.memory_space<vmem>>, vector<1x8x32xf32>
    %311 = vector.shape_cast %310 : vector<1x8x32xf32> to vector<8x32xf32>
    %312 = vector.shape_cast %308 : vector<8x32xf32> to vector<1x8x32xf32>
    tpu.vector_store %arg12[%309, %c0_111, %c0_112], %312 {strides = array<i32>} : memref<8x8x32xf32, #tpu.memory_space<vmem>>, vector<1x8x32xf32>,
    %c3_i32 = arith.constant 3 : i32
    %313 = arith.index_cast %c3_i32 : i32 to index
    %c0_113 = arith.constant 0 : index
    %c0_114 = arith.constant 0 : index
    %314 = vector.load %arg15[%313, %c0_113, %c0_114] : memref<8x8x128xf32, #tpu.memory_space<vmem>>, vector<1x8x128xf32>
    %315 = vector.shape_cast %314 : vector<1x8x128xf32> to vector<8x128xf32>
    %316 = arith.truncf %308 : vector<8x32xf32> to vector<8x32xbf16>
    %cst_115 = arith.constant dense<0.000000e+00> : vector<8x128xf32>
    %317 = tpu.matmul %316, %39, %cst_115 {dimension_numbers = #tpu.dot_dimension_numbers<[1], [0], [0], [1], [0, 0, 1, 1], [], []>} : vector<8x32xbf16>, vector<32x128xbf16>, vector<8x128xf32> -> vector<8x128xf32>
    %cst_116 = arith.constant dense<0.000000e+00> : vector<8xf32>
    %318 = vector.multi_reduction <add>, %317, %cst_116 [1] : vector<8x128xf32> to vector<8xf32>
    %319 = vector.shape_cast %318 : vector<8xf32> to vector<8x1xf32>
    %cst_117 = arith.constant 1.280000e+02 : f32
    %320 = vector.broadcast %cst_117 : f32 to vector<8x1xf32>
    %321 = arith.divf %319, %320 : vector<8x1xf32>
    %322 = arith.mulf %317, %317 : vector<8x128xf32>
    %cst_118 = arith.constant dense<0.000000e+00> : vector<8xf32>
    %323 = vector.multi_reduction <add>, %322, %cst_118 [1] : vector<8x128xf32> to vector<8xf32>
    %324 = vector.shape_cast %323 : vector<8xf32> to vector<8x1xf32>
    %cst_119 = arith.constant 1.280000e+02 : f32
    %325 = vector.broadcast %cst_119 : f32 to vector<8x1xf32>
    %326 = arith.divf %324, %325 : vector<8x1xf32>
    %327 = arith.mulf %321, %321 : vector<8x1xf32>
    %328 = arith.subf %326, %327 : vector<8x1xf32>
    %cst_120 = arith.constant 0.000000e+00 : f32
    %329 = vector.broadcast %cst_120 : f32 to vector<8x1xf32>
    %330 = arith.maximumf %328, %329 : vector<8x1xf32>
    %331 = vector.broadcast %321 : vector<8x1xf32> to vector<8x128xf32>
    %332 = arith.subf %317, %331 : vector<8x128xf32>
    %cst_121 = arith.constant 9.99999974E-6 : f32
    %333 = vector.broadcast %cst_121 : f32 to vector<8x1xf32>
    %334 = arith.addf %330, %333 : vector<8x1xf32>
    %335 = math.rsqrt %334 : vector<8x1xf32>
    %336 = vector.broadcast %335 : vector<8x1xf32> to vector<8x128xf32>
    %337 = arith.mulf %332, %336 : vector<8x128xf32>
    %338 = vector.broadcast %40 : vector<1x128xf32> to vector<8x128xf32>
    %339 = arith.mulf %337, %338 : vector<8x128xf32>
    %340 = vector.broadcast %41 : vector<1x128xf32> to vector<8x128xf32>
    %341 = arith.addf %339, %340 : vector<8x128xf32>
    %342 = arith.addf %341, %315 : vector<8x128xf32>
    %343 = vector.extract_strided_slice %342 {offsets = [0, 0], sizes = [8, 32], strides = [1, 1]} : vector<8x128xf32> to vector<8x32xf32>
    %344 = vector.extract_strided_slice %342 {offsets = [0, 32], sizes = [8, 32], strides = [1, 1]} : vector<8x128xf32> to vector<8x32xf32>
    %345 = vector.extract_strided_slice %342 {offsets = [0, 64], sizes = [8, 32], strides = [1, 1]} : vector<8x128xf32> to vector<8x32xf32>
    %346 = vector.extract_strided_slice %342 {offsets = [0, 96], sizes = [8, 32], strides = [1, 1]} : vector<8x128xf32> to vector<8x32xf32>
    %cst_122 = arith.constant 5.000000e-01 : f32
    %347 = vector.broadcast %cst_122 : f32 to vector<8x32xf32>
    %348 = arith.mulf %347, %344 : vector<8x32xf32>
    %349 = math.tanh %348 : vector<8x32xf32>
    %cst_123 = arith.constant 1.000000e+00 : f32
    %350 = vector.broadcast %cst_123 : f32 to vector<8x32xf32>
    %351 = arith.addf %349, %350 : vector<8x32xf32>
    %cst_124 = arith.constant 5.000000e-01 : f32
    %352 = vector.broadcast %cst_124 : f32 to vector<8x32xf32>
    %353 = arith.mulf %352, %351 : vector<8x32xf32>
    %354 = arith.mulf %353, %299 : vector<8x32xf32>
    %cst_125 = arith.constant 5.000000e-01 : f32
    %355 = vector.broadcast %cst_125 : f32 to vector<8x32xf32>
    %356 = arith.mulf %355, %343 : vector<8x32xf32>
    %357 = math.tanh %356 : vector<8x32xf32>
    %cst_126 = arith.constant 1.000000e+00 : f32
    %358 = vector.broadcast %cst_126 : f32 to vector<8x32xf32>
    %359 = arith.addf %357, %358 : vector<8x32xf32>
    %cst_127 = arith.constant 5.000000e-01 : f32
    %360 = vector.broadcast %cst_127 : f32 to vector<8x32xf32>
    %361 = arith.mulf %360, %359 : vector<8x32xf32>
    %362 = math.tanh %345 : vector<8x32xf32>
    %363 = arith.mulf %361, %362 : vector<8x32xf32>
    %364 = arith.addf %354, %363 : vector<8x32xf32>
    %cst_128 = arith.constant dense<0.000000e+00> : vector<8xf32>
    %365 = vector.multi_reduction <add>, %364, %cst_128 [1] : vector<8x32xf32> to vector<8xf32>
    %366 = vector.shape_cast %365 : vector<8xf32> to vector<8x1xf32>
    %cst_129 = arith.constant 3.200000e+01 : f32
    %367 = vector.broadcast %cst_129 : f32 to vector<8x1xf32>
    %368 = arith.divf %366, %367 : vector<8x1xf32>
    %369 = arith.mulf %364, %364 : vector<8x32xf32>
    %cst_130 = arith.constant dense<0.000000e+00> : vector<8xf32>
    %370 = vector.multi_reduction <add>, %369, %cst_130 [1] : vector<8x32xf32> to vector<8xf32>
    %371 = vector.shape_cast %370 : vector<8xf32> to vector<8x1xf32>
    %cst_131 = arith.constant 3.200000e+01 : f32
    %372 = vector.broadcast %cst_131 : f32 to vector<8x1xf32>
    %373 = arith.divf %371, %372 : vector<8x1xf32>
    %374 = arith.mulf %368, %368 : vector<8x1xf32>
    %375 = arith.subf %373, %374 : vector<8x1xf32>
    %cst_132 = arith.constant 0.000000e+00 : f32
    %376 = vector.broadcast %cst_132 : f32 to vector<8x1xf32>
    %377 = arith.maximumf %375, %376 : vector<8x1xf32>
    %378 = vector.broadcast %368 : vector<8x1xf32> to vector<8x32xf32>
    %379 = arith.subf %364, %378 : vector<8x32xf32>
    %cst_133 = arith.constant 9.99999974E-6 : f32
    %380 = vector.broadcast %cst_133 : f32 to vector<8x1xf32>
    %381 = arith.addf %377, %380 : vector<8x1xf32>
    %382 = math.rsqrt %381 : vector<8x1xf32>
    %383 = vector.broadcast %382 : vector<8x1xf32> to vector<8x32xf32>
    %384 = arith.mulf %379, %383 : vector<8x32xf32>
    %385 = vector.broadcast %42 : vector<1x32xf32> to vector<8x32xf32>
    %386 = arith.mulf %384, %385 : vector<8x32xf32>
    %387 = vector.broadcast %43 : vector<1x32xf32> to vector<8x32xf32>
    %388 = arith.addf %386, %387 : vector<8x32xf32>
    %cst_134 = arith.constant 5.000000e-01 : f32
    %389 = vector.broadcast %cst_134 : f32 to vector<8x32xf32>
    %390 = arith.mulf %389, %346 : vector<8x32xf32>
    %391 = math.tanh %390 : vector<8x32xf32>
    %cst_135 = arith.constant 1.000000e+00 : f32
    %392 = vector.broadcast %cst_135 : f32 to vector<8x32xf32>
    %393 = arith.addf %391, %392 : vector<8x32xf32>
    %cst_136 = arith.constant 5.000000e-01 : f32
    %394 = vector.broadcast %cst_136 : f32 to vector<8x32xf32>
    %395 = arith.mulf %394, %393 : vector<8x32xf32>
    %396 = math.tanh %388 : vector<8x32xf32>
    %397 = arith.mulf %395, %396 : vector<8x32xf32>
    %398 = arith.index_cast %c3_i32 : i32 to index
    %c0_137 = arith.constant 0 : index
    %c0_138 = arith.constant 0 : index
    %399 = vector.load %arg12[%398, %c0_137, %c0_138] : memref<8x8x32xf32, #tpu.memory_space<vmem>>, vector<1x8x32xf32>
    %400 = vector.shape_cast %399 : vector<1x8x32xf32> to vector<8x32xf32>
    %401 = vector.shape_cast %397 : vector<8x32xf32> to vector<1x8x32xf32>
    tpu.vector_store %arg12[%398, %c0_137, %c0_138], %401 {strides = array<i32>} : memref<8x8x32xf32, #tpu.memory_space<vmem>>, vector<1x8x32xf32>,
    %c4_i32 = arith.constant 4 : i32
    %402 = arith.index_cast %c4_i32 : i32 to index
    %c0_139 = arith.constant 0 : index
    %c0_140 = arith.constant 0 : index
    %403 = vector.load %arg15[%402, %c0_139, %c0_140] : memref<8x8x128xf32, #tpu.memory_space<vmem>>, vector<1x8x128xf32>
    %404 = vector.shape_cast %403 : vector<1x8x128xf32> to vector<8x128xf32>
    %405 = arith.truncf %397 : vector<8x32xf32> to vector<8x32xbf16>
    %cst_141 = arith.constant dense<0.000000e+00> : vector<8x128xf32>
    %406 = tpu.matmul %405, %39, %cst_141 {dimension_numbers = #tpu.dot_dimension_numbers<[1], [0], [0], [1], [0, 0, 1, 1], [], []>} : vector<8x32xbf16>, vector<32x128xbf16>, vector<8x128xf32> -> vector<8x128xf32>
    %cst_142 = arith.constant dense<0.000000e+00> : vector<8xf32>
    %407 = vector.multi_reduction <add>, %406, %cst_142 [1] : vector<8x128xf32> to vector<8xf32>
    %408 = vector.shape_cast %407 : vector<8xf32> to vector<8x1xf32>
    %cst_143 = arith.constant 1.280000e+02 : f32
    %409 = vector.broadcast %cst_143 : f32 to vector<8x1xf32>
    %410 = arith.divf %408, %409 : vector<8x1xf32>
    %411 = arith.mulf %406, %406 : vector<8x128xf32>
    %cst_144 = arith.constant dense<0.000000e+00> : vector<8xf32>
    %412 = vector.multi_reduction <add>, %411, %cst_144 [1] : vector<8x128xf32> to vector<8xf32>
    %413 = vector.shape_cast %412 : vector<8xf32> to vector<8x1xf32>
    %cst_145 = arith.constant 1.280000e+02 : f32
    %414 = vector.broadcast %cst_145 : f32 to vector<8x1xf32>
    %415 = arith.divf %413, %414 : vector<8x1xf32>
    %416 = arith.mulf %410, %410 : vector<8x1xf32>
    %417 = arith.subf %415, %416 : vector<8x1xf32>
    %cst_146 = arith.constant 0.000000e+00 : f32
    %418 = vector.broadcast %cst_146 : f32 to vector<8x1xf32>
    %419 = arith.maximumf %417, %418 : vector<8x1xf32>
    %420 = vector.broadcast %410 : vector<8x1xf32> to vector<8x128xf32>
    %421 = arith.subf %406, %420 : vector<8x128xf32>
    %cst_147 = arith.constant 9.99999974E-6 : f32
    %422 = vector.broadcast %cst_147 : f32 to vector<8x1xf32>
    %423 = arith.addf %419, %422 : vector<8x1xf32>
    %424 = math.rsqrt %423 : vector<8x1xf32>
    %425 = vector.broadcast %424 : vector<8x1xf32> to vector<8x128xf32>
    %426 = arith.mulf %421, %425 : vector<8x128xf32>
    %427 = vector.broadcast %40 : vector<1x128xf32> to vector<8x128xf32>
    %428 = arith.mulf %426, %427 : vector<8x128xf32>
    %429 = vector.broadcast %41 : vector<1x128xf32> to vector<8x128xf32>
    %430 = arith.addf %428, %429 : vector<8x128xf32>
    %431 = arith.addf %430, %404 : vector<8x128xf32>
    %432 = vector.extract_strided_slice %431 {offsets = [0, 0], sizes = [8, 32], strides = [1, 1]} : vector<8x128xf32> to vector<8x32xf32>
    %433 = vector.extract_strided_slice %431 {offsets = [0, 32], sizes = [8, 32], strides = [1, 1]} : vector<8x128xf32> to vector<8x32xf32>
    %434 = vector.extract_strided_slice %431 {offsets = [0, 64], sizes = [8, 32], strides = [1, 1]} : vector<8x128xf32> to vector<8x32xf32>
    %435 = vector.extract_strided_slice %431 {offsets = [0, 96], sizes = [8, 32], strides = [1, 1]} : vector<8x128xf32> to vector<8x32xf32>
    %cst_148 = arith.constant 5.000000e-01 : f32
    %436 = vector.broadcast %cst_148 : f32 to vector<8x32xf32>
    %437 = arith.mulf %436, %433 : vector<8x32xf32>
    %438 = math.tanh %437 : vector<8x32xf32>
    %cst_149 = arith.constant 1.000000e+00 : f32
    %439 = vector.broadcast %cst_149 : f32 to vector<8x32xf32>
    %440 = arith.addf %438, %439 : vector<8x32xf32>
    %cst_150 = arith.constant 5.000000e-01 : f32
    %441 = vector.broadcast %cst_150 : f32 to vector<8x32xf32>
    %442 = arith.mulf %441, %440 : vector<8x32xf32>
    %443 = arith.mulf %442, %388 : vector<8x32xf32>
    %cst_151 = arith.constant 5.000000e-01 : f32
    %444 = vector.broadcast %cst_151 : f32 to vector<8x32xf32>
    %445 = arith.mulf %444, %432 : vector<8x32xf32>
    %446 = math.tanh %445 : vector<8x32xf32>
    %cst_152 = arith.constant 1.000000e+00 : f32
    %447 = vector.broadcast %cst_152 : f32 to vector<8x32xf32>
    %448 = arith.addf %446, %447 : vector<8x32xf32>
    %cst_153 = arith.constant 5.000000e-01 : f32
    %449 = vector.broadcast %cst_153 : f32 to vector<8x32xf32>
    %450 = arith.mulf %449, %448 : vector<8x32xf32>
    %451 = math.tanh %434 : vector<8x32xf32>
    %452 = arith.mulf %450, %451 : vector<8x32xf32>
    %453 = arith.addf %443, %452 : vector<8x32xf32>
    %cst_154 = arith.constant dense<0.000000e+00> : vector<8xf32>
    %454 = vector.multi_reduction <add>, %453, %cst_154 [1] : vector<8x32xf32> to vector<8xf32>
    %455 = vector.shape_cast %454 : vector<8xf32> to vector<8x1xf32>
    %cst_155 = arith.constant 3.200000e+01 : f32
    %456 = vector.broadcast %cst_155 : f32 to vector<8x1xf32>
    %457 = arith.divf %455, %456 : vector<8x1xf32>
    %458 = arith.mulf %453, %453 : vector<8x32xf32>
    %cst_156 = arith.constant dense<0.000000e+00> : vector<8xf32>
    %459 = vector.multi_reduction <add>, %458, %cst_156 [1] : vector<8x32xf32> to vector<8xf32>
    %460 = vector.shape_cast %459 : vector<8xf32> to vector<8x1xf32>
    %cst_157 = arith.constant 3.200000e+01 : f32
    %461 = vector.broadcast %cst_157 : f32 to vector<8x1xf32>
    %462 = arith.divf %460, %461 : vector<8x1xf32>
    %463 = arith.mulf %457, %457 : vector<8x1xf32>
    %464 = arith.subf %462, %463 : vector<8x1xf32>
    %cst_158 = arith.constant 0.000000e+00 : f32
    %465 = vector.broadcast %cst_158 : f32 to vector<8x1xf32>
    %466 = arith.maximumf %464, %465 : vector<8x1xf32>
    %467 = vector.broadcast %457 : vector<8x1xf32> to vector<8x32xf32>
    %468 = arith.subf %453, %467 : vector<8x32xf32>
    %cst_159 = arith.constant 9.99999974E-6 : f32
    %469 = vector.broadcast %cst_159 : f32 to vector<8x1xf32>
    %470 = arith.addf %466, %469 : vector<8x1xf32>
    %471 = math.rsqrt %470 : vector<8x1xf32>
    %472 = vector.broadcast %471 : vector<8x1xf32> to vector<8x32xf32>
    %473 = arith.mulf %468, %472 : vector<8x32xf32>
    %474 = vector.broadcast %42 : vector<1x32xf32> to vector<8x32xf32>
    %475 = arith.mulf %473, %474 : vector<8x32xf32>
    %476 = vector.broadcast %43 : vector<1x32xf32> to vector<8x32xf32>
    %477 = arith.addf %475, %476 : vector<8x32xf32>
    %cst_160 = arith.constant 5.000000e-01 : f32
    %478 = vector.broadcast %cst_160 : f32 to vector<8x32xf32>
    %479 = arith.mulf %478, %435 : vector<8x32xf32>
    %480 = math.tanh %479 : vector<8x32xf32>
    %cst_161 = arith.constant 1.000000e+00 : f32
    %481 = vector.broadcast %cst_161 : f32 to vector<8x32xf32>
    %482 = arith.addf %480, %481 : vector<8x32xf32>
    %cst_162 = arith.constant 5.000000e-01 : f32
    %483 = vector.broadcast %cst_162 : f32 to vector<8x32xf32>
    %484 = arith.mulf %483, %482 : vector<8x32xf32>
    %485 = math.tanh %477 : vector<8x32xf32>
    %486 = arith.mulf %484, %485 : vector<8x32xf32>
    %487 = arith.index_cast %c4_i32 : i32 to index
    %c0_163 = arith.constant 0 : index
    %c0_164 = arith.constant 0 : index
    %488 = vector.load %arg12[%487, %c0_163, %c0_164] : memref<8x8x32xf32, #tpu.memory_space<vmem>>, vector<1x8x32xf32>
    %489 = vector.shape_cast %488 : vector<1x8x32xf32> to vector<8x32xf32>
    %490 = vector.shape_cast %486 : vector<8x32xf32> to vector<1x8x32xf32>
    tpu.vector_store %arg12[%487, %c0_163, %c0_164], %490 {strides = array<i32>} : memref<8x8x32xf32, #tpu.memory_space<vmem>>, vector<1x8x32xf32>,
    %c5_i32 = arith.constant 5 : i32
    %491 = arith.index_cast %c5_i32 : i32 to index
    %c0_165 = arith.constant 0 : index
    %c0_166 = arith.constant 0 : index
    %492 = vector.load %arg15[%491, %c0_165, %c0_166] : memref<8x8x128xf32, #tpu.memory_space<vmem>>, vector<1x8x128xf32>
    %493 = vector.shape_cast %492 : vector<1x8x128xf32> to vector<8x128xf32>
    %494 = arith.truncf %486 : vector<8x32xf32> to vector<8x32xbf16>
    %cst_167 = arith.constant dense<0.000000e+00> : vector<8x128xf32>
    %495 = tpu.matmul %494, %39, %cst_167 {dimension_numbers = #tpu.dot_dimension_numbers<[1], [0], [0], [1], [0, 0, 1, 1], [], []>} : vector<8x32xbf16>, vector<32x128xbf16>, vector<8x128xf32> -> vector<8x128xf32>
    %cst_168 = arith.constant dense<0.000000e+00> : vector<8xf32>
    %496 = vector.multi_reduction <add>, %495, %cst_168 [1] : vector<8x128xf32> to vector<8xf32>
    %497 = vector.shape_cast %496 : vector<8xf32> to vector<8x1xf32>
    %cst_169 = arith.constant 1.280000e+02 : f32
    %498 = vector.broadcast %cst_169 : f32 to vector<8x1xf32>
    %499 = arith.divf %497, %498 : vector<8x1xf32>
    %500 = arith.mulf %495, %495 : vector<8x128xf32>
    %cst_170 = arith.constant dense<0.000000e+00> : vector<8xf32>
    %501 = vector.multi_reduction <add>, %500, %cst_170 [1] : vector<8x128xf32> to vector<8xf32>
    %502 = vector.shape_cast %501 : vector<8xf32> to vector<8x1xf32>
    %cst_171 = arith.constant 1.280000e+02 : f32
    %503 = vector.broadcast %cst_171 : f32 to vector<8x1xf32>
    %504 = arith.divf %502, %503 : vector<8x1xf32>
    %505 = arith.mulf %499, %499 : vector<8x1xf32>
    %506 = arith.subf %504, %505 : vector<8x1xf32>
    %cst_172 = arith.constant 0.000000e+00 : f32
    %507 = vector.broadcast %cst_172 : f32 to vector<8x1xf32>
    %508 = arith.maximumf %506, %507 : vector<8x1xf32>
    %509 = vector.broadcast %499 : vector<8x1xf32> to vector<8x128xf32>
    %510 = arith.subf %495, %509 : vector<8x128xf32>
    %cst_173 = arith.constant 9.99999974E-6 : f32
    %511 = vector.broadcast %cst_173 : f32 to vector<8x1xf32>
    %512 = arith.addf %508, %511 : vector<8x1xf32>
    %513 = math.rsqrt %512 : vector<8x1xf32>
    %514 = vector.broadcast %513 : vector<8x1xf32> to vector<8x128xf32>
    %515 = arith.mulf %510, %514 : vector<8x128xf32>
    %516 = vector.broadcast %40 : vector<1x128xf32> to vector<8x128xf32>
    %517 = arith.mulf %515, %516 : vector<8x128xf32>
    %518 = vector.broadcast %41 : vector<1x128xf32> to vector<8x128xf32>
    %519 = arith.addf %517, %518 : vector<8x128xf32>
    %520 = arith.addf %519, %493 : vector<8x128xf32>
    %521 = vector.extract_strided_slice %520 {offsets = [0, 0], sizes = [8, 32], strides = [1, 1]} : vector<8x128xf32> to vector<8x32xf32>
    %522 = vector.extract_strided_slice %520 {offsets = [0, 32], sizes = [8, 32], strides = [1, 1]} : vector<8x128xf32> to vector<8x32xf32>
    %523 = vector.extract_strided_slice %520 {offsets = [0, 64], sizes = [8, 32], strides = [1, 1]} : vector<8x128xf32> to vector<8x32xf32>
    %524 = vector.extract_strided_slice %520 {offsets = [0, 96], sizes = [8, 32], strides = [1, 1]} : vector<8x128xf32> to vector<8x32xf32>
    %cst_174 = arith.constant 5.000000e-01 : f32
    %525 = vector.broadcast %cst_174 : f32 to vector<8x32xf32>
    %526 = arith.mulf %525, %522 : vector<8x32xf32>
    %527 = math.tanh %526 : vector<8x32xf32>
    %cst_175 = arith.constant 1.000000e+00 : f32
    %528 = vector.broadcast %cst_175 : f32 to vector<8x32xf32>
    %529 = arith.addf %527, %528 : vector<8x32xf32>
    %cst_176 = arith.constant 5.000000e-01 : f32
    %530 = vector.broadcast %cst_176 : f32 to vector<8x32xf32>
    %531 = arith.mulf %530, %529 : vector<8x32xf32>
    %532 = arith.mulf %531, %477 : vector<8x32xf32>
    %cst_177 = arith.constant 5.000000e-01 : f32
    %533 = vector.broadcast %cst_177 : f32 to vector<8x32xf32>
    %534 = arith.mulf %533, %521 : vector<8x32xf32>
    %535 = math.tanh %534 : vector<8x32xf32>
    %cst_178 = arith.constant 1.000000e+00 : f32
    %536 = vector.broadcast %cst_178 : f32 to vector<8x32xf32>
    %537 = arith.addf %535, %536 : vector<8x32xf32>
    %cst_179 = arith.constant 5.000000e-01 : f32
    %538 = vector.broadcast %cst_179 : f32 to vector<8x32xf32>
    %539 = arith.mulf %538, %537 : vector<8x32xf32>
    %540 = math.tanh %523 : vector<8x32xf32>
    %541 = arith.mulf %539, %540 : vector<8x32xf32>
    %542 = arith.addf %532, %541 : vector<8x32xf32>
    %cst_180 = arith.constant dense<0.000000e+00> : vector<8xf32>
    %543 = vector.multi_reduction <add>, %542, %cst_180 [1] : vector<8x32xf32> to vector<8xf32>
    %544 = vector.shape_cast %543 : vector<8xf32> to vector<8x1xf32>
    %cst_181 = arith.constant 3.200000e+01 : f32
    %545 = vector.broadcast %cst_181 : f32 to vector<8x1xf32>
    %546 = arith.divf %544, %545 : vector<8x1xf32>
    %547 = arith.mulf %542, %542 : vector<8x32xf32>
    %cst_182 = arith.constant dense<0.000000e+00> : vector<8xf32>
    %548 = vector.multi_reduction <add>, %547, %cst_182 [1] : vector<8x32xf32> to vector<8xf32>
    %549 = vector.shape_cast %548 : vector<8xf32> to vector<8x1xf32>
    %cst_183 = arith.constant 3.200000e+01 : f32
    %550 = vector.broadcast %cst_183 : f32 to vector<8x1xf32>
    %551 = arith.divf %549, %550 : vector<8x1xf32>
    %552 = arith.mulf %546, %546 : vector<8x1xf32>
    %553 = arith.subf %551, %552 : vector<8x1xf32>
    %cst_184 = arith.constant 0.000000e+00 : f32
    %554 = vector.broadcast %cst_184 : f32 to vector<8x1xf32>
    %555 = arith.maximumf %553, %554 : vector<8x1xf32>
    %556 = vector.broadcast %546 : vector<8x1xf32> to vector<8x32xf32>
    %557 = arith.subf %542, %556 : vector<8x32xf32>
    %cst_185 = arith.constant 9.99999974E-6 : f32
    %558 = vector.broadcast %cst_185 : f32 to vector<8x1xf32>
    %559 = arith.addf %555, %558 : vector<8x1xf32>
    %560 = math.rsqrt %559 : vector<8x1xf32>
    %561 = vector.broadcast %560 : vector<8x1xf32> to vector<8x32xf32>
    %562 = arith.mulf %557, %561 : vector<8x32xf32>
    %563 = vector.broadcast %42 : vector<1x32xf32> to vector<8x32xf32>
    %564 = arith.mulf %562, %563 : vector<8x32xf32>
    %565 = vector.broadcast %43 : vector<1x32xf32> to vector<8x32xf32>
    %566 = arith.addf %564, %565 : vector<8x32xf32>
    %cst_186 = arith.constant 5.000000e-01 : f32
    %567 = vector.broadcast %cst_186 : f32 to vector<8x32xf32>
    %568 = arith.mulf %567, %524 : vector<8x32xf32>
    %569 = math.tanh %568 : vector<8x32xf32>
    %cst_187 = arith.constant 1.000000e+00 : f32
    %570 = vector.broadcast %cst_187 : f32 to vector<8x32xf32>
    %571 = arith.addf %569, %570 : vector<8x32xf32>
    %cst_188 = arith.constant 5.000000e-01 : f32
    %572 = vector.broadcast %cst_188 : f32 to vector<8x32xf32>
    %573 = arith.mulf %572, %571 : vector<8x32xf32>
    %574 = math.tanh %566 : vector<8x32xf32>
    %575 = arith.mulf %573, %574 : vector<8x32xf32>
    %576 = arith.index_cast %c5_i32 : i32 to index
    %c0_189 = arith.constant 0 : index
    %c0_190 = arith.constant 0 : index
    %577 = vector.load %arg12[%576, %c0_189, %c0_190] : memref<8x8x32xf32, #tpu.memory_space<vmem>>, vector<1x8x32xf32>
    %578 = vector.shape_cast %577 : vector<1x8x32xf32> to vector<8x32xf32>
    %579 = vector.shape_cast %575 : vector<8x32xf32> to vector<1x8x32xf32>
    tpu.vector_store %arg12[%576, %c0_189, %c0_190], %579 {strides = array<i32>} : memref<8x8x32xf32, #tpu.memory_space<vmem>>, vector<1x8x32xf32>,
    %c6_i32 = arith.constant 6 : i32
    %580 = arith.index_cast %c6_i32 : i32 to index
    %c0_191 = arith.constant 0 : index
    %c0_192 = arith.constant 0 : index
    %581 = vector.load %arg15[%580, %c0_191, %c0_192] : memref<8x8x128xf32, #tpu.memory_space<vmem>>, vector<1x8x128xf32>
    %582 = vector.shape_cast %581 : vector<1x8x128xf32> to vector<8x128xf32>
    %583 = arith.truncf %575 : vector<8x32xf32> to vector<8x32xbf16>
    %cst_193 = arith.constant dense<0.000000e+00> : vector<8x128xf32>
    %584 = tpu.matmul %583, %39, %cst_193 {dimension_numbers = #tpu.dot_dimension_numbers<[1], [0], [0], [1], [0, 0, 1, 1], [], []>} : vector<8x32xbf16>, vector<32x128xbf16>, vector<8x128xf32> -> vector<8x128xf32>
    %cst_194 = arith.constant dense<0.000000e+00> : vector<8xf32>
    %585 = vector.multi_reduction <add>, %584, %cst_194 [1] : vector<8x128xf32> to vector<8xf32>
    %586 = vector.shape_cast %585 : vector<8xf32> to vector<8x1xf32>
    %cst_195 = arith.constant 1.280000e+02 : f32
    %587 = vector.broadcast %cst_195 : f32 to vector<8x1xf32>
    %588 = arith.divf %586, %587 : vector<8x1xf32>
    %589 = arith.mulf %584, %584 : vector<8x128xf32>
    %cst_196 = arith.constant dense<0.000000e+00> : vector<8xf32>
    %590 = vector.multi_reduction <add>, %589, %cst_196 [1] : vector<8x128xf32> to vector<8xf32>
    %591 = vector.shape_cast %590 : vector<8xf32> to vector<8x1xf32>
    %cst_197 = arith.constant 1.280000e+02 : f32
    %592 = vector.broadcast %cst_197 : f32 to vector<8x1xf32>
    %593 = arith.divf %591, %592 : vector<8x1xf32>
    %594 = arith.mulf %588, %588 : vector<8x1xf32>
    %595 = arith.subf %593, %594 : vector<8x1xf32>
    %cst_198 = arith.constant 0.000000e+00 : f32
    %596 = vector.broadcast %cst_198 : f32 to vector<8x1xf32>
    %597 = arith.maximumf %595, %596 : vector<8x1xf32>
    %598 = vector.broadcast %588 : vector<8x1xf32> to vector<8x128xf32>
    %599 = arith.subf %584, %598 : vector<8x128xf32>
    %cst_199 = arith.constant 9.99999974E-6 : f32
    %600 = vector.broadcast %cst_199 : f32 to vector<8x1xf32>
    %601 = arith.addf %597, %600 : vector<8x1xf32>
    %602 = math.rsqrt %601 : vector<8x1xf32>
    %603 = vector.broadcast %602 : vector<8x1xf32> to vector<8x128xf32>
    %604 = arith.mulf %599, %603 : vector<8x128xf32>
    %605 = vector.broadcast %40 : vector<1x128xf32> to vector<8x128xf32>
    %606 = arith.mulf %604, %605 : vector<8x128xf32>
    %607 = vector.broadcast %41 : vector<1x128xf32> to vector<8x128xf32>
    %608 = arith.addf %606, %607 : vector<8x128xf32>
    %609 = arith.addf %608, %582 : vector<8x128xf32>
    %610 = vector.extract_strided_slice %609 {offsets = [0, 0], sizes = [8, 32], strides = [1, 1]} : vector<8x128xf32> to vector<8x32xf32>
    %611 = vector.extract_strided_slice %609 {offsets = [0, 32], sizes = [8, 32], strides = [1, 1]} : vector<8x128xf32> to vector<8x32xf32>
    %612 = vector.extract_strided_slice %609 {offsets = [0, 64], sizes = [8, 32], strides = [1, 1]} : vector<8x128xf32> to vector<8x32xf32>
    %613 = vector.extract_strided_slice %609 {offsets = [0, 96], sizes = [8, 32], strides = [1, 1]} : vector<8x128xf32> to vector<8x32xf32>
    %cst_200 = arith.constant 5.000000e-01 : f32
    %614 = vector.broadcast %cst_200 : f32 to vector<8x32xf32>
    %615 = arith.mulf %614, %611 : vector<8x32xf32>
    %616 = math.tanh %615 : vector<8x32xf32>
    %cst_201 = arith.constant 1.000000e+00 : f32
    %617 = vector.broadcast %cst_201 : f32 to vector<8x32xf32>
    %618 = arith.addf %616, %617 : vector<8x32xf32>
    %cst_202 = arith.constant 5.000000e-01 : f32
    %619 = vector.broadcast %cst_202 : f32 to vector<8x32xf32>
    %620 = arith.mulf %619, %618 : vector<8x32xf32>
    %621 = arith.mulf %620, %566 : vector<8x32xf32>
    %cst_203 = arith.constant 5.000000e-01 : f32
    %622 = vector.broadcast %cst_203 : f32 to vector<8x32xf32>
    %623 = arith.mulf %622, %610 : vector<8x32xf32>
    %624 = math.tanh %623 : vector<8x32xf32>
    %cst_204 = arith.constant 1.000000e+00 : f32
    %625 = vector.broadcast %cst_204 : f32 to vector<8x32xf32>
    %626 = arith.addf %624, %625 : vector<8x32xf32>
    %cst_205 = arith.constant 5.000000e-01 : f32
    %627 = vector.broadcast %cst_205 : f32 to vector<8x32xf32>
    %628 = arith.mulf %627, %626 : vector<8x32xf32>
    %629 = math.tanh %612 : vector<8x32xf32>
    %630 = arith.mulf %628, %629 : vector<8x32xf32>
    %631 = arith.addf %621, %630 : vector<8x32xf32>
    %cst_206 = arith.constant dense<0.000000e+00> : vector<8xf32>
    %632 = vector.multi_reduction <add>, %631, %cst_206 [1] : vector<8x32xf32> to vector<8xf32>
    %633 = vector.shape_cast %632 : vector<8xf32> to vector<8x1xf32>
    %cst_207 = arith.constant 3.200000e+01 : f32
    %634 = vector.broadcast %cst_207 : f32 to vector<8x1xf32>
    %635 = arith.divf %633, %634 : vector<8x1xf32>
    %636 = arith.mulf %631, %631 : vector<8x32xf32>
    %cst_208 = arith.constant dense<0.000000e+00> : vector<8xf32>
    %637 = vector.multi_reduction <add>, %636, %cst_208 [1] : vector<8x32xf32> to vector<8xf32>
    %638 = vector.shape_cast %637 : vector<8xf32> to vector<8x1xf32>
    %cst_209 = arith.constant 3.200000e+01 : f32
    %639 = vector.broadcast %cst_209 : f32 to vector<8x1xf32>
    %640 = arith.divf %638, %639 : vector<8x1xf32>
    %641 = arith.mulf %635, %635 : vector<8x1xf32>
    %642 = arith.subf %640, %641 : vector<8x1xf32>
    %cst_210 = arith.constant 0.000000e+00 : f32
    %643 = vector.broadcast %cst_210 : f32 to vector<8x1xf32>
    %644 = arith.maximumf %642, %643 : vector<8x1xf32>
    %645 = vector.broadcast %635 : vector<8x1xf32> to vector<8x32xf32>
    %646 = arith.subf %631, %645 : vector<8x32xf32>
    %cst_211 = arith.constant 9.99999974E-6 : f32
    %647 = vector.broadcast %cst_211 : f32 to vector<8x1xf32>
    %648 = arith.addf %644, %647 : vector<8x1xf32>
    %649 = math.rsqrt %648 : vector<8x1xf32>
    %650 = vector.broadcast %649 : vector<8x1xf32> to vector<8x32xf32>
    %651 = arith.mulf %646, %650 : vector<8x32xf32>
    %652 = vector.broadcast %42 : vector<1x32xf32> to vector<8x32xf32>
    %653 = arith.mulf %651, %652 : vector<8x32xf32>
    %654 = vector.broadcast %43 : vector<1x32xf32> to vector<8x32xf32>
    %655 = arith.addf %653, %654 : vector<8x32xf32>
    %cst_212 = arith.constant 5.000000e-01 : f32
    %656 = vector.broadcast %cst_212 : f32 to vector<8x32xf32>
    %657 = arith.mulf %656, %613 : vector<8x32xf32>
    %658 = math.tanh %657 : vector<8x32xf32>
    %cst_213 = arith.constant 1.000000e+00 : f32
    %659 = vector.broadcast %cst_213 : f32 to vector<8x32xf32>
    %660 = arith.addf %658, %659 : vector<8x32xf32>
    %cst_214 = arith.constant 5.000000e-01 : f32
    %661 = vector.broadcast %cst_214 : f32 to vector<8x32xf32>
    %662 = arith.mulf %661, %660 : vector<8x32xf32>
    %663 = math.tanh %655 : vector<8x32xf32>
    %664 = arith.mulf %662, %663 : vector<8x32xf32>
    %665 = arith.index_cast %c6_i32 : i32 to index
    %c0_215 = arith.constant 0 : index
    %c0_216 = arith.constant 0 : index
    %666 = vector.load %arg12[%665, %c0_215, %c0_216] : memref<8x8x32xf32, #tpu.memory_space<vmem>>, vector<1x8x32xf32>
    %667 = vector.shape_cast %666 : vector<1x8x32xf32> to vector<8x32xf32>
    %668 = vector.shape_cast %664 : vector<8x32xf32> to vector<1x8x32xf32>
    tpu.vector_store %arg12[%665, %c0_215, %c0_216], %668 {strides = array<i32>} : memref<8x8x32xf32, #tpu.memory_space<vmem>>, vector<1x8x32xf32>,
    %c7_i32 = arith.constant 7 : i32
    %669 = arith.index_cast %c7_i32 : i32 to index
    %c0_217 = arith.constant 0 : index
    %c0_218 = arith.constant 0 : index
    %670 = vector.load %arg15[%669, %c0_217, %c0_218] : memref<8x8x128xf32, #tpu.memory_space<vmem>>, vector<1x8x128xf32>
    %671 = vector.shape_cast %670 : vector<1x8x128xf32> to vector<8x128xf32>
    %672 = arith.truncf %664 : vector<8x32xf32> to vector<8x32xbf16>
    %cst_219 = arith.constant dense<0.000000e+00> : vector<8x128xf32>
    %673 = tpu.matmul %672, %39, %cst_219 {dimension_numbers = #tpu.dot_dimension_numbers<[1], [0], [0], [1], [0, 0, 1, 1], [], []>} : vector<8x32xbf16>, vector<32x128xbf16>, vector<8x128xf32> -> vector<8x128xf32>
    %cst_220 = arith.constant dense<0.000000e+00> : vector<8xf32>
    %674 = vector.multi_reduction <add>, %673, %cst_220 [1] : vector<8x128xf32> to vector<8xf32>
    %675 = vector.shape_cast %674 : vector<8xf32> to vector<8x1xf32>
    %cst_221 = arith.constant 1.280000e+02 : f32
    %676 = vector.broadcast %cst_221 : f32 to vector<8x1xf32>
    %677 = arith.divf %675, %676 : vector<8x1xf32>
    %678 = arith.mulf %673, %673 : vector<8x128xf32>
    %cst_222 = arith.constant dense<0.000000e+00> : vector<8xf32>
    %679 = vector.multi_reduction <add>, %678, %cst_222 [1] : vector<8x128xf32> to vector<8xf32>
    %680 = vector.shape_cast %679 : vector<8xf32> to vector<8x1xf32>
    %cst_223 = arith.constant 1.280000e+02 : f32
    %681 = vector.broadcast %cst_223 : f32 to vector<8x1xf32>
    %682 = arith.divf %680, %681 : vector<8x1xf32>
    %683 = arith.mulf %677, %677 : vector<8x1xf32>
    %684 = arith.subf %682, %683 : vector<8x1xf32>
    %cst_224 = arith.constant 0.000000e+00 : f32
    %685 = vector.broadcast %cst_224 : f32 to vector<8x1xf32>
    %686 = arith.maximumf %684, %685 : vector<8x1xf32>
    %687 = vector.broadcast %677 : vector<8x1xf32> to vector<8x128xf32>
    %688 = arith.subf %673, %687 : vector<8x128xf32>
    %cst_225 = arith.constant 9.99999974E-6 : f32
    %689 = vector.broadcast %cst_225 : f32 to vector<8x1xf32>
    %690 = arith.addf %686, %689 : vector<8x1xf32>
    %691 = math.rsqrt %690 : vector<8x1xf32>
    %692 = vector.broadcast %691 : vector<8x1xf32> to vector<8x128xf32>
    %693 = arith.mulf %688, %692 : vector<8x128xf32>
    %694 = vector.broadcast %40 : vector<1x128xf32> to vector<8x128xf32>
    %695 = arith.mulf %693, %694 : vector<8x128xf32>
    %696 = vector.broadcast %41 : vector<1x128xf32> to vector<8x128xf32>
    %697 = arith.addf %695, %696 : vector<8x128xf32>
    %698 = arith.addf %697, %671 : vector<8x128xf32>
    %699 = vector.extract_strided_slice %698 {offsets = [0, 0], sizes = [8, 32], strides = [1, 1]} : vector<8x128xf32> to vector<8x32xf32>
    %700 = vector.extract_strided_slice %698 {offsets = [0, 32], sizes = [8, 32], strides = [1, 1]} : vector<8x128xf32> to vector<8x32xf32>
    %701 = vector.extract_strided_slice %698 {offsets = [0, 64], sizes = [8, 32], strides = [1, 1]} : vector<8x128xf32> to vector<8x32xf32>
    %702 = vector.extract_strided_slice %698 {offsets = [0, 96], sizes = [8, 32], strides = [1, 1]} : vector<8x128xf32> to vector<8x32xf32>
    %cst_226 = arith.constant 5.000000e-01 : f32
    %703 = vector.broadcast %cst_226 : f32 to vector<8x32xf32>
    %704 = arith.mulf %703, %700 : vector<8x32xf32>
    %705 = math.tanh %704 : vector<8x32xf32>
    %cst_227 = arith.constant 1.000000e+00 : f32
    %706 = vector.broadcast %cst_227 : f32 to vector<8x32xf32>
    %707 = arith.addf %705, %706 : vector<8x32xf32>
    %cst_228 = arith.constant 5.000000e-01 : f32
    %708 = vector.broadcast %cst_228 : f32 to vector<8x32xf32>
    %709 = arith.mulf %708, %707 : vector<8x32xf32>
    %710 = arith.mulf %709, %655 : vector<8x32xf32>
    %cst_229 = arith.constant 5.000000e-01 : f32
    %711 = vector.broadcast %cst_229 : f32 to vector<8x32xf32>
    %712 = arith.mulf %711, %699 : vector<8x32xf32>
    %713 = math.tanh %712 : vector<8x32xf32>
    %cst_230 = arith.constant 1.000000e+00 : f32
    %714 = vector.broadcast %cst_230 : f32 to vector<8x32xf32>
    %715 = arith.addf %713, %714 : vector<8x32xf32>
    %cst_231 = arith.constant 5.000000e-01 : f32
    %716 = vector.broadcast %cst_231 : f32 to vector<8x32xf32>
    %717 = arith.mulf %716, %715 : vector<8x32xf32>
    %718 = math.tanh %701 : vector<8x32xf32>
    %719 = arith.mulf %717, %718 : vector<8x32xf32>
    %720 = arith.addf %710, %719 : vector<8x32xf32>
    %cst_232 = arith.constant dense<0.000000e+00> : vector<8xf32>
    %721 = vector.multi_reduction <add>, %720, %cst_232 [1] : vector<8x32xf32> to vector<8xf32>
    %722 = vector.shape_cast %721 : vector<8xf32> to vector<8x1xf32>
    %cst_233 = arith.constant 3.200000e+01 : f32
    %723 = vector.broadcast %cst_233 : f32 to vector<8x1xf32>
    %724 = arith.divf %722, %723 : vector<8x1xf32>
    %725 = arith.mulf %720, %720 : vector<8x32xf32>
    %cst_234 = arith.constant dense<0.000000e+00> : vector<8xf32>
    %726 = vector.multi_reduction <add>, %725, %cst_234 [1] : vector<8x32xf32> to vector<8xf32>
    %727 = vector.shape_cast %726 : vector<8xf32> to vector<8x1xf32>
    %cst_235 = arith.constant 3.200000e+01 : f32
    %728 = vector.broadcast %cst_235 : f32 to vector<8x1xf32>
    %729 = arith.divf %727, %728 : vector<8x1xf32>
    %730 = arith.mulf %724, %724 : vector<8x1xf32>
    %731 = arith.subf %729, %730 : vector<8x1xf32>
    %cst_236 = arith.constant 0.000000e+00 : f32
    %732 = vector.broadcast %cst_236 : f32 to vector<8x1xf32>
    %733 = arith.maximumf %731, %732 : vector<8x1xf32>
    %734 = vector.broadcast %724 : vector<8x1xf32> to vector<8x32xf32>
    %735 = arith.subf %720, %734 : vector<8x32xf32>
    %cst_237 = arith.constant 9.99999974E-6 : f32
    %736 = vector.broadcast %cst_237 : f32 to vector<8x1xf32>
    %737 = arith.addf %733, %736 : vector<8x1xf32>
    %738 = math.rsqrt %737 : vector<8x1xf32>
    %739 = vector.broadcast %738 : vector<8x1xf32> to vector<8x32xf32>
    %740 = arith.mulf %735, %739 : vector<8x32xf32>
    %741 = vector.broadcast %42 : vector<1x32xf32> to vector<8x32xf32>
    %742 = arith.mulf %740, %741 : vector<8x32xf32>
    %743 = vector.broadcast %43 : vector<1x32xf32> to vector<8x32xf32>
    %744 = arith.addf %742, %743 : vector<8x32xf32>
    %cst_238 = arith.constant 5.000000e-01 : f32
    %745 = vector.broadcast %cst_238 : f32 to vector<8x32xf32>
    %746 = arith.mulf %745, %702 : vector<8x32xf32>
    %747 = math.tanh %746 : vector<8x32xf32>
    %cst_239 = arith.constant 1.000000e+00 : f32
    %748 = vector.broadcast %cst_239 : f32 to vector<8x32xf32>
    %749 = arith.addf %747, %748 : vector<8x32xf32>
    %cst_240 = arith.constant 5.000000e-01 : f32
    %750 = vector.broadcast %cst_240 : f32 to vector<8x32xf32>
    %751 = arith.mulf %750, %749 : vector<8x32xf32>
    %752 = math.tanh %744 : vector<8x32xf32>
    %753 = arith.mulf %751, %752 : vector<8x32xf32>
    %754 = arith.index_cast %c7_i32 : i32 to index
    %c0_241 = arith.constant 0 : index
    %c0_242 = arith.constant 0 : index
    %755 = vector.load %arg12[%754, %c0_241, %c0_242] : memref<8x8x32xf32, #tpu.memory_space<vmem>>, vector<1x8x32xf32>
    %756 = vector.shape_cast %755 : vector<1x8x32xf32> to vector<8x32xf32>
    %757 = vector.shape_cast %753 : vector<8x32xf32> to vector<1x8x32xf32>
    tpu.vector_store %arg12[%754, %c0_241, %c0_242], %757 {strides = array<i32>} : memref<8x8x32xf32, #tpu.memory_space<vmem>>, vector<1x8x32xf32>,
    %c8_i32 = arith.constant 8 : i32
    %c0_243 = arith.constant 0 : index
    %c0_244 = arith.constant 0 : index
    %758 = vector.load %arg16[%c0_243, %c0_244] : memref<8x32xf32, #tpu.memory_space<vmem>>, vector<8x32xf32>
    tpu.vector_store %arg16[%c0_243, %c0_244], %753 {strides = array<i32>} : memref<8x32xf32, #tpu.memory_space<vmem>>, vector<8x32xf32>,
    %c0_245 = arith.constant 0 : index
    %c0_246 = arith.constant 0 : index
    %759 = vector.load %arg17[%c0_245, %c0_246] : memref<8x32xf32, #tpu.memory_space<vmem>>, vector<8x32xf32>
    tpu.vector_store %arg17[%c0_245, %c0_246], %744 {strides = array<i32>} : memref<8x32xf32, #tpu.memory_space<vmem>>, vector<8x32xf32>,
    %c0_247 = arith.constant 0 : index
    %c0_248 = arith.constant 0 : index
    %760 = vector.load %arg13[%c0_247, %c0_248] : memref<8x32xf32, #tpu.memory_space<vmem>>, vector<8x32xf32>
    tpu.vector_store %arg13[%c0_247, %c0_248], %753 {strides = array<i32>} : memref<8x32xf32, #tpu.memory_space<vmem>>, vector<8x32xf32>,
    %c0_249 = arith.constant 0 : index
    %c0_250 = arith.constant 0 : index
    %761 = vector.load %arg14[%c0_249, %c0_250] : memref<8x32xf32, #tpu.memory_space<vmem>>, vector<8x32xf32>
    tpu.vector_store %arg14[%c0_249, %c0_250], %744 {strides = array<i32>} : memref<8x32xf32, #tpu.memory_space<vmem>>, vector<8x32xf32>,
    return
  }
  func.func @transform_0(%arg0: i32, %arg1: i32) -> (i32, i32, i32) {
    %c0_i32 = arith.constant 0 : i32
    %c0_i32_0 = arith.constant 0 : i32
    return %arg1, %arg0, %c0_i32 : i32, i32, i32
  }
  func.func @transform_1(%arg0: i32, %arg1: i32) -> (i32, i32) {
    %c0_i32 = arith.constant 0 : i32
    %c0_i32_0 = arith.constant 0 : i32
    %c0_i32_1 = arith.constant 0 : i32
    return %c0_i32, %c0_i32_0 : i32, i32
  }
  func.func @transform_2(%arg0: i32, %arg1: i32) -> (i32, i32) {
    %c0_i32 = arith.constant 0 : i32
    %c0_i32_0 = arith.constant 0 : i32
    %c0_i32_1 = arith.constant 0 : i32
    return %c0_i32, %c0_i32_0 : i32, i32
  }
  func.func @transform_3(%arg0: i32, %arg1: i32) -> (i32, i32) {
    %c0_i32 = arith.constant 0 : i32
    %c0_i32_0 = arith.constant 0 : i32
    %c0_i32_1 = arith.constant 0 : i32
    return %c0_i32, %c0_i32_0 : i32, i32
  }
  func.func @transform_4(%arg0: i32, %arg1: i32) -> (i32, i32) {
    %c0_i32 = arith.constant 0 : i32
    %c0_i32_0 = arith.constant 0 : i32
    %c0_i32_1 = arith.constant 0 : i32
    return %c0_i32, %c0_i32_0 : i32, i32
  }
  func.func @transform_5(%arg0: i32, %arg1: i32) -> (i32, i32) {
    %c0_i32 = arith.constant 0 : i32
    %c0_i32_0 = arith.constant 0 : i32
    %c0_i32_1 = arith.constant 0 : i32
    return %c0_i32, %c0_i32_0 : i32, i32
  }
  func.func @transform_6(%arg0: i32, %arg1: i32) -> (i32, i32) {
    %c0_i32 = arith.constant 0 : i32
    %c0_i32_0 = arith.constant 0 : i32
    %c0_i32_1 = arith.constant 0 : i32
    return %c0_i32, %c0_i32_0 : i32, i32
  }
  func.func @transform_7(%arg0: i32, %arg1: i32) -> (i32, i32) {
    %c0_i32 = arith.constant 0 : i32
    %c0_i32_0 = arith.constant 0 : i32
    %c0_i32_1 = arith.constant 0 : i32
    return %c0_i32, %c0_i32_0 : i32, i32
  }
  func.func @transform_8(%arg0: i32, %arg1: i32) -> (i32, i32) {
    %c0_i32 = arith.constant 0 : i32
    %c0_i32_0 = arith.constant 0 : i32
    %c0_i32_1 = arith.constant 0 : i32
    return %c0_i32, %c0_i32_0 : i32, i32
  }
  func.func @transform_9(%arg0: i32, %arg1: i32) -> (i32, i32) {
    %c0_i32 = arith.constant 0 : i32
    %c0_i32_0 = arith.constant 0 : i32
    %c0_i32_1 = arith.constant 0 : i32
    return %c0_i32, %c0_i32_0 : i32, i32
  }
  func.func @transform_10(%arg0: i32, %arg1: i32) -> (i32, i32, i32) {
    %c0_i32 = arith.constant 0 : i32
    %c0_i32_0 = arith.constant 0 : i32
    return %arg1, %arg0, %c0_i32 : i32, i32, i32
  }
  func.func @transform_11(%arg0: i32, %arg1: i32) -> (i32, i32) {
    %c0_i32 = arith.constant 0 : i32
    %c0_i32_0 = arith.constant 0 : i32
    return %arg0, %c0_i32 : i32, i32
  }
  func.func @transform_12(%arg0: i32, %arg1: i32) -> (i32, i32) {
    %c0_i32 = arith.constant 0 : i32
    %c0_i32_0 = arith.constant 0 : i32
    return %arg0, %c0_i32 : i32, i32
  }
}

</mosaic_0001>

<bundles_post_ra>
// kernel: lstm_forward.1
= control target key start
LH: loop header
LB: loop body
LE: loop exit
PB: predicated region body
PF: predicated region fallthrough
CT: control target
= control target key end

     0   :  { %vm43_vm0 = vcmask 261120   ;;  %v1472_v3 = vmov 0.0   ;;  %vm90_vm1 = vcmask 130048   ;;  %v1473_v18 = vmov 128.0   ;;  %s1474_s21 = smov 64   ;;  %s1475_s22 = smov 32   ;;  %s1992_s2 = inlined_call_operand.vmem [shape: bf16[32,128], index: 2, kind: input, shape index: {}]   ;;  %s1993_s1 = inlined_call_operand.vmem [shape: bf16[16,128], index: 1, kind: input, shape index: {}]   ;;  %s1994_s0 = inlined_call_operand.vmem [shape: f32[8,8,16], index: 0, kind: input, shape index: {}]   ;;  %s1995_s5 = inlined_call_operand.vmem [shape: f32[1,128], index: 5, kind: input, shape index: {}]   ;;  %s1996_s6 = inlined_call_operand.vmem [shape: f32[1,128], index: 6, kind: input, shape index: {}]   ;;  %s1997_s3 = inlined_call_operand.vmem [shape: f32[1,128], index: 3, kind: input, shape index: {}]   ;;  %s1998_s4 = inlined_call_operand.vmem [shape: f32[1,128], index: 4, kind: input, shape index: {}]   ;;  %s1999_s7 = inlined_call_operand.vmem [shape: f32[1,128], index: 7, kind: input, shape index: {}]   ;;  %s2000_s8 = inlined_call_operand.vmem [shape: f32[1,32], index: 8, kind: input, shape index: {}]   ;;  %s2001_s9 = inlined_call_operand.vmem [shape: f32[1,32], index: 9, kind: input, shape index: {}]   ;;  %s2002_s10 = inlined_call_operand.vmem [shape: f32[8,8,32], index: 10, kind: output, shape index: {0}]   ;;  %s2003_s11 = inlined_call_operand.vmem [shape: f32[8,32], index: 11, kind: output, shape index: {1}]   ;;  %s2004_s12 = inlined_call_operand.vmem [shape: f32[8,32], index: 12, kind: output, shape index: {2}]  }
   0x1   :  { %v1546_v0 = vld [vmem:[%s1992_s2 + $0x8] sm:$0xff]  ;;  %v1351_v1 = vld [vmem:[%s1993_s1] sm:$0xff]  ;;  %44 = vst.msk [vmem:[#allocation3] sm:$0xff] %vm43_vm0, %v1472_v3  ;;  %1367 = vrcp.f32 %v1473_v18  ;;  %s1476_s23 = smov 96  }
   0x2   :  { %v46_v2 = vld [vmem:[%s1994_s0] sm:$0xff]  ;;  %v47_v4 = vld [vmem:[%s1994_s0 + $0x8] sm:$0xff]  ;;  %45 = vst.msk [vmem:[#allocation4] sm:$0xff] %vm43_vm0, %v1472_v3  ;;  %401 = vmatpush.bf16.msra.mxu1 %v1546_v0  ;;  %110 = vmatpush.bf16.msra.mxu0 %v1351_v1 }
   0x3   :  { %v54_v5 = vpack.c.bf16 %v46_v2, %v46_v2  ;;  %v55_v6 = vpack.c.bf16 %v47_v4, %v47_v4  ;;  %v1563_v7 = vld [vmem:[%s1992_s2] sm:$0xff]  ;;  %538 = vmatpush.bf16.msra.mxu2 %v1546_v0  ;;  %649 = vmatpush.bf16.msra.mxu3 %v1546_v0 }
   0x4   :  { %v1594_v53 = vld [vmem:[%s1995_s5] ss:$0 sm:$0xff] }
   0x5   :  { %v72_v8 = vunpack.c.l.b16 %v54_v5  ;;  %v73_v9 = vunpack.c.l.b16 %v55_v6  ;;  %v1600_v58 = vld [vmem:[%s1996_s6] ss:$0 sm:$0xff] }
   0x6   :  { %402 = vmatpush.bf16.msra.mxu1 %v1563_v7  ;;  %v1605_v59 = vld [vmem:[%s1997_s3] ss:$0 sm:$0xff] }
   0x7   :  { %v80_v10 = vpack.c.b16 %v73_v9, %v72_v8  ;;  %539 = vmatpush.bf16.msra.mxu2 %v1563_v7  ;;  %650 = vmatpush.bf16.msra.mxu3 %v1563_v7  ;;  %v1368_v19 = vpop.eup %1367  ;;  %v1611_v63 = vld [vmem:[%s1999_s7] ss:$0 sm:$0xff] }
   0x8   :  { %v375_v11 = vld [vmem:[#allocation3] sm:$0xff]  ;;  %v151_v20 = vmul.f32 128.0, %v1368_v19  ;;  %vm155_vm2 = vweird.f32 %v1368_v19 }
   0x9   :  { %1324 = vmatmul.msk.bf16.vlgmr.msra.gmra.mxu0 %vm90_vm1, %v80_v10  ;;  %v378_v12 = vpack.c.bf16 %v375_v11, %v375_v11  ;;  %v1616_v1 = vld [vmem:[%s1998_s4] ss:$0 sm:$0xff]  ;;  %v376_v9 = vld [vmem:[#allocation4] sm:$0xff] }
   0xa   :  { %760 = vmatpush.bf16.msrb.mxu1 %v1546_v0  ;;  %v152_v21 = vsub.f32 1.0, %v151_v20 }
   0xb   :  { %871 = vmatpush.bf16.msrb.mxu2 %v1546_v0  ;;  %982 = vmatpush.bf16.msrb.mxu3 %v1546_v0 }
   0xc   :  { %1336 = vmatmul.msk.bf16.vlgmr.msra.gmra.mxu1 %vm43_vm0, %v378_v12  ;;  %v153_v22 = vmul.f32 %v1368_v19, %v152_v21 }
   0xe   :  { %761 = vmatpush.bf16.msrb.mxu1 %v1563_v7  ;;  %v154_v23 = vadd.f32 %v1368_v19, %v153_v22  ;;  %v1365_v22 = vld [vmem:[%s2000_s8] ss:$0 sm:$0xff] }
   0xf   :  { %872 = vmatpush.bf16.msrb.mxu2 %v1563_v7  ;;  %983 = vmatpush.bf16.msrb.mxu3 %v1563_v7 }
  0x10   :  { %v1585_v25 = vsel %vm155_vm2, %v1368_v19, %v154_v23 }
  0x12   :  { %1093 = vmatpush.bf16.msra.mxu1 %v1546_v0 }
  0x16   :  { %1094 = vmatpush.bf16.msra.mxu1 %v1563_v7 }
  0x86   :  { %v112_v13 = vpop.f32.mrf.mxu0 }
  0x87   :  { %134 = vadd.xlane.f32.xlu0 %v112_v13  ;;  %v165_v15 = vmul.f32 %v112_v13, %v112_v13 }
  0x89   :  { %v1580_v14 = vpop.f32.mrf.mxu1 }
  0x8a   :  { %408 = vadd.xlane.f32.xlu1 %v1580_v14  ;;  %v411_v16 = vmul.f32 %v1580_v14, %v1580_v14 }
  0x8f   :  { %173 = vadd.xlane.f32.xlu0 %v165_v15 }
  0x91   :  { %v406_v17 = vpop.f32.mrf.mxu1 }
  0x92   :  { %412 = vadd.xlane.f32.xlu1 %v411_v16 }
  0xfa   :  { %v135_v24 = vpop.xlane.xlu0 %134 }
  0xfb   :  { %v157_v27 = vmul.f32 %v1585_v25, %v135_v24  ;;  %v1366_v24 = vld [vmem:[%s2001_s9] ss:$0 sm:$0xff] }
  0xfd   :  { %v409_v26 = vpop.xlane.xlu1 %408  ;;  %v197_v30 = vmul.f32 %v157_v27, %v157_v27  ;;  %v221_v52 = vsub.f32 %v112_v13, %v157_v27 }
  0xfe   :  { %v410_v28 = vmul.f32 %v409_v26, %v1585_v25 }
 0x100   :  { %v415_v33 = vmul.f32 %v410_v28, %v410_v28  ;;  %v418_v56 = vsub.f32 %v1580_v14, %v410_v28  ;;  %v1641_v28 = vpop.f32.mrf.mxu0 }
 0x102   :  { %v174_v29 = vpop.xlane.xlu0 %173 }
 0x103   :  { %v189_v31 = vmul.f32 %v174_v29, %v1585_v25  ;;  %v1477_v29 = vmov 32.0  }
 0x105   :  { %v413_v32 = vpop.xlane.xlu1 %412  ;;  %v205_v34 = vsub.f32 %v189_v31, %v197_v30 }
 0x106   :  { %v414_v35 = vmul.f32 %v413_v32, %v1585_v25 }
 0x107   :  { %v213_v36 = vmax.f32 %v205_v34, 0.0 }
 0x108   :  { %v416_v37 = vsub.f32 %v414_v35, %v415_v33 }
 0x109   :  { %v229_v38 = vadd.f32 1e-05, %v213_v36 }
 0x10a   :  { %v417_v39 = vmax.f32 %v416_v37, 0.0 }
 0x10b   :  { %1369 = vrsqrt.f32 %v229_v38  ;;  %vm243_vm4 = vweird.f32 %v229_v38 }
 0x10c   :  { %v419_v40 = vadd.f32 1e-05, %v417_v39 }
 0x10e   :  { %1371 = vrsqrt.f32 %v419_v40  ;;  %vm426_vm7 = vweird.f32 %v419_v40 }
 0x111   :  { %v1370_v41 = vpop.eup %1369 }
 0x112   :  { %v238_v42 = vmul.f32 %v1370_v41, %v229_v38  ;;  %vm244_vm3 = vweird.f32 %v1370_v41 }
 0x113   :  { %vm245_vm6 = vmor %vm243_vm4, %vm244_vm3 }
 0x114   :  { %v1372_v43 = vpop.eup %1371  ;;  %v239_v44 = vmul.f32 %v1370_v41, %v238_v42 }
 0x115   :  { %v421_v45 = vmul.f32 %v1372_v43, %v419_v40  ;;  %vm427_vm5 = vweird.f32 %v1372_v43 }
 0x116   :  { %v240_v46 = vmul.f32 0.5, %v239_v44  ;;  %vm428_vm8 = vmor %vm426_vm7, %vm427_vm5 }
 0x117   :  { %v422_v47 = vmul.f32 %v1372_v43, %v421_v45 }
 0x118   :  { %v241_v48 = vsub.f32 1.5, %v240_v46 }
 0x119   :  { %v423_v49 = vmul.f32 0.5, %v422_v47 }
 0x11a   :  { %v242_v50 = vmul.f32 %v1370_v41, %v241_v48 }
 0x11b   :  { %v424_v51 = vsub.f32 1.5, %v423_v49 }
 0x11c   :  { %v246_v54 = vsel %vm245_vm6, %v1370_v41, %v242_v50 }
 0x11d   :  { %v425_v55 = vmul.f32 %v1372_v43, %v424_v51  ;;  %v317_v57 = vmul.f32 %v246_v54, %v221_v52 }
 0x11f   :  { %v429_v60 = vsel %vm428_vm8, %v1372_v43, %v425_v55  ;;  %v328_v61 = vmul.f32 %v1594_v53, %v317_v57 }
 0x120   :  { %v430_v62 = vmul.f32 %v429_v60, %v418_v56 }
 0x121   :  { %v339_v2 = vadd.f32 %v1600_v58, %v328_v61 }
 0x122   :  { %v434_v3 = vmul.f32 %v1605_v59, %v430_v62 }
 0x123   :  { %v351_v4 = vadd.f32 %v1611_v63, %v339_v2 }
 0x124   :  { %v438_v5 = vadd.f32 %v1616_v1, %v434_v3  ;;  %v166_v3 = vmul.f32 %v1641_v28, %v1641_v28 }
 0x126   :  { %v439_v6 = vadd.f32 %v438_v5, %v351_v4 }
 0x128   :  { %1373 = vtanh.f32 %v439_v6  ;;  %v440_v10 = vmul.f32 0.5, %v439_v6 }
 0x12a   :  { %1375 = vtanh.f32 %v440_v10 }
 0x12b   :  { %1377 = vrcp.f32 %v1477_v29 }
 0x12e   :  { %v1374_v8 = vpop.eup %1373 }
 0x12f   :  { %451 = vrot.lane.b32.xlu2 %v1374_v8, %s1474_s21 }
 0x130   :  { %v1376_v11 = vpop.eup %1375 }
 0x131   :  { %v442_v12 = vadd.f32 1.0, %v1376_v11  ;;  %v1378_v30 = vpop.eup %1377 }
 0x132   :  { %v468_v31 = vmul.f32 32.0, %v1378_v30  ;;  %vm472_vm9 = vweird.f32 %v1378_v30 }
 0x133   :  { %v1624_v13 = vmul.f32 0.5, %v442_v12 }
 0x134   :  { %v469_v32 = vsub.f32 1.0, %v468_v31 }
 0x136   :  { %v470_v33 = vmul.f32 %v1378_v30, %v469_v32 }
 0x137   :  { %445 = vrot.lane.b32.xlu2 %v376_v9, %s1475_s22 }
 0x138   :  { %v471_v34 = vadd.f32 %v1378_v30, %v470_v33 }
 0x13a   :  { %v1644_v35 = vsel %vm472_vm9, %v1378_v30, %v471_v34 }
 0x189   :  { %v452_v14 = vpop.permute.xlu2 %451 }
 0x18a   :  { %v454_v15 = vmul.f32 %v452_v14, %v1624_v13 }
 0x18c   :  { %456 = vrot.lane.b32.xlu0 %v454_v15, %s1475_s22 }
 0x191   :  { %v446_v16 = vpop.permute.xlu2 %445 }
 0x192   :  { %v448_v17 = vmul.f32 %v446_v16, %v1624_v13 }
 0x1fe   :  { %v457_v18 = vpop.permute.xlu0 %456 }
 0x1ff   :  { %v459_v19 = vadd.f32 %v457_v18, %v448_v17 }
 0x201   :  { %461 = vrot.lane.b32.xlu1 %v459_v19, %s1476_s23  ;;  %v475_v20 = vmul.f32 %v459_v19, %v459_v19 }
 0x203   :  { %477 = vrot.lane.b32.xlu2 %v475_v20, %s1476_s23 }
 0x209   :  { %502 = vrot.lane.b32.xlu1 %v1365_v22, %s1475_s22 }
 0x211   :  { %508 = vrot.lane.b32.xlu1 %v1366_v24, %s1475_s22 }
 0x25d   :  { %v478_v21 = vpop.permute.xlu2 %477 }
 0x25e   :  { %v480_v23 = vsel %vm43_vm0, %v478_v21, 0.0 }
 0x25f   :  { %481 = vadd.xlane.f32.xlu0 %v480_v23 }
 0x273   :  { %v462_v26 = vpop.permute.xlu1 %461 }
 0x274   :  { %v464_v27 = vsel %vm43_vm0, %v462_v26, 0.0 }
 0x275   :  { %465 = vadd.xlane.f32.xlu2 %v464_v27 }
 0x27b   :  { %v1648_v47 = vpop.permute.xlu1 %502 }
 0x27d   :  { %136 = vadd.xlane.f32.xlu2 %v1641_v28 }
 0x283   :  { %v1650_v55 = vpop.permute.xlu1 %508 }
 0x2d2   :  { %v482_v36 = vpop.xlane.xlu0 %481 }
 0x2d3   :  { %v483_v39 = vmul.f32 %v482_v36, %v1644_v35 }
 0x2e8   :  { %v466_v37 = vpop.xlane.xlu2 %465 }
 0x2e9   :  { %v474_v38 = vmul.f32 %v1644_v35, %v466_v37 }
 0x2eb   :  { %v484_v40 = vmul.f32 %v474_v38, %v474_v38  ;;  %v487_v51 = vsub.f32 %v459_v19, %v474_v38 }
 0x2ed   :  { %v485_v41 = vsub.f32 %v483_v39, %v484_v40 }
 0x2ef   :  { %v486_v42 = vmax.f32 %v485_v41, 0.0 }
 0x2f0   :  { %v137_v9 = vpop.xlane.xlu2 %136 }
 0x2f1   :  { %v488_v43 = vadd.f32 1e-05, %v486_v42  ;;  %v158_v11 = vmul.f32 %v1585_v25, %v137_v9 }
 0x2f3   :  { %1379 = vrsqrt.f32 %v488_v43  ;;  %vm495_vm11 = vweird.f32 %v488_v43  ;;  %v222_v34 = vsub.f32 %v1641_v28, %v158_v11 }
 0x2f9   :  { %v1380_v44 = vpop.eup %1379 }
 0x2fa   :  { %v490_v45 = vmul.f32 %v1380_v44, %v488_v43  ;;  %vm496_vm10 = vweird.f32 %v1380_v44 }
 0x2fb   :  { %vm497_vm12 = vmor %vm495_vm11, %vm496_vm10 }
 0x2fc   :  { %v491_v46 = vmul.f32 %v1380_v44, %v490_v45 }
 0x2fe   :  { %v492_v48 = vmul.f32 0.5, %v491_v46 }
 0x300   :  { %v493_v49 = vsub.f32 1.5, %v492_v48 }
 0x302   :  { %v494_v50 = vmul.f32 %v1380_v44, %v493_v49 }
 0x304   :  { %v498_v52 = vsel %vm497_vm12, %v1380_v44, %v494_v50 }
 0x305   :  { %v499_v54 = vmul.f32 %v498_v52, %v487_v51 }
 0x307   :  { %v505_v56 = vmul.f32 %v1648_v47, %v499_v54 }
 0x309   :  { %v1654_v57 = vadd.f32 %v1650_v55, %v505_v56 }
 0x30b   :  { %1381 = vtanh.f32 %v1654_v57 }
 0x311   :  { %v1382_v60 = vpop.eup %1381 }
 0x312   :  { %514 = vrot.lane.b32.xlu1 %v1382_v60, %s1474_s21 }
 0x384   :  { %v515_v61 = vpop.permute.xlu1 %514 }
 0x385   :  { %v1659_v62 = vmul.f32 %v515_v61, %v1624_v13  ;;  %v198_v13 = vmul.f32 %v158_v11, %v158_v11 }
 0x387   :  { %v525_v2 = vpack.c.bf16 %v1659_v62, %v1659_v62 }
 0x389   :  { %527 = vrot.lane.b32.xlu1 %v525_v2, %s1475_s22 }
 0x3b3   :  { %175 = vadd.xlane.f32.xlu1 %v166_v3 }
 0x3fb   :  { %v528_v4 = vpop.permute.xlu1 %527 }
 0x3fc   :  { %1337 = vmatmul.msk.bf16.vlgmr.msra.gmra.mxu2 %vm43_vm0, %v528_v4 }
 0x3fd   :  { %1204 = vmatpush.bf16.msra.mxu2 %v1546_v0 }
 0x401   :  { %1205 = vmatpush.bf16.msra.mxu2 %v1563_v7 }
 0x426   :  { %v176_v10 = vpop.xlane.xlu1 %175 }
 0x427   :  { %v190_v12 = vmul.f32 %v176_v10, %v1585_v25 }
 0x429   :  { %v206_v14 = vsub.f32 %v190_v12, %v198_v13 }
 0x42b   :  { %v214_v15 = vmax.f32 %v206_v14, 0.0 }
 0x42d   :  { %v230_v16 = vadd.f32 1e-05, %v214_v15 }
 0x42f   :  { %1383 = vrsqrt.f32 %v230_v16  ;;  %vm253_vm14 = vweird.f32 %v230_v16 }
 0x435   :  { %v1384_v17 = vpop.eup %1383 }
 0x436   :  { %v248_v0 = vmul.f32 %v1384_v17, %v230_v16  ;;  %vm254_vm13 = vweird.f32 %v1384_v17 }
 0x437   :  { %vm255_vm15 = vmor %vm253_vm14, %vm254_vm13 }
 0x438   :  { %v249_v19 = vmul.f32 %v1384_v17, %v248_v0  ;;  %v48_v0 = vld [vmem:[%s1994_s0 + $0x10] sm:$0xff] }
 0x43a   :  { %v250_v24 = vmul.f32 0.5, %v249_v19 }
 0x43c   :  { %v251_v29 = vsub.f32 1.5, %v250_v24 }
 0x43e   :  { %v252_v30 = vmul.f32 %v1384_v17, %v251_v29 }
 0x440   :  { %v256_v32 = vsel %vm255_vm15, %v1384_v17, %v252_v30 }
 0x441   :  { %v318_v37 = vmul.f32 %v256_v32, %v222_v34 }
 0x443   :  { %v329_v40 = vmul.f32 %v1594_v53, %v318_v37 }
 0x445   :  { %v340_v44 = vadd.f32 %v1600_v58, %v329_v40 }
 0x447   :  { %v352_v48 = vadd.f32 %v1611_v63, %v340_v44 }
 0x47f   :  { %v541_v5 = vpop.f32.mrf.mxu2 }
 0x480   :  { %545 = vadd.xlane.f32.xlu2 %v541_v5  ;;  %v548_v6 = vmul.f32 %v541_v5, %v541_v5 }
 0x482   :  { %549 = vadd.xlane.f32.xlu0 %v548_v6 }
 0x487   :  { %v543_v8 = vpop.f32.mrf.mxu2 }
 0x4f3   :  { %v546_v18 = vpop.xlane.xlu2 %545 }
 0x4f4   :  { %v547_v7 = vmul.f32 %v546_v18, %v1585_v25  ;;  %v49_v18 = vld [vmem:[%s1994_s0 + $0x18] sm:$0xff] }
 0x4f5   :  { %v550_v20 = vpop.xlane.xlu0 %549  ;;  %v57_v19 = vpack.c.bf16 %v49_v18, %v49_v18 }
 0x4f6   :  { %v552_v21 = vmul.f32 %v547_v7, %v547_v7  ;;  %v551_v22 = vmul.f32 %v550_v20, %v1585_v25  ;;  %v555_v42 = vsub.f32 %v541_v5, %v547_v7  ;;  %v56_v7 = vpack.c.bf16 %v48_v0, %v48_v0 }
 0x4f8   :  { %v553_v23 = vsub.f32 %v551_v22, %v552_v21  ;;  %v74_v20 = vunpack.c.l.b16 %v56_v7  ;;  %v75_v21 = vunpack.c.l.b16 %v57_v19 }
 0x4fa   :  { %v554_v26 = vmax.f32 %v553_v23, 0.0  ;;  %v81_v22 = vpack.c.b16 %v75_v21, %v74_v20 }
 0x4fc   :  { %v556_v27 = vadd.f32 1e-05, %v554_v26  ;;  %1325 = vmatmul.msk.bf16.gmra.mxu0 %vm90_vm1, %v81_v22 }
 0x4fe   :  { %1385 = vrsqrt.f32 %v556_v27  ;;  %vm563_vm3 = vweird.f32 %v556_v27 }
 0x504   :  { %v1386_v31 = vpop.eup %1385 }
 0x505   :  { %v558_v33 = vmul.f32 %v1386_v31, %v556_v27  ;;  %vm564_vm2 = vweird.f32 %v1386_v31 }
 0x506   :  { %vm565_vm4 = vmor %vm563_vm3, %vm564_vm2 }
 0x507   :  { %v559_v36 = vmul.f32 %v1386_v31, %v558_v33 }
 0x509   :  { %v560_v38 = vmul.f32 0.5, %v559_v36 }
 0x50b   :  { %v561_v39 = vsub.f32 1.5, %v560_v38 }
 0x50d   :  { %v562_v41 = vmul.f32 %v1386_v31, %v561_v39 }
 0x50f   :  { %v566_v43 = vsel %vm565_vm4, %v1386_v31, %v562_v41 }
 0x510   :  { %v567_v45 = vmul.f32 %v566_v43, %v555_v42 }
 0x512   :  { %v568_v46 = vmul.f32 %v1605_v59, %v567_v45 }
 0x514   :  { %v569_v28 = vadd.f32 %v1616_v1, %v568_v46 }
 0x516   :  { %v570_v49 = vadd.f32 %v569_v28, %v352_v48 }
 0x518   :  { %1387 = vtanh.f32 %v570_v49  ;;  %v571_v51 = vmul.f32 0.5, %v570_v49 }
 0x51a   :  { %1389 = vtanh.f32 %v571_v51 }
 0x51e   :  { %v1388_v50 = vpop.eup %1387 }
 0x51f   :  { %578 = vrot.lane.b32.xlu2 %v1388_v50, %s1474_s21 }
 0x520   :  { %v1390_v52 = vpop.eup %1389 }
 0x521   :  { %v573_v54 = vadd.f32 1.0, %v1390_v52 }
 0x523   :  { %v574_v56 = vmul.f32 0.5, %v573_v54 }
 0x525   :  { %v575_v2 = vmul.f32 %v574_v56, %v1654_v57 }
 0x579   :  { %v579_v60 = vpop.permute.xlu2 %578  ;;  %v117_v41 = vpop.f32.mrf.mxu0 }
 0x57a   :  { %v581_v61 = vmul.f32 %v579_v60, %v574_v56  ;;  %v167_v42 = vmul.f32 %v117_v41, %v117_v41 }
 0x57c   :  { %583 = vrot.lane.b32.xlu0 %v581_v61, %s1475_s22 }
 0x5ee   :  { %v584_v3 = vpop.permute.xlu0 %583 }
 0x5ef   :  { %v586_v4 = vadd.f32 %v584_v3, %v575_v2 }
 0x5f1   :  { %588 = vrot.lane.b32.xlu2 %v586_v4, %s1476_s23  ;;  %v595_v5 = vmul.f32 %v586_v4, %v586_v4 }
 0x5f3   :  { %597 = vrot.lane.b32.xlu0 %v595_v5, %s1476_s23 }
 0x64b   :  { %v589_v6 = vpop.permute.xlu2 %588 }
 0x64c   :  { %v591_v8 = vsel %vm43_vm0, %v589_v6, 0.0 }
 0x64d   :  { %592 = vadd.xlane.f32.xlu2 %v591_v8 }
 0x655   :  { %177 = vadd.xlane.f32.xlu2 %v167_v42 }
 0x665   :  { %v598_v9 = vpop.permute.xlu0 %597 }
 0x666   :  { %v600_v10 = vsel %vm43_vm0, %v598_v9, 0.0 }
 0x667   :  { %601 = vadd.xlane.f32.xlu0 %v600_v10 }
 0x6c0   :  { %v593_v11 = vpop.xlane.xlu2 %592 }
 0x6c1   :  { %v594_v12 = vmul.f32 %v593_v11, %v1644_v35 }
 0x6c3   :  { %v604_v57 = vmul.f32 %v594_v12, %v594_v12  ;;  %v607_v31 = vsub.f32 %v586_v4, %v594_v12 }
 0x6c8   :  { %v178_v49 = vpop.xlane.xlu2 %177 }
 0x6c9   :  { %v191_v51 = vmul.f32 %v178_v49, %v1585_v25 }
 0x6da   :  { %v602_v13 = vpop.xlane.xlu0 %601 }
 0x6db   :  { %v603_v14 = vmul.f32 %v602_v13, %v1644_v35 }
 0x6dd   :  { %v605_v15 = vsub.f32 %v603_v14, %v604_v57 }
 0x6df   :  { %v606_v16 = vmax.f32 %v605_v15, 0.0 }
 0x6e1   :  { %v608_v17 = vadd.f32 1e-05, %v606_v16 }
 0x6e3   :  { %1391 = vrsqrt.f32 %v608_v17  ;;  %vm615_vm6 = vweird.f32 %v608_v17 }
 0x6e9   :  { %v1392_v23 = vpop.eup %1391 }
 0x6ea   :  { %v610_v24 = vmul.f32 %v1392_v23, %v608_v17  ;;  %vm616_vm5 = vweird.f32 %v1392_v23 }
 0x6eb   :  { %vm617_vm7 = vmor %vm615_vm6, %vm616_vm5 }
 0x6ec   :  { %v611_v26 = vmul.f32 %v1392_v23, %v610_v24 }
 0x6ee   :  { %v612_v27 = vmul.f32 0.5, %v611_v26 }
 0x6f0   :  { %v613_v29 = vsub.f32 1.5, %v612_v27 }
 0x6f2   :  { %v614_v30 = vmul.f32 %v1392_v23, %v613_v29 }
 0x6f4   :  { %v618_v32 = vsel %vm617_vm7, %v1392_v23, %v614_v30 }
 0x6f5   :  { %v619_v33 = vmul.f32 %v618_v32, %v607_v31 }
 0x6f7   :  { %v620_v34 = vmul.f32 %v619_v33, %v1648_v47 }
 0x6f9   :  { %v1697_v36 = vadd.f32 %v620_v34, %v1650_v55 }
 0x6fb   :  { %1393 = vtanh.f32 %v1697_v36 }
 0x701   :  { %v1394_v37 = vpop.eup %1393 }
 0x702   :  { %624 = vrot.lane.b32.xlu1 %v1394_v37, %s1474_s21 }
 0x774   :  { %v625_v38 = vpop.permute.xlu1 %624 }
 0x775   :  { %v1701_v39 = vmul.f32 %v625_v38, %v574_v56 }
 0x777   :  { %v636_v40 = vpack.c.bf16 %v1701_v39, %v1701_v39 }
 0x779   :  { %638 = vrot.lane.b32.xlu1 %v636_v40, %s1475_s22 }
 0x7a3   :  { %138 = vadd.xlane.f32.xlu1 %v117_v41 }
 0x7eb   :  { %v639_v43 = vpop.permute.xlu1 %638 }
 0x7ec   :  { %1339 = vmatmul.msk.bf16.vlgmr.msra.gmra.mxu3 %vm43_vm0, %v639_v43 }
 0x816   :  { %v139_v48 = vpop.xlane.xlu1 %138 }
 0x817   :  { %v159_v28 = vmul.f32 %v1585_v25, %v139_v48 }
 0x819   :  { %v199_v50 = vmul.f32 %v159_v28, %v159_v28  ;;  %v223_v15 = vsub.f32 %v117_v41, %v159_v28 }
 0x81b   :  { %v207_v52 = vsub.f32 %v191_v51, %v199_v50  ;;  %v1723_v50 = vpop.f32.mrf.mxu0 }
 0x81d   :  { %v215_v54 = vmax.f32 %v207_v52, 0.0 }
 0x81f   :  { %v231_v56 = vadd.f32 1e-05, %v215_v54 }
 0x821   :  { %1395 = vrsqrt.f32 %v231_v56  ;;  %vm263_vm8 = vweird.f32 %v231_v56 }
 0x827   :  { %v1396_v60 = vpop.eup %1395 }
 0x828   :  { %v258_v61 = vmul.f32 %v1396_v60, %v231_v56  ;;  %vm264_vm9 = vweird.f32 %v1396_v60 }
 0x829   :  { %vm265_vm10 = vmor %vm263_vm8, %vm264_vm9 }
 0x82a   :  { %v259_v4 = vmul.f32 %v1396_v60, %v258_v61 }
 0x82c   :  { %v260_v10 = vmul.f32 0.5, %v259_v4 }
 0x82e   :  { %v261_v13 = vsub.f32 1.5, %v260_v10 }
 0x830   :  { %v262_v57 = vmul.f32 %v1396_v60, %v261_v13 }
 0x832   :  { %v266_v16 = vsel %vm265_vm10, %v1396_v60, %v262_v57 }
 0x833   :  { %v319_v18 = vmul.f32 %v266_v16, %v223_v15 }
 0x835   :  { %v330_v20 = vmul.f32 %v1594_v53, %v319_v18 }
 0x837   :  { %v341_v24 = vadd.f32 %v1600_v58, %v330_v20 }
 0x839   :  { %v353_v29 = vadd.f32 %v1611_v63, %v341_v24 }
 0x86f   :  { %v652_v44 = vpop.f32.mrf.mxu3 }
 0x870   :  { %656 = vadd.xlane.f32.xlu0 %v652_v44  ;;  %v659_v45 = vmul.f32 %v652_v44, %v652_v44 }
 0x872   :  { %660 = vadd.xlane.f32.xlu2 %v659_v45 }
 0x877   :  { %v654_v46 = vpop.f32.mrf.mxu3 }
 0x8e3   :  { %v657_v2 = vpop.xlane.xlu0 %656 }
 0x8e4   :  { %v658_v3 = vmul.f32 %v657_v2, %v1585_v25 }
 0x8e5   :  { %v661_v5 = vpop.xlane.xlu2 %660 }
 0x8e6   :  { %v663_v6 = vmul.f32 %v658_v3, %v658_v3  ;;  %v662_v8 = vmul.f32 %v661_v5, %v1585_v25  ;;  %v666_v22 = vsub.f32 %v652_v44, %v658_v3 }
 0x8e8   :  { %v664_v9 = vsub.f32 %v662_v8, %v663_v6 }
 0x8ea   :  { %v665_v11 = vmax.f32 %v664_v9, 0.0 }
 0x8ec   :  { %v667_v12 = vadd.f32 1e-05, %v665_v11 }
 0x8ee   :  { %1397 = vrsqrt.f32 %v667_v12  ;;  %vm674_vm12 = vweird.f32 %v667_v12 }
 0x8f4   :  { %v1398_v14 = vpop.eup %1397 }
 0x8f5   :  { %v669_v17 = vmul.f32 %v1398_v14, %v667_v12  ;;  %vm675_vm11 = vweird.f32 %v1398_v14 }
 0x8f6   :  { %vm676_vm13 = vmor %vm674_vm12, %vm675_vm11 }
 0x8f7   :  { %v670_v0 = vmul.f32 %v1398_v14, %v669_v17 }
 0x8f9   :  { %v671_v7 = vmul.f32 0.5, %v670_v0 }
 0x8fb   :  { %v672_v19 = vsub.f32 1.5, %v671_v7 }
 0x8fd   :  { %v673_v21 = vmul.f32 %v1398_v14, %v672_v19 }
 0x8ff   :  { %v677_v23 = vsel %vm676_vm13, %v1398_v14, %v673_v21 }
 0x900   :  { %v678_v26 = vmul.f32 %v677_v23, %v666_v22 }
 0x902   :  { %v679_v27 = vmul.f32 %v1605_v59, %v678_v26 }
 0x904   :  { %v680_v30 = vadd.f32 %v1616_v1, %v679_v27 }
 0x906   :  { %v681_v31 = vadd.f32 %v680_v30, %v353_v29 }
 0x908   :  { %1399 = vtanh.f32 %v681_v31  ;;  %v682_v33 = vmul.f32 0.5, %v681_v31 }
 0x90a   :  { %1401 = vtanh.f32 %v682_v33 }
 0x90e   :  { %v1400_v32 = vpop.eup %1399 }
 0x90f   :  { %689 = vrot.lane.b32.xlu0 %v1400_v32, %s1474_s21 }
 0x910   :  { %v1402_v34 = vpop.eup %1401 }
 0x911   :  { %v684_v37 = vadd.f32 1.0, %v1402_v34 }
 0x913   :  { %v685_v38 = vmul.f32 0.5, %v684_v37 }
 0x915   :  { %v686_v42 = vmul.f32 %v685_v38, %v1697_v36  ;;  %v168_v36 = vmul.f32 %v1723_v50, %v1723_v50 }
 0x981   :  { %v690_v40 = vpop.permute.xlu0 %689 }
 0x982   :  { %v692_v41 = vmul.f32 %v690_v40, %v685_v38 }
 0x984   :  { %694 = vrot.lane.b32.xlu2 %v692_v41, %s1475_s22 }
 0x9de   :  { %v695_v43 = vpop.permute.xlu2 %694 }
 0x9df   :  { %v697_v44 = vadd.f32 %v695_v43, %v686_v42 }
 0x9e1   :  { %699 = vrot.lane.b32.xlu0 %v697_v44, %s1476_s23  ;;  %v706_v45 = vmul.f32 %v697_v44, %v697_v44 }
 0x9e3   :  { %708 = vrot.lane.b32.xlu1 %v706_v45, %s1476_s23 }
 0xa53   :  { %v700_v46 = vpop.permute.xlu0 %699 }
 0xa54   :  { %v702_v48 = vsel %vm43_vm0, %v700_v46, 0.0 }
 0xa55   :  { %703 = vadd.xlane.f32.xlu0 %v702_v48  ;;  %v709_v28 = vpop.permute.xlu1 %708 }
 0xa56   :  { %v711_v49 = vsel %vm43_vm0, %v709_v28, 0.0 }
 0xa57   :  { %712 = vadd.xlane.f32.xlu2 %v711_v49 }
 0xa5d   :  { %179 = vadd.xlane.f32.xlu0 %v168_v36 }
 0xac8   :  { %v704_v51 = vpop.xlane.xlu0 %703 }
 0xac9   :  { %v705_v52 = vmul.f32 %v704_v51, %v1644_v35 }
 0xaca   :  { %v713_v54 = vpop.xlane.xlu2 %712 }
 0xacb   :  { %v715_v56 = vmul.f32 %v705_v52, %v705_v52  ;;  %v714_v60 = vmul.f32 %v713_v54, %v1644_v35  ;;  %v718_v11 = vsub.f32 %v697_v44, %v705_v52 }
 0xacd   :  { %v716_v61 = vsub.f32 %v714_v60, %v715_v56 }
 0xacf   :  { %v717_v2 = vmax.f32 %v716_v61, 0.0 }
 0xad0   :  { %v180_v23 = vpop.xlane.xlu0 %179 }
 0xad1   :  { %v719_v3 = vadd.f32 1e-05, %v717_v2  ;;  %v192_v26 = vmul.f32 %v180_v23, %v1585_v25 }
 0xad3   :  { %1403 = vrsqrt.f32 %v719_v3  ;;  %vm726_vm15 = vweird.f32 %v719_v3 }
 0xad9   :  { %v1404_v4 = vpop.eup %1403 }
 0xada   :  { %v721_v5 = vmul.f32 %v1404_v4, %v719_v3  ;;  %vm727_vm14 = vweird.f32 %v1404_v4 }
 0xadb   :  { %vm728_vm2 = vmor %vm726_vm15, %vm727_vm14 }
 0xadc   :  { %v722_v6 = vmul.f32 %v1404_v4, %v721_v5 }
 0xade   :  { %v723_v8 = vmul.f32 0.5, %v722_v6 }
 0xae0   :  { %v724_v9 = vsub.f32 1.5, %v723_v8 }
 0xae2   :  { %v725_v10 = vmul.f32 %v1404_v4, %v724_v9 }
 0xae4   :  { %v729_v12 = vsel %vm728_vm2, %v1404_v4, %v725_v10 }
 0xae5   :  { %v730_v13 = vmul.f32 %v729_v12, %v718_v11 }
 0xae7   :  { %v731_v57 = vmul.f32 %v730_v13, %v1648_v47 }
 0xae9   :  { %v1731_v14 = vadd.f32 %v731_v57, %v1650_v55 }
 0xaeb   :  { %1405 = vtanh.f32 %v1731_v14 }
 0xaf1   :  { %v1406_v15 = vpop.eup %1405 }
 0xaf2   :  { %735 = vrot.lane.b32.xlu1 %v1406_v15, %s1474_s21 }
 0xb64   :  { %v736_v16 = vpop.permute.xlu1 %735 }
 0xb65   :  { %v1735_v17 = vmul.f32 %v736_v16, %v685_v38 }
 0xb67   :  { %v747_v0 = vpack.c.bf16 %v1735_v17, %v1735_v17 }
 0xb69   :  { %749 = vrot.lane.b32.xlu1 %v747_v0, %s1475_s22 }
 0xb93   :  { %140 = vadd.xlane.f32.xlu1 %v1723_v50 }
 0xbdb   :  { %v750_v18 = vpop.permute.xlu1 %749 }
 0xbdc   :  { %1341 = vmatmul.msk.bf16.vlgmr.msrb.gmra.mxu1 %vm43_vm0, %v750_v18 }
 0xc06   :  { %v141_v21 = vpop.xlane.xlu1 %140 }
 0xc07   :  { %v160_v22 = vmul.f32 %v1585_v25, %v141_v21 }
 0xc09   :  { %v200_v24 = vmul.f32 %v160_v22, %v160_v22  ;;  %v224_v51 = vsub.f32 %v1723_v50, %v160_v22 }
 0xc0b   :  { %v208_v27 = vsub.f32 %v192_v26, %v200_v24 }
 0xc0d   :  { %v216_v29 = vmax.f32 %v208_v27, 0.0 }
 0xc0f   :  { %v232_v30 = vadd.f32 1e-05, %v216_v29 }
 0xc11   :  { %1407 = vrsqrt.f32 %v232_v30  ;;  %vm273_vm4 = vweird.f32 %v232_v30 }
 0xc17   :  { %v1408_v31 = vpop.eup %1407 }
 0xc18   :  { %v268_v32 = vmul.f32 %v1408_v31, %v232_v30  ;;  %vm274_vm3 = vweird.f32 %v1408_v31 }
 0xc19   :  { %vm275_vm5 = vmor %vm273_vm4, %vm274_vm3 }
 0xc1a   :  { %v269_v37 = vmul.f32 %v1408_v31, %v268_v32 }
 0xc1c   :  { %v270_v43 = vmul.f32 0.5, %v269_v37  ;;  %v51_v37 = vld [vmem:[%s1994_s0 + $0x28] sm:$0xff] }
 0xc1e   :  { %v271_v46 = vsub.f32 1.5, %v270_v43 }
 0xc20   :  { %v272_v48 = vmul.f32 %v1408_v31, %v271_v46 }
 0xc22   :  { %v276_v49 = vsel %vm275_vm5, %v1408_v31, %v272_v48 }
 0xc23   :  { %v320_v54 = vmul.f32 %v276_v49, %v224_v51 }
 0xc25   :  { %v331_v61 = vmul.f32 %v1594_v53, %v320_v54 }
 0xc27   :  { %v342_v5 = vadd.f32 %v1600_v58, %v331_v61 }
 0xc29   :  { %v354_v9 = vadd.f32 %v1611_v63, %v342_v5 }
 0xc59   :  { %v763_v7 = vpop.f32.mrf.mxu1 }
 0xc5a   :  { %767 = vadd.xlane.f32.xlu2 %v763_v7  ;;  %v770_v19 = vmul.f32 %v763_v7, %v763_v7 }
 0xc5c   :  { %771 = vadd.xlane.f32.xlu0 %v770_v19 }
 0xc61   :  { %v765_v20 = vpop.f32.mrf.mxu1 }
 0xccd   :  { %v768_v33 = vpop.xlane.xlu2 %767 }
 0xcce   :  { %v769_v34 = vmul.f32 %v768_v33, %v1585_v25 }
 0xccf   :  { %v772_v38 = vpop.xlane.xlu0 %771 }
 0xcd0   :  { %v774_v40 = vmul.f32 %v769_v34, %v769_v34  ;;  %v773_v41 = vmul.f32 %v772_v38, %v1585_v25  ;;  %v777_v3 = vsub.f32 %v763_v7, %v769_v34  ;;  %v50_v34 = vld [vmem:[%s1994_s0 + $0x20] sm:$0xff] }
 0xcd1   :  { %v58_v38 = vpack.c.bf16 %v50_v34, %v50_v34 }
 0xcd2   :  { %v775_v42 = vsub.f32 %v773_v41, %v774_v40  ;;  %v59_v40 = vpack.c.bf16 %v51_v37, %v51_v37 }
 0xcd3   :  { %v76_v41 = vunpack.c.l.b16 %v58_v38 }
 0xcd4   :  { %v776_v44 = vmax.f32 %v775_v42, 0.0  ;;  %v77_v42 = vunpack.c.l.b16 %v59_v40 }
 0xcd6   :  { %v778_v45 = vadd.f32 1e-05, %v776_v44  ;;  %v82_v43 = vpack.c.b16 %v77_v42, %v76_v41 }
 0xcd8   :  { %1409 = vrsqrt.f32 %v778_v45  ;;  %vm785_vm7 = vweird.f32 %v778_v45  ;;  %1326 = vmatmul.msk.bf16.gmra.mxu0 %vm90_vm1, %v82_v43 }
 0xcde   :  { %v1410_v28 = vpop.eup %1409 }
 0xcdf   :  { %v780_v36 = vmul.f32 %v1410_v28, %v778_v45  ;;  %vm786_vm6 = vweird.f32 %v1410_v28 }
 0xce0   :  { %vm787_vm8 = vmor %vm785_vm7, %vm786_vm6 }
 0xce1   :  { %v781_v52 = vmul.f32 %v1410_v28, %v780_v36 }
 0xce3   :  { %v782_v56 = vmul.f32 0.5, %v781_v52 }
 0xce5   :  { %v783_v60 = vsub.f32 1.5, %v782_v56 }
 0xce7   :  { %v784_v2 = vmul.f32 %v1410_v28, %v783_v60 }
 0xce9   :  { %v788_v4 = vsel %vm787_vm8, %v1410_v28, %v784_v2 }
 0xcea   :  { %v789_v6 = vmul.f32 %v788_v4, %v777_v3 }
 0xcec   :  { %v790_v8 = vmul.f32 %v1605_v59, %v789_v6 }
 0xcee   :  { %v791_v50 = vadd.f32 %v1616_v1, %v790_v8 }
 0xcf0   :  { %v792_v10 = vadd.f32 %v791_v50, %v354_v9 }
 0xcf2   :  { %1411 = vtanh.f32 %v792_v10  ;;  %v793_v12 = vmul.f32 0.5, %v792_v10 }
 0xcf4   :  { %1413 = vtanh.f32 %v793_v12 }
 0xcf8   :  { %v1412_v11 = vpop.eup %1411 }
 0xcf9   :  { %800 = vrot.lane.b32.xlu2 %v1412_v11, %s1474_s21 }
 0xcfa   :  { %v1414_v13 = vpop.eup %1413 }
 0xcfb   :  { %v795_v57 = vadd.f32 1.0, %v1414_v13 }
 0xcfd   :  { %v796_v15 = vmul.f32 0.5, %v795_v57 }
 0xcff   :  { %v797_v18 = vmul.f32 %v796_v15, %v1731_v14 }
 0xd53   :  { %v801_v16 = vpop.permute.xlu2 %800 }
 0xd54   :  { %v803_v0 = vmul.f32 %v801_v16, %v796_v15 }
 0xd55   :  { %v122_v61 = vpop.f32.mrf.mxu0 }
 0xd56   :  { %805 = vrot.lane.b32.xlu0 %v803_v0, %s1475_s22  ;;  %v169_v5 = vmul.f32 %v122_v61, %v122_v61 }
 0xdc8   :  { %v806_v7 = vpop.permute.xlu0 %805 }
 0xdc9   :  { %v808_v19 = vadd.f32 %v806_v7, %v797_v18 }
 0xdcb   :  { %810 = vrot.lane.b32.xlu2 %v808_v19, %s1476_s23  ;;  %v817_v20 = vmul.f32 %v808_v19, %v808_v19 }
 0xdcd   :  { %819 = vrot.lane.b32.xlu0 %v817_v20, %s1476_s23 }
 0xe25   :  { %v811_v21 = vpop.permute.xlu2 %810 }
 0xe26   :  { %v813_v22 = vsel %vm43_vm0, %v811_v21, 0.0 }
 0xe27   :  { %814 = vadd.xlane.f32.xlu1 %v813_v22 }
 0xe3f   :  { %v820_v23 = vpop.permute.xlu0 %819 }
 0xe40   :  { %v822_v24 = vsel %vm43_vm0, %v820_v23, 0.0 }
 0xe41   :  { %823 = vadd.xlane.f32.xlu2 %v822_v24 }
 0xe9a   :  { %v815_v26 = vpop.xlane.xlu1 %814 }
 0xe9b   :  { %v816_v27 = vmul.f32 %v815_v26, %v1644_v35 }
 0xe9d   :  { %v826_v14 = vmul.f32 %v816_v27, %v816_v27  ;;  %v829_v36 = vsub.f32 %v808_v19, %v816_v27 }
 0xeb4   :  { %v824_v29 = vpop.xlane.xlu2 %823 }
 0xeb5   :  { %v825_v30 = vmul.f32 %v824_v29, %v1644_v35 }
 0xeb7   :  { %v827_v31 = vsub.f32 %v825_v30, %v826_v14 }
 0xeb9   :  { %v828_v32 = vmax.f32 %v827_v31, 0.0 }
 0xebb   :  { %v830_v33 = vadd.f32 1e-05, %v828_v32 }
 0xebd   :  { %1415 = vrsqrt.f32 %v830_v33  ;;  %vm837_vm10 = vweird.f32 %v830_v33 }
 0xec3   :  { %v1416_v44 = vpop.eup %1415 }
 0xec4   :  { %v832_v45 = vmul.f32 %v1416_v44, %v830_v33  ;;  %vm838_vm9 = vweird.f32 %v1416_v44 }
 0xec5   :  { %vm839_vm11 = vmor %vm837_vm10, %vm838_vm9 }
 0xec6   :  { %v833_v46 = vmul.f32 %v1416_v44, %v832_v45 }
 0xec8   :  { %v834_v48 = vmul.f32 0.5, %v833_v46 }
 0xeca   :  { %v835_v28 = vsub.f32 1.5, %v834_v48 }
 0xecc   :  { %v836_v49 = vmul.f32 %v1416_v44, %v835_v28 }
 0xece   :  { %v840_v51 = vsel %vm839_vm11, %v1416_v44, %v836_v49 }
 0xecf   :  { %v841_v52 = vmul.f32 %v840_v51, %v829_v36 }
 0xed1   :  { %v842_v54 = vmul.f32 %v841_v52, %v1648_v47 }
 0xed3   :  { %v1770_v56 = vadd.f32 %v842_v54, %v1650_v55 }
 0xed5   :  { %1417 = vtanh.f32 %v1770_v56 }
 0xedb   :  { %v1418_v60 = vpop.eup %1417 }
 0xedc   :  { %846 = vrot.lane.b32.xlu0 %v1418_v60, %s1474_s21 }
 0xf06   :  { %142 = vadd.xlane.f32.xlu0 %v122_v61 }
 0xf4e   :  { %v847_v2 = vpop.permute.xlu0 %846 }
 0xf4f   :  { %v1774_v3 = vmul.f32 %v847_v2, %v796_v15 }
 0xf51   :  { %v858_v4 = vpack.c.bf16 %v1774_v3, %v1774_v3 }
 0xf53   :  { %860 = vrot.lane.b32.xlu1 %v858_v4, %s1475_s22 }
 0xf79   :  { %v143_v10 = vpop.xlane.xlu0 %142 }
 0xf7a   :  { %v161_v11 = vmul.f32 %v1585_v25, %v143_v10  ;;  %v1796_v10 = vpop.f32.mrf.mxu0 }
 0xf7c   :  { %v201_v13 = vmul.f32 %v161_v11, %v161_v11  ;;  %v225_v33 = vsub.f32 %v122_v61, %v161_v11 }
 0xf7d   :  { %181 = vadd.xlane.f32.xlu1 %v169_v5 }
 0xfc5   :  { %v861_v6 = vpop.permute.xlu1 %860 }
 0xfc6   :  { %1343 = vmatmul.msk.bf16.vlgmr.msrb.gmra.mxu2 %vm43_vm0, %v861_v6 }
 0xff0   :  { %v182_v12 = vpop.xlane.xlu1 %181 }
 0xff1   :  { %v193_v57 = vmul.f32 %v182_v12, %v1585_v25 }
 0xff3   :  { %v209_v15 = vsub.f32 %v193_v57, %v201_v13 }
 0xff5   :  { %v217_v16 = vmax.f32 %v209_v15, 0.0 }
 0xff7   :  { %v233_v0 = vadd.f32 1e-05, %v217_v16 }
 0xff9   :  { %1419 = vrsqrt.f32 %v233_v0  ;;  %vm283_vm12 = vweird.f32 %v233_v0 }
 0xfff   :  { %v1420_v7 = vpop.eup %1419 }
0x1000   :  { %v278_v19 = vmul.f32 %v1420_v7, %v233_v0  ;;  %vm284_vm13 = vweird.f32 %v1420_v7 }
0x1001   :  { %vm285_vm14 = vmor %vm283_vm12, %vm284_vm13 }
0x1002   :  { %v279_v21 = vmul.f32 %v1420_v7, %v278_v19 }
0x1004   :  { %v280_v27 = vmul.f32 0.5, %v279_v21 }
0x1006   :  { %v281_v30 = vsub.f32 1.5, %v280_v27 }
0x1008   :  { %v282_v31 = vmul.f32 %v1420_v7, %v281_v30 }
0x100a   :  { %v286_v34 = vsel %vm285_vm14, %v1420_v7, %v282_v31 }
0x100b   :  { %v321_v40 = vmul.f32 %v286_v34, %v225_v33 }
0x100d   :  { %v332_v43 = vmul.f32 %v1594_v53, %v321_v40 }
0x100f   :  { %v343_v48 = vadd.f32 %v1600_v58, %v332_v43 }
0x1011   :  { %v355_v36 = vadd.f32 %v1611_v63, %v343_v48 }
0x1049   :  { %v874_v8 = vpop.f32.mrf.mxu2 }
0x104a   :  { %878 = vadd.xlane.f32.xlu2 %v874_v8  ;;  %v881_v9 = vmul.f32 %v874_v8, %v874_v8 }
0x1051   :  { %v876_v50 = vpop.f32.mrf.mxu2 }
0x1052   :  { %882 = vadd.xlane.f32.xlu2 %v881_v9 }
0x10bd   :  { %v879_v18 = vpop.xlane.xlu2 %878 }
0x10be   :  { %v880_v20 = vmul.f32 %v879_v18, %v1585_v25 }
0x10c0   :  { %v885_v23 = vmul.f32 %v880_v20, %v880_v20  ;;  %v888_v45 = vsub.f32 %v874_v8, %v880_v20 }
0x10c5   :  { %v883_v22 = vpop.xlane.xlu2 %882 }
0x10c6   :  { %v884_v24 = vmul.f32 %v883_v22, %v1585_v25 }
0x10c8   :  { %v886_v26 = vsub.f32 %v884_v24, %v885_v23 }
0x10ca   :  { %v887_v29 = vmax.f32 %v886_v26, 0.0 }
0x10cc   :  { %v889_v14 = vadd.f32 1e-05, %v887_v29 }
0x10ce   :  { %1421 = vrsqrt.f32 %v889_v14  ;;  %vm896_vm2 = vweird.f32 %v889_v14 }
0x10d4   :  { %v1422_v32 = vpop.eup %1421 }
0x10d5   :  { %v891_v37 = vmul.f32 %v1422_v32, %v889_v14  ;;  %vm897_vm15 = vweird.f32 %v1422_v32 }
0x10d6   :  { %vm898_vm3 = vmor %vm896_vm2, %vm897_vm15 }
0x10d7   :  { %v892_v38 = vmul.f32 %v1422_v32, %v891_v37 }
0x10d9   :  { %v893_v41 = vmul.f32 0.5, %v892_v38 }
0x10db   :  { %v894_v42 = vsub.f32 1.5, %v893_v41 }
0x10dd   :  { %v895_v44 = vmul.f32 %v1422_v32, %v894_v42 }
0x10df   :  { %v899_v46 = vsel %vm898_vm3, %v1422_v32, %v895_v44 }
0x10e0   :  { %v900_v28 = vmul.f32 %v899_v46, %v888_v45 }
0x10e2   :  { %v901_v49 = vmul.f32 %v1605_v59, %v900_v28 }
0x10e4   :  { %v902_v51 = vadd.f32 %v1616_v1, %v901_v49 }
0x10e6   :  { %v903_v52 = vadd.f32 %v902_v51, %v355_v36 }
0x10e8   :  { %1423 = vtanh.f32 %v903_v52  ;;  %v904_v53 = vmul.f32 0.5, %v903_v52 }
0x10ea   :  { %1425 = vtanh.f32 %v904_v53 }
0x10ee   :  { %v1424_v54 = vpop.eup %1423 }
0x10ef   :  { %911 = vrot.lane.b32.xlu0 %v1424_v54, %s1474_s21 }
0x10f0   :  { %v1426_v60 = vpop.eup %1425 }
0x10f1   :  { %v906_v61 = vadd.f32 1.0, %v1426_v60 }
0x10f3   :  { %v907_v2 = vmul.f32 0.5, %v906_v61 }
0x10f5   :  { %v908_v58 = vmul.f32 %v907_v2, %v1770_v56  ;;  %v170_v56 = vmul.f32 %v1796_v10, %v1796_v10 }
0x1161   :  { %v912_v4 = vpop.permute.xlu0 %911 }
0x1162   :  { %v914_v5 = vmul.f32 %v912_v4, %v907_v2 }
0x1164   :  { %916 = vrot.lane.b32.xlu2 %v914_v5, %s1475_s22 }
0x11be   :  { %v917_v59 = vpop.permute.xlu2 %916 }
0x11bf   :  { %v919_v63 = vadd.f32 %v917_v59, %v908_v58 }
0x11c1   :  { %921 = vrot.lane.b32.xlu0 %v919_v63, %s1476_s23  ;;  %v928_v1 = vmul.f32 %v919_v63, %v919_v63 }
0x11c3   :  { %930 = vrot.lane.b32.xlu1 %v928_v1, %s1476_s23 }
0x1233   :  { %v922_v6 = vpop.permute.xlu0 %921 }
0x1234   :  { %v924_v8 = vsel %vm43_vm0, %v922_v6, 0.0 }
0x1235   :  { %925 = vadd.xlane.f32.xlu0 %v924_v8  ;;  %v931_v9 = vpop.permute.xlu1 %930 }
0x1236   :  { %v933_v50 = vsel %vm43_vm0, %v931_v9, 0.0 }
0x1237   :  { %934 = vadd.xlane.f32.xlu2 %v933_v50 }
0x123f   :  { %183 = vadd.xlane.f32.xlu2 %v170_v56 }
0x12a8   :  { %v926_v11 = vpop.xlane.xlu0 %925 }
0x12a9   :  { %v927_v12 = vmul.f32 %v926_v11, %v1644_v35 }
0x12aa   :  { %v935_v13 = vpop.xlane.xlu2 %934 }
0x12ab   :  { %v937_v57 = vmul.f32 %v927_v12, %v927_v12  ;;  %v936_v15 = vmul.f32 %v935_v13, %v1644_v35  ;;  %v940_v24 = vsub.f32 %v919_v63, %v927_v12  ;;  %v1823_v13 = vld [vmem:[%s1995_s5] ss:$0 sm:$0xff] }
0x12ad   :  { %v938_v16 = vsub.f32 %v936_v15, %v937_v57 }
0x12af   :  { %v939_v0 = vmax.f32 %v938_v16, 0.0 }
0x12b1   :  { %v941_v18 = vadd.f32 1e-05, %v939_v0 }
0x12b2   :  { %v184_v43 = vpop.xlane.xlu2 %183 }
0x12b3   :  { %1427 = vrsqrt.f32 %v941_v18  ;;  %vm948_vm5 = vweird.f32 %v941_v18  ;;  %v194_v45 = vmul.f32 %v184_v43, %v1585_v25 }
0x12b9   :  { %v1428_v7 = vpop.eup %1427 }
0x12ba   :  { %v943_v19 = vmul.f32 %v1428_v7, %v941_v18  ;;  %vm949_vm4 = vweird.f32 %v1428_v7 }
0x12bb   :  { %vm950_vm6 = vmor %vm948_vm5, %vm949_vm4 }
0x12bc   :  { %v944_v20 = vmul.f32 %v1428_v7, %v943_v19  ;;  %v1835_v19 = vld [vmem:[%s1997_s3] ss:$0 sm:$0xff] }
0x12be   :  { %v945_v21 = vmul.f32 0.5, %v944_v20 }
0x12c0   :  { %v946_v22 = vsub.f32 1.5, %v945_v21  ;;  %v1841_v21 = vld [vmem:[%s1999_s7] ss:$0 sm:$0xff] }
0x12c2   :  { %v947_v23 = vmul.f32 %v1428_v7, %v946_v22 }
0x12c4   :  { %v951_v26 = vsel %vm950_vm6, %v1428_v7, %v947_v23  ;;  %v1847_v23 = vld [vmem:[%s1998_s4] ss:$0 sm:$0xff] }
0x12c5   :  { %v952_v27 = vmul.f32 %v951_v26, %v940_v24 }
0x12c7   :  { %v953_v29 = vmul.f32 %v952_v27, %v1648_v47 }
0x12c9   :  { %v1804_v14 = vadd.f32 %v953_v29, %v1650_v55 }
0x12cb   :  { %1429 = vtanh.f32 %v1804_v14 }
0x12d1   :  { %v1430_v30 = vpop.eup %1429 }
0x12d2   :  { %957 = vrot.lane.b32.xlu1 %v1430_v30, %s1474_s21 }
0x1344   :  { %v958_v31 = vpop.permute.xlu1 %957 }
0x1345   :  { %v1808_v32 = vmul.f32 %v958_v31, %v907_v2 }
0x1347   :  { %v969_v33 = vpack.c.bf16 %v1808_v32, %v1808_v32 }
0x1349   :  { %971 = vrot.lane.b32.xlu1 %v969_v33, %s1475_s22 }
0x1373   :  { %144 = vadd.xlane.f32.xlu1 %v1796_v10 }
0x13bb   :  { %v972_v34 = vpop.permute.xlu1 %971 }
0x13bc   :  { %1345 = vmatmul.msk.bf16.vlgmr.msrb.gmra.mxu3 %vm43_vm0, %v972_v34 }
0x13e6   :  { %v145_v41 = vpop.xlane.xlu1 %144 }
0x13e7   :  { %v162_v42 = vmul.f32 %v1585_v25, %v145_v41 }
0x13e9   :  { %v202_v44 = vmul.f32 %v162_v42, %v162_v42  ;;  %v226_v9 = vsub.f32 %v1796_v10, %v162_v42  ;;  %v1829_v10 = vld [vmem:[%s1996_s6] ss:$0 sm:$0xff] }
0x13eb   :  { %v210_v46 = vsub.f32 %v194_v45, %v202_v44 }
0x13ed   :  { %v218_v48 = vmax.f32 %v210_v46, 0.0 }
0x13ef   :  { %v234_v28 = vadd.f32 1e-05, %v218_v48 }
0x13f1   :  { %1431 = vrsqrt.f32 %v234_v28  ;;  %vm293_vm8 = vweird.f32 %v234_v28 }
0x13f7   :  { %v1432_v49 = vpop.eup %1431 }
0x13f8   :  { %v288_v36 = vmul.f32 %v1432_v49, %v234_v28  ;;  %vm294_vm7 = vweird.f32 %v1432_v49 }
0x13f9   :  { %vm295_vm9 = vmor %vm293_vm8, %vm294_vm7 }
0x13fa   :  { %v289_v54 = vmul.f32 %v1432_v49, %v288_v36 }
0x13fc   :  { %v290_v4 = vmul.f32 0.5, %v289_v54 }
0x13fe   :  { %v291_v59 = vsub.f32 1.5, %v290_v4 }
0x1400   :  { %v292_v63 = vmul.f32 %v1432_v49, %v291_v59 }
0x1402   :  { %v296_v6 = vsel %vm295_vm9, %v1432_v49, %v292_v63 }
0x1403   :  { %v322_v56 = vmul.f32 %v296_v6, %v226_v9 }
0x1405   :  { %v333_v57 = vmul.f32 %v1823_v13, %v322_v56 }
0x1407   :  { %v344_v18 = vadd.f32 %v1829_v10, %v333_v57 }
0x1409   :  { %v356_v22 = vadd.f32 %v1841_v21, %v344_v18 }
0x143f   :  { %v985_v37 = vpop.f32.mrf.mxu3 }
0x1440   :  { %989 = vadd.xlane.f32.xlu0 %v985_v37  ;;  %v992_v38 = vmul.f32 %v985_v37, %v985_v37 }
0x1442   :  { %993 = vadd.xlane.f32.xlu2 %v992_v38 }
0x1447   :  { %v987_v40 = vpop.f32.mrf.mxu3 }
0x14b3   :  { %v990_v51 = vpop.xlane.xlu0 %989 }
0x14b4   :  { %v991_v52 = vmul.f32 %v990_v51, %v1585_v25 }
0x14b5   :  { %v994_v53 = vpop.xlane.xlu2 %993 }
0x14b6   :  { %v996_v60 = vmul.f32 %v991_v52, %v991_v52  ;;  %v995_v61 = vmul.f32 %v994_v53, %v1585_v25  ;;  %v999_v16 = vsub.f32 %v985_v37, %v991_v52  ;;  %v52_v53 = vld [vmem:[%s1994_s0 + $0x30] sm:$0xff] }
0x14b8   :  { %v997_v2 = vsub.f32 %v995_v61, %v996_v60  ;;  %v53_v60 = vld [vmem:[%s1994_s0 + $0x38] sm:$0xff]  ;;  %v60_v61 = vpack.c.bf16 %v52_v53, %v52_v53 }
0x14ba   :  { %v998_v5 = vmax.f32 %v997_v2, 0.0  ;;  %v61_v2 = vpack.c.bf16 %v53_v60, %v53_v60  ;;  %v78_v4 = vunpack.c.l.b16 %v60_v61 }
0x14bc   :  { %v1000_v58 = vadd.f32 1e-05, %v998_v5  ;;  %v79_v5 = vunpack.c.l.b16 %v61_v2 }
0x14be   :  { %1433 = vrsqrt.f32 %v1000_v58  ;;  %vm1007_vm11 = vweird.f32 %v1000_v58 }
0x14c4   :  { %v1434_v1 = vpop.eup %1433 }
0x14c5   :  { %v1002_v8 = vmul.f32 %v1434_v1, %v1000_v58  ;;  %vm1008_vm10 = vweird.f32 %v1434_v1  ;;  %v83_v58 = vpack.c.b16 %v79_v5, %v78_v4 }
0x14c6   :  { %vm1009_vm12 = vmor %vm1007_vm11, %vm1008_vm10 }
0x14c7   :  { %v1003_v50 = vmul.f32 %v1434_v1, %v1002_v8  ;;  %1327 = vmatmul.msk.bf16.gmra.mxu0 %vm90_vm1, %v83_v58 }
0x14c9   :  { %v1004_v11 = vmul.f32 0.5, %v1003_v50 }
0x14cb   :  { %v1005_v12 = vsub.f32 1.5, %v1004_v11 }
0x14cd   :  { %v1006_v15 = vmul.f32 %v1434_v1, %v1005_v12 }
0x14cf   :  { %v1010_v0 = vsel %vm1009_vm12, %v1434_v1, %v1006_v15 }
0x14d0   :  { %v1011_v7 = vmul.f32 %v1010_v0, %v999_v16 }
0x14d2   :  { %v1012_v20 = vmul.f32 %v1835_v19, %v1011_v7 }
0x14d4   :  { %v1013_v24 = vadd.f32 %v1847_v23, %v1012_v20 }
0x14d6   :  { %v1014_v26 = vadd.f32 %v1013_v24, %v356_v22 }
0x14d8   :  { %1435 = vtanh.f32 %v1014_v26  ;;  %v1015_v29 = vmul.f32 0.5, %v1014_v26 }
0x14da   :  { %1437 = vtanh.f32 %v1015_v29 }
0x14de   :  { %v1436_v27 = vpop.eup %1435 }
0x14df   :  { %1022 = vrot.lane.b32.xlu0 %v1436_v27, %s1474_s21 }
0x14e0   :  { %v1438_v30 = vpop.eup %1437 }
0x14e1   :  { %v1017_v31 = vadd.f32 1.0, %v1438_v30 }
0x14e3   :  { %v1018_v33 = vmul.f32 0.5, %v1017_v31 }
0x14e5   :  { %v1019_v38 = vmul.f32 %v1018_v33, %v1804_v14 }
0x1544   :  { %v127_v7 = vpop.f32.mrf.mxu0 }
0x1545   :  { %v171_v20 = vmul.f32 %v127_v7, %v127_v7 }
0x1551   :  { %v1023_v34 = vpop.permute.xlu0 %1022 }
0x1552   :  { %v1025_v37 = vmul.f32 %v1023_v34, %v1018_v33 }
0x1554   :  { %1027 = vrot.lane.b32.xlu2 %v1025_v37, %s1475_s22 }
0x15ae   :  { %v1028_v40 = vpop.permute.xlu2 %1027 }
0x15af   :  { %v1030_v41 = vadd.f32 %v1028_v40, %v1019_v38 }
0x15b1   :  { %1032 = vrot.lane.b32.xlu0 %v1030_v41, %s1476_s23  ;;  %v1039_v42 = vmul.f32 %v1030_v41, %v1030_v41 }
0x15b3   :  { %1041 = vrot.lane.b32.xlu1 %v1039_v42, %s1476_s23 }
0x1623   :  { %v1033_v43 = vpop.permute.xlu0 %1032 }
0x1624   :  { %v1035_v44 = vsel %vm43_vm0, %v1033_v43, 0.0 }
0x1625   :  { %1036 = vadd.xlane.f32.xlu0 %v1035_v44  ;;  %v1042_v45 = vpop.permute.xlu1 %1041 }
0x1626   :  { %v1044_v46 = vsel %vm43_vm0, %v1042_v45, 0.0 }
0x1627   :  { %1045 = vadd.xlane.f32.xlu2 %v1044_v46 }
0x162d   :  { %185 = vadd.xlane.f32.xlu0 %v171_v20 }
0x1698   :  { %v1037_v48 = vpop.xlane.xlu0 %1036 }
0x1699   :  { %v1038_v28 = vmul.f32 %v1037_v48, %v1644_v35 }
0x169a   :  { %v1046_v49 = vpop.xlane.xlu2 %1045 }
0x169b   :  { %v1048_v14 = vmul.f32 %v1038_v28, %v1038_v28  ;;  %v1047_v36 = vmul.f32 %v1046_v49, %v1644_v35  ;;  %v1051_v50 = vsub.f32 %v1030_v41, %v1038_v28 }
0x169d   :  { %v1049_v51 = vsub.f32 %v1047_v36, %v1048_v14 }
0x169f   :  { %v1050_v52 = vmax.f32 %v1049_v51, 0.0 }
0x16a0   :  { %v186_v31 = vpop.xlane.xlu0 %185 }
0x16a1   :  { %v1052_v54 = vadd.f32 1e-05, %v1050_v52  ;;  %v195_v34 = vmul.f32 %v186_v31, %v1585_v25 }
0x16a3   :  { %1439 = vrsqrt.f32 %v1052_v54  ;;  %vm1059_vm14 = vweird.f32 %v1052_v54 }
0x16a9   :  { %v1440_v59 = vpop.eup %1439 }
0x16aa   :  { %v1054_v63 = vmul.f32 %v1440_v59, %v1052_v54  ;;  %vm1060_vm13 = vweird.f32 %v1440_v59 }
0x16ab   :  { %vm1061_vm15 = vmor %vm1059_vm14, %vm1060_vm13 }
0x16ac   :  { %v1055_v1 = vmul.f32 %v1440_v59, %v1054_v63 }
0x16ae   :  { %v1056_v6 = vmul.f32 0.5, %v1055_v1 }
0x16b0   :  { %v1057_v8 = vsub.f32 1.5, %v1056_v6 }
0x16b2   :  { %v1058_v9 = vmul.f32 %v1440_v59, %v1057_v8 }
0x16b4   :  { %v1062_v56 = vsel %vm1061_vm15, %v1440_v59, %v1058_v9 }
0x16b5   :  { %v1063_v11 = vmul.f32 %v1062_v56, %v1051_v50 }
0x16b7   :  { %v1064_v12 = vmul.f32 %v1063_v11, %v1648_v47 }
0x16b9   :  { %v1868_v57 = vadd.f32 %v1064_v12, %v1650_v55 }
0x16bb   :  { %1441 = vtanh.f32 %v1868_v57 }
0x16c1   :  { %v1442_v15 = vpop.eup %1441 }
0x16c2   :  { %1068 = vrot.lane.b32.xlu1 %v1442_v15, %s1474_s21 }
0x1734   :  { %v1069_v16 = vpop.permute.xlu1 %1068 }
0x1735   :  { %v1872_v0 = vmul.f32 %v1069_v16, %v1018_v33 }
0x1737   :  { %v1080_v18 = vpack.c.bf16 %v1872_v0, %v1872_v0 }
0x1739   :  { %1082 = vrot.lane.b32.xlu1 %v1080_v18, %s1475_s22 }
0x1763   :  { %146 = vadd.xlane.f32.xlu1 %v127_v7 }
0x17ab   :  { %v1083_v22 = vpop.permute.xlu1 %1082 }
0x17ac   :  { %1347 = vmatmul.msk.bf16.vlgmr.msra.gmra.mxu1 %vm43_vm0, %v1083_v22 }
0x17d6   :  { %v147_v29 = vpop.xlane.xlu1 %146 }
0x17d7   :  { %v163_v30 = vmul.f32 %v1585_v25, %v147_v29 }
0x17d9   :  { %v203_v33 = vmul.f32 %v163_v30, %v163_v30  ;;  %v227_v60 = vsub.f32 %v127_v7, %v163_v30 }
0x17db   :  { %v211_v37 = vsub.f32 %v195_v34, %v203_v33 }
0x17dd   :  { %v219_v38 = vmax.f32 %v211_v37, 0.0 }
0x17df   :  { %v235_v40 = vadd.f32 1e-05, %v219_v38 }
0x17e1   :  { %1443 = vrsqrt.f32 %v235_v40  ;;  %vm303_vm1 = vweird.f32 %v235_v40 }
0x17e7   :  { %v1444_v41 = vpop.eup %1443 }
0x17e8   :  { %v298_v42 = vmul.f32 %v1444_v41, %v235_v40  ;;  %vm304_vm2 = vweird.f32 %v1444_v41 }
0x17e9   :  { %vm305_vm3 = vmor %vm303_vm1, %vm304_vm2 }
0x17ea   :  { %v299_v45 = vmul.f32 %v1444_v41, %v298_v42 }
0x17ec   :  { %v300_v14 = vmul.f32 0.5, %v299_v45 }
0x17ee   :  { %v301_v52 = vsub.f32 1.5, %v300_v14 }
0x17f0   :  { %v302_v54 = vmul.f32 %v1444_v41, %v301_v52 }
0x17f2   :  { %v306_v61 = vsel %vm305_vm3, %v1444_v41, %v302_v54 }
0x17f3   :  { %v323_v5 = vmul.f32 %v306_v61, %v227_v60 }
0x17f5   :  { %v334_v63 = vmul.f32 %v1823_v13, %v323_v5 }
0x17f7   :  { %v345_v9 = vadd.f32 %v1829_v10, %v334_v63 }
0x17f9   :  { %v357_v11 = vadd.f32 %v1841_v21, %v345_v9 }
0x1829   :  { %v1096_v24 = vpop.f32.mrf.mxu1 }
0x182a   :  { %1100 = vadd.xlane.f32.xlu2 %v1096_v24  ;;  %v1103_v26 = vmul.f32 %v1096_v24, %v1096_v24 }
0x182c   :  { %1104 = vadd.xlane.f32.xlu0 %v1103_v26 }
0x1831   :  { %v1098_v27 = vpop.f32.mrf.mxu1 }
0x189d   :  { %v1101_v43 = vpop.xlane.xlu2 %1100 }
0x189e   :  { %v1102_v44 = vmul.f32 %v1101_v43, %v1585_v25 }
0x189f   :  { %v1105_v46 = vpop.xlane.xlu0 %1104 }
0x18a0   :  { %v1107_v48 = vmul.f32 %v1102_v44, %v1102_v44  ;;  %v1106_v28 = vmul.f32 %v1105_v46, %v1585_v25  ;;  %v1110_v6 = vsub.f32 %v1096_v24, %v1102_v44 }
0x18a2   :  { %v1108_v49 = vsub.f32 %v1106_v28, %v1107_v48 }
0x18a4   :  { %v1109_v36 = vmax.f32 %v1108_v49, 0.0 }
0x18a6   :  { %v1111_v51 = vadd.f32 1e-05, %v1109_v36 }
0x18a8   :  { %1445 = vrsqrt.f32 %v1111_v51  ;;  %vm1118_vm5 = vweird.f32 %v1111_v51 }
0x18ae   :  { %v1446_v53 = vpop.eup %1445 }
0x18af   :  { %v1113_v2 = vmul.f32 %v1446_v53, %v1111_v51  ;;  %vm1119_vm4 = vweird.f32 %v1446_v53 }
0x18b0   :  { %vm1120_vm6 = vmor %vm1118_vm5, %vm1119_vm4 }
0x18b1   :  { %v1114_v4 = vmul.f32 %v1446_v53, %v1113_v2 }
0x18b3   :  { %v1115_v58 = vmul.f32 0.5, %v1114_v4  ;;  %v129_v4 = vpop.f32.mrf.mxu0 }
0x18b4   :  { %v172_v63 = vmul.f32 %v129_v4, %v129_v4 }
0x18b5   :  { %v1116_v59 = vsub.f32 1.5, %v1115_v58 }
0x18b7   :  { %v1117_v1 = vmul.f32 %v1446_v53, %v1116_v59 }
0x18b9   :  { %v1121_v8 = vsel %vm1120_vm6, %v1446_v53, %v1117_v1 }
0x18ba   :  { %v1122_v50 = vmul.f32 %v1121_v8, %v1110_v6 }
0x18bc   :  { %v1123_v56 = vmul.f32 %v1835_v19, %v1122_v50 }
0x18be   :  { %v1124_v12 = vadd.f32 %v1847_v23, %v1123_v56 }
0x18c0   :  { %v1125_v15 = vadd.f32 %v1124_v12, %v357_v11 }
0x18c2   :  { %1447 = vtanh.f32 %v1125_v15  ;;  %v1126_v18 = vmul.f32 0.5, %v1125_v15 }
0x18c4   :  { %1449 = vtanh.f32 %v1126_v18 }
0x18c8   :  { %v1448_v16 = vpop.eup %1447 }
0x18c9   :  { %1133 = vrot.lane.b32.xlu2 %v1448_v16, %s1474_s21 }
0x18ca   :  { %v1450_v7 = vpop.eup %1449 }
0x18cb   :  { %v1128_v20 = vadd.f32 1.0, %v1450_v7 }
0x18cd   :  { %v1129_v22 = vmul.f32 0.5, %v1128_v20 }
0x18cf   :  { %v1130_v27 = vmul.f32 %v1129_v22, %v1868_v57 }
0x1923   :  { %v1134_v24 = vpop.permute.xlu2 %1133 }
0x1924   :  { %v1136_v26 = vmul.f32 %v1134_v24, %v1129_v22 }
0x1926   :  { %1138 = vrot.lane.b32.xlu0 %v1136_v26, %s1475_s22 }
0x1998   :  { %v1139_v29 = vpop.permute.xlu0 %1138 }
0x1999   :  { %v1141_v30 = vadd.f32 %v1139_v29, %v1130_v27 }
0x199b   :  { %1143 = vrot.lane.b32.xlu2 %v1141_v30, %s1476_s23  ;;  %v1150_v31 = vmul.f32 %v1141_v30, %v1141_v30 }
0x199d   :  { %1152 = vrot.lane.b32.xlu0 %v1150_v31, %s1476_s23 }
0x19f5   :  { %v1144_v33 = vpop.permute.xlu2 %1143 }
0x19f6   :  { %v1146_v34 = vsel %vm43_vm0, %v1144_v33, 0.0 }
0x19f7   :  { %1147 = vadd.xlane.f32.xlu1 %v1146_v34 }
0x1a0f   :  { %v1153_v37 = vpop.permute.xlu0 %1152 }
0x1a10   :  { %v1155_v38 = vsel %vm43_vm0, %v1153_v37, 0.0 }
0x1a11   :  { %1156 = vadd.xlane.f32.xlu2 %v1155_v38 }
0x1a6a   :  { %v1148_v40 = vpop.xlane.xlu1 %1147 }
0x1a6b   :  { %v1149_v41 = vmul.f32 %v1148_v40, %v1644_v35 }
0x1a6d   :  { %v1159_v57 = vmul.f32 %v1149_v41, %v1149_v41  ;;  %v1162_v52 = vsub.f32 %v1141_v30, %v1149_v41 }
0x1a84   :  { %v1157_v42 = vpop.xlane.xlu2 %1156 }
0x1a85   :  { %v1158_v43 = vmul.f32 %v1157_v42, %v1644_v35 }
0x1a87   :  { %v1160_v44 = vsub.f32 %v1158_v43, %v1159_v57 }
0x1a89   :  { %v1161_v45 = vmax.f32 %v1160_v44, 0.0 }
0x1a8b   :  { %v1163_v46 = vadd.f32 1e-05, %v1161_v45 }
0x1a8d   :  { %1451 = vrsqrt.f32 %v1163_v46  ;;  %vm1170_vm8 = vweird.f32 %v1163_v46 }
0x1a93   :  { %v1452_v48 = vpop.eup %1451 }
0x1a94   :  { %v1165_v28 = vmul.f32 %v1452_v48, %v1163_v46  ;;  %vm1171_vm7 = vweird.f32 %v1452_v48 }
0x1a95   :  { %vm1172_vm9 = vmor %vm1170_vm8, %vm1171_vm7 }
0x1a96   :  { %v1166_v49 = vmul.f32 %v1452_v48, %v1165_v28 }
0x1a98   :  { %v1167_v14 = vmul.f32 0.5, %v1166_v49 }
0x1a9a   :  { %v1168_v36 = vsub.f32 1.5, %v1167_v14 }
0x1a9c   :  { %v1169_v51 = vmul.f32 %v1452_v48, %v1168_v36 }
0x1a9e   :  { %v1173_v54 = vsel %vm1172_vm9, %v1452_v48, %v1169_v51 }
0x1a9f   :  { %v1174_v53 = vmul.f32 %v1173_v54, %v1162_v52 }
0x1aa1   :  { %v1175_v60 = vmul.f32 %v1174_v53, %v1648_v47 }
0x1aa3   :  { %v1898_v61 = vadd.f32 %v1175_v60, %v1650_v55 }
0x1aa5   :  { %1453 = vtanh.f32 %v1898_v61 }
0x1aab   :  { %v1454_v2 = vpop.eup %1453 }
0x1aac   :  { %1179 = vrot.lane.b32.xlu0 %v1454_v2, %s1474_s21 }
0x1ad6   :  { %148 = vadd.xlane.f32.xlu0 %v129_v4 }
0x1b1e   :  { %v1180_v5 = vpop.permute.xlu0 %1179 }
0x1b1f   :  { %v1902_v58 = vmul.f32 %v1180_v5, %v1129_v22 }
0x1b21   :  { %v1191_v59 = vpack.c.bf16 %v1902_v58, %v1902_v58 }
0x1b23   :  { %1193 = vrot.lane.b32.xlu1 %v1191_v59, %s1475_s22 }
0x1b49   :  { %v149_v50 = vpop.xlane.xlu0 %148 }
0x1b4a   :  { %v164_v11 = vmul.f32 %v1585_v25, %v149_v50 }
0x1b4c   :  { %v204_v15 = vmul.f32 %v164_v11, %v164_v11  ;;  %v228_v44 = vsub.f32 %v129_v4, %v164_v11 }
0x1b4d   :  { %187 = vadd.xlane.f32.xlu1 %v172_v63 }
0x1b95   :  { %v1194_v1 = vpop.permute.xlu1 %1193 }
0x1b96   :  { %1349 = vmatmul.msk.bf16.vlgmr.msra.gmra.mxu2 %vm43_vm0, %v1194_v1 }
0x1bc0   :  { %v188_v56 = vpop.xlane.xlu1 %187 }
0x1bc1   :  { %v196_v12 = vmul.f32 %v188_v56, %v1585_v25 }
0x1bc3   :  { %v212_v16 = vsub.f32 %v196_v12, %v204_v15 }
0x1bc5   :  { %v220_v18 = vmax.f32 %v212_v16, 0.0 }
0x1bc7   :  { %v236_v7 = vadd.f32 1e-05, %v220_v18 }
0x1bc9   :  { %1455 = vrsqrt.f32 %v236_v7  ;;  %vm313_vm11 = vweird.f32 %v236_v7 }
0x1bcf   :  { %v1456_v22 = vpop.eup %1455 }
0x1bd0   :  { %v308_v24 = vmul.f32 %v1456_v22, %v236_v7  ;;  %vm314_vm10 = vweird.f32 %v1456_v22 }
0x1bd1   :  { %vm315_vm12 = vmor %vm313_vm11, %vm314_vm10 }
0x1bd2   :  { %v309_v27 = vmul.f32 %v1456_v22, %v308_v24 }
0x1bd4   :  { %v310_v34 = vmul.f32 0.5, %v309_v27 }
0x1bd6   :  { %v311_v40 = vsub.f32 1.5, %v310_v34 }
0x1bd8   :  { %v312_v41 = vmul.f32 %v1456_v22, %v311_v40 }
0x1bda   :  { %v316_v57 = vsel %vm315_vm12, %v1456_v22, %v312_v41 }
0x1bdb   :  { %v324_v46 = vmul.f32 %v316_v57, %v228_v44 }
0x1c19   :  { %v1207_v6 = vpop.f32.mrf.mxu2 }
0x1c1a   :  { %1211 = vadd.xlane.f32.xlu2 %v1207_v6  ;;  %v1214_v8 = vmul.f32 %v1207_v6, %v1207_v6 }
0x1c21   :  { %v1209_v9 = vpop.f32.mrf.mxu2 }
0x1c22   :  { %1215 = vadd.xlane.f32.xlu2 %v1214_v8 }
0x1c8d   :  { %v1212_v20 = vpop.xlane.xlu2 %1211 }
0x1c8e   :  { %v1213_v26 = vmul.f32 %v1212_v20, %v1585_v25 }
0x1c90   :  { %v1218_v30 = vmul.f32 %v1213_v26, %v1213_v26  ;;  %v1221_v14 = vsub.f32 %v1207_v6, %v1213_v26 }
0x1c95   :  { %v1216_v29 = vpop.xlane.xlu2 %1215 }
0x1c96   :  { %v1217_v31 = vmul.f32 %v1216_v29, %v1585_v25  ;;  %v335_v25 = vmul.f32 %v1823_v13, %v324_v46 }
0x1c98   :  { %v1219_v33 = vsub.f32 %v1217_v31, %v1218_v30  ;;  %v346_v51 = vadd.f32 %v1829_v10, %v335_v25 }
0x1c9a   :  { %v1220_v37 = vmax.f32 %v1219_v33, 0.0  ;;  %v358_v53 = vadd.f32 %v1841_v21, %v346_v51 }
0x1c9c   :  { %v1222_v38 = vadd.f32 1e-05, %v1220_v37 }
0x1c9e   :  { %1457 = vrsqrt.f32 %v1222_v38  ;;  %vm1229_vm14 = vweird.f32 %v1222_v38 }
0x1ca4   :  { %v1458_v42 = vpop.eup %1457 }
0x1ca5   :  { %v1224_v43 = vmul.f32 %v1458_v42, %v1222_v38  ;;  %vm1230_vm13 = vweird.f32 %v1458_v42 }
0x1ca6   :  { %vm1231_vm15 = vmor %vm1229_vm14, %vm1230_vm13 }
0x1ca7   :  { %v1225_v45 = vmul.f32 %v1458_v42, %v1224_v43 }
0x1ca9   :  { %v1226_v48 = vmul.f32 0.5, %v1225_v45 }
0x1cab   :  { %v1227_v28 = vsub.f32 1.5, %v1226_v48 }
0x1cad   :  { %v1228_v49 = vmul.f32 %v1458_v42, %v1227_v28 }
0x1caf   :  { %v1232_v36 = vsel %vm1231_vm15, %v1458_v42, %v1228_v49 }
0x1cb0   :  { %v1233_v52 = vmul.f32 %v1232_v36, %v1221_v14 }
0x1cb2   :  { %v1234_v54 = vmul.f32 %v1835_v19, %v1233_v52 }
0x1cb4   :  { %v1235_v60 = vadd.f32 %v1847_v23, %v1234_v54 }
0x1cb6   :  { %v1236_v2 = vadd.f32 %v1235_v60, %v358_v53 }
0x1cb8   :  { %1459 = vtanh.f32 %v1236_v2  ;;  %v1237_v13 = vmul.f32 0.5, %v1236_v2 }
0x1cba   :  { %1461 = vtanh.f32 %v1237_v13 }
0x1cbe   :  { %v1460_v4 = vpop.eup %1459 }
0x1cbf   :  { %1244 = vrot.lane.b32.xlu0 %v1460_v4, %s1474_s21 }
0x1cc0   :  { %v1462_v5 = vpop.eup %1461 }
0x1cc1   :  { %v1239_v59 = vadd.f32 1.0, %v1462_v5 }
0x1cc3   :  { %v1918_v63 = vmul.f32 0.5, %v1239_v59 }
0x1cc5   :  { %v1241_v19 = vmul.f32 %v1918_v63, %v1898_v61 }
0x1d31   :  { %v1245_v1 = vpop.permute.xlu0 %1244 }
0x1d32   :  { %v1247_v10 = vmul.f32 %v1245_v1, %v1918_v63 }
0x1d34   :  { %1249 = vrot.lane.b32.xlu2 %v1247_v10, %s1475_s22 }
0x1d3c   :  { %629 = vrot.lane.b32.xlu2 %v1701_v39, %s1475_s22 }
0x1d44   :  { %851 = vrot.lane.b32.xlu2 %v1774_v3, %s1475_s22 }
0x1d4c   :  { %962 = vrot.lane.b32.xlu2 %v1808_v32, %s1475_s22 }
0x1d54   :  { %1073 = vrot.lane.b32.xlu2 %v1872_v0, %s1475_s22 }
0x1d5c   :  { %1184 = vrot.lane.b32.xlu2 %v1902_v58, %s1475_s22 }
0x1d8e   :  { %v1250_v21 = vpop.permute.xlu2 %1249 }
0x1d8f   :  { %v1252_v23 = vadd.f32 %v1250_v21, %v1241_v19 }
0x1d91   :  { %1254 = vrot.lane.b32.xlu1 %v1252_v23, %s1476_s23  ;;  %v1261_v39 = vmul.f32 %v1252_v23, %v1252_v23 }
0x1d93   :  { %1263 = vrot.lane.b32.xlu0 %v1261_v39, %s1476_s23 }
0x1d96   :  { %v630_v3 = vpop.permute.xlu2 %629 }
0x1d97   :  { %1338 = vst.msk [vmem:[%s2002_s10 + $0x8] sm:$0xff] %vm43_vm0, %v630_v3 }
0x1d9b   :  { %519 = vrot.lane.b32.xlu0 %v1659_v62, %s1475_s22 }
0x1d9e   :  { %v852_v32 = vpop.permute.xlu2 %851 }
0x1d9f   :  { %1342 = vst.msk [vmem:[%s2002_s10 + $0x18] sm:$0xff] %vm43_vm0, %v852_v32 }
0x1da3   :  { %740 = vrot.lane.b32.xlu0 %v1735_v17, %s1475_s22 }
0x1da6   :  { %v963_v0 = vpop.permute.xlu2 %962 }
0x1da7   :  { %1344 = vst.msk [vmem:[%s2002_s10 + $0x20] sm:$0xff] %vm43_vm0, %v963_v0 }
0x1dae   :  { %v1074_v61 = vpop.permute.xlu2 %1073 }
0x1daf   :  { %1346 = vst.msk [vmem:[%s2002_s10 + $0x28] sm:$0xff] %vm43_vm0, %v1074_v61 }
0x1db6   :  { %v1185_v62 = vpop.permute.xlu2 %1184 }
0x1db7   :  { %1348 = vst.msk [vmem:[%s2002_s10 + $0x30] sm:$0xff] %vm43_vm0, %v1185_v62 }
0x1e03   :  { %v1255_v58 = vpop.permute.xlu1 %1254 }
0x1e04   :  { %v1257_v17 = vsel %vm43_vm0, %v1255_v58, 0.0 }
0x1e05   :  { %1258 = vadd.xlane.f32.xlu0 %v1257_v17  ;;  %v1264_v6 = vpop.permute.xlu0 %1263 }
0x1e06   :  { %v1266_v8 = vsel %vm43_vm0, %v1264_v6, 0.0 }
0x1e07   :  { %1267 = vadd.xlane.f32.xlu1 %v1266_v8 }
0x1e0d   :  { %v520_v9 = vpop.permute.xlu0 %519 }
0x1e0e   :  { %522 = vst.msk [vmem:[%s2002_s10] sm:$0xff] %vm43_vm0, %v520_v9 }
0x1e15   :  { %v741_v50 = vpop.permute.xlu0 %740 }
0x1e16   :  { %1340 = vst.msk [vmem:[%s2002_s10 + $0x10] sm:$0xff] %vm43_vm0, %v741_v50 }
0x1e78   :  { %v1259_v56 = vpop.xlane.xlu0 %1258 }
0x1e79   :  { %v1260_v11 = vmul.f32 %v1259_v56, %v1644_v35 }
0x1e7a   :  { %v1268_v12 = vpop.xlane.xlu1 %1267 }
0x1e7b   :  { %v1270_v15 = vmul.f32 %v1260_v11, %v1260_v11  ;;  %v1269_v16 = vmul.f32 %v1268_v12, %v1644_v35  ;;  %v1273_v31 = vsub.f32 %v1252_v23, %v1260_v11 }
0x1e7d   :  { %v1271_v18 = vsub.f32 %v1269_v16, %v1270_v15 }
0x1e7f   :  { %v1272_v7 = vmax.f32 %v1271_v18, 0.0 }
0x1e81   :  { %v1274_v20 = vadd.f32 1e-05, %v1272_v7 }
0x1e83   :  { %1463 = vrsqrt.f32 %v1274_v20  ;;  %vm1281_vm2 = vweird.f32 %v1274_v20 }
0x1e89   :  { %v1464_v22 = vpop.eup %1463 }
0x1e8a   :  { %v1276_v24 = vmul.f32 %v1464_v22, %v1274_v20  ;;  %vm1282_vm1 = vweird.f32 %v1464_v22 }
0x1e8b   :  { %vm1283_vm3 = vmor %vm1281_vm2, %vm1282_vm1 }
0x1e8c   :  { %v1277_v26 = vmul.f32 %v1464_v22, %v1276_v24 }
0x1e8e   :  { %v1278_v27 = vmul.f32 0.5, %v1277_v26 }
0x1e90   :  { %v1279_v29 = vsub.f32 1.5, %v1278_v27 }
0x1e92   :  { %v1280_v30 = vmul.f32 %v1464_v22, %v1279_v29 }
0x1e94   :  { %v1284_v33 = vsel %vm1283_vm3, %v1464_v22, %v1280_v30 }
0x1e95   :  { %v1285_v34 = vmul.f32 %v1284_v33, %v1273_v31 }
0x1e97   :  { %v1286_v37 = vmul.f32 %v1285_v34, %v1648_v47 }
0x1e99   :  { %v1287_v35 = vadd.f32 %v1286_v37, %v1650_v55 }
0x1e9b   :  { %1465 = vtanh.f32 %v1287_v35 }
0x1ea1   :  { %v1466_v38 = vpop.eup %1465 }
0x1ea2   :  { %1290 = vrot.lane.b32.xlu2 %v1466_v38, %s1474_s21 }
0x1efc   :  { %v1291_v40 = vpop.permute.xlu2 %1290 }
0x1efd   :  { %v1293_v41 = vmul.f32 %v1291_v40, %v1918_v63 }
0x1eff   :  { %1295 = vrot.lane.b32.xlu2 %v1293_v41, %s1475_s22 }
0x1f07   :  { %1302 = vrot.lane.b32.xlu2 %v1287_v35, %s1476_s23 }
0x1f59   :  { %v1296_v42 = vpop.permute.xlu2 %1295 }
0x1f5a   :  { %1350 = vst.msk [vmem:[%s2002_s10 + $0x38] sm:$0xff] %vm43_vm0, %v1296_v42 }
0x1f5b   :  { %1300 = vst.msk [vmem:[#allocation3] sm:$0xff] %vm43_vm0, %v1296_v42 }
0x1f5c   :  { %1306 = vst.msk [vmem:[%s2003_s11] sm:$0xff] %vm43_vm0, %v1296_v42 }
0x1f61   :  { %v1303_v47 = vpop.permute.xlu2 %1302 }
0x1f62   :  { %1305 = vst.msk [vmem:[#allocation4] sm:$0xff] %vm43_vm0, %v1303_v47 }
0x1f63   :  { %1307 = vst.msk [vmem:[%s2004_s12] sm:$0xff] %vm43_vm0, %v1303_v47 }

</bundles_post_ra>
